<compile_context>
chip_gen: v7x
topology: tpu7x:2x2x1
jax: 0.10.0
libtpu: 0.0.40
codegen_flags: <defaults>
</compile_context>

<pallas_src>
import functools

import jax
import jax.numpy as jnp
from jax import lax
from jax.experimental import pallas as pl
from jax.experimental.pallas import tpu as pltpu


def _gau_kernel(zf_ref, xf_ref, wqg_ref, wsg_ref, gsh_ref, wfie_ref, wfix_ref,
                fish_ref, out_ref, *, top_k):
    zf = zf_ref[0]            # [C, Nz]    (channels-first)
    xf = xf_ref[0]            # [C, Nx]
    wqg = wqg_ref[...]        # [2C, C]    rows 0:C = query, C:2C = g (BN-folded)
    wsg = wsg_ref[...]        # [2C, C]    rows 0:C = support, C:2C = g (BN-folded)
    gsh = gsh_ref[...]        # [C, 1]     g conv bias + BN shift
    wfi_e = wfie_ref[...]     # [Cout, C]  fi weight acting on the embedding
    wfi_x = wfix_ref[...]     # [Cout, C]  fi weight acting on xf_g
    fish = fish_ref[...]      # [Cout, 1]  fi conv bias + BN shift

    c = zf.shape[0]

    # Fused 1x1 convs (shared LHS): one MXU pass per activation.
    qg_x = jnp.dot(wqg, xf, preferred_element_type=jnp.float32)   # [2C, Nx]
    sg_z = jnp.dot(wsg, zf, preferred_element_type=jnp.float32)   # [2C, Nz]

    xf_t = qg_x[:c]                                   # query(xf)   [C, Nx]
    xf_g = jnp.maximum(qg_x[c:] + gsh, 0.0)           # g(xf)       [C, Nx]
    zf_t = sg_z[:c]                                   # support(zf) [C, Nz]
    zf_g = jnp.maximum(sg_z[c:] + gsh, 0.0)           # g(zf)       [C, Nz]

    # Attention scores stored transposed: [Nz, Nx]; softmax axis = 0 (over Nz),
    # i.e. dim=2 of the [B, Nx, Nz] tensor in the torch code.
    scores = jnp.dot(zf_t.T, xf_t, preferred_element_type=jnp.float32)  # [Nz, Nx]

    # Top-k selection along Nz directly on the raw scores (exp is monotone, so
    # the kept set equals the kept set on softmax values).  The first peel step
    # is the per-column max (reused for the numerically stable exp).  Only a
    # [1, Nx] running threshold is carried; fully unrolled (top_k is static).
    nz = scores.shape[0]
    k = min(top_k, nz)
    m = jnp.max(scores, axis=0, keepdims=True)         # [1, Nx]  (1st largest)
    keep = None
    if k < nz:
        neg_inf = jnp.float32(-jnp.inf)

        def body(_, thresh):
            return jnp.max(jnp.where(scores < thresh, scores, neg_inf),
                           axis=0, keepdims=True)

        thresh = lax.fori_loop(0, k - 1, body, m, unroll=True)
        # TODO(synk): exact ties at the threshold are all kept here, whereas
        # torch.topk keeps exactly k and breaks ties by index; with continuous
        # softmax scores this never differs in practice.
        keep = scores >= thresh

    p = jnp.exp(scores - m)                            # unnormalized softmax [Nz, Nx]
    s = jnp.sum(p, axis=0, keepdims=True)              # full softmax denominator [1, Nx]
    if keep is not None:
        p = jnp.where(keep, p, 0.0)

    # embedding = attn @ zf_g  -> channels-first [C, Nx]; apply the deferred
    # softmax normalization to the small embedding tensor.
    emb = jnp.dot(zf_g, p, preferred_element_type=jnp.float32) * (1.0 / s)

    # fi(concat([embedding, xf_g], channel)) as two accumulating matmuls
    # (no [2C, Nx] concat copy), then bias/BN shift and ReLU.
    out = (jnp.dot(wfi_e, emb, preferred_element_type=jnp.float32)
           + jnp.dot(wfi_x, xf_g, preferred_element_type=jnp.float32)
           + fish)
    out_ref[0] = jnp.maximum(out, 0.0)                 # [Cout, Nx]


def graph_attention_union(zf, xf, p, top_k=32, eps=1e-5):
    """zf, xf: NCHW float32. Returns NCHW [B, Cout, Hx, Wx]."""
    B, C, Hz, Wz = zf.shape
    _, _, Hx, Wx = xf.shape
    Nz, Nx = Hz * Wz, Hx * Wx
    Cout = p['wfi'].shape[0]

    # NCHW -> [B, C, N]  (pure reshape, no transpose)
    zf_cf = zf.reshape(B, C, Nz)
    xf_cf = xf.reshape(B, C, Nx)

    # Fold BatchNorm (eval mode) into conv weights/biases; fuse shared-LHS convs.
    g_scale = p['g_gamma'] / jnp.sqrt(p['g_var'] + eps)
    wg_eff = p['wg'] * g_scale[:, None]                       # [C, C]
    g_shift = ((p['bg'] - p['g_mean']) * g_scale + p['g_beta']).reshape(C, 1)

    w_qg = jnp.concatenate([p['wq'], wg_eff], axis=0)         # [2C, C] for xf
    w_sg = jnp.concatenate([p['ws'], wg_eff], axis=0)         # [2C, C] for zf

    fi_scale = p['fi_gamma'] / jnp.sqrt(p['fi_var'] + eps)
    wfi_eff = p['wfi'] * fi_scale[:, None]                    # [Cout, 2C]
    wfi_e = wfi_eff[:, :C]                                    # acts on embedding
    wfi_x = wfi_eff[:, C:]                                    # acts on xf_g
    fi_shift = ((p['bfi'] - p['fi_mean']) * fi_scale + p['fi_beta']).reshape(Cout, 1)

    out = pl.pallas_call(
        functools.partial(_gau_kernel, top_k=top_k),
        out_shape=jax.ShapeDtypeStruct((B, Cout, Nx), jnp.float32),
        grid_spec=pltpu.PrefetchScalarGridSpec(
            num_scalar_prefetch=0,
            grid=(B,),
            in_specs=[
                pl.BlockSpec((1, C, Nz), lambda b: (b, 0, 0)),
                pl.BlockSpec((1, C, Nx), lambda b: (b, 0, 0)),
                pl.BlockSpec((2 * C, C), lambda b: (0, 0)),
                pl.BlockSpec((2 * C, C), lambda b: (0, 0)),
                pl.BlockSpec((C, 1), lambda b: (0, 0)),
                pl.BlockSpec((Cout, C), lambda b: (0, 0)),
                pl.BlockSpec((Cout, C), lambda b: (0, 0)),
                pl.BlockSpec((Cout, 1), lambda b: (0, 0)),
            ],
            out_specs=pl.BlockSpec((1, Cout, Nx), lambda b: (b, 0, 0)),
        ),
        compiler_params=pltpu.CompilerParams(dimension_semantics=("parallel",)),
    )(zf_cf, xf_cf, w_qg, w_sg, g_shift, wfi_e, wfi_x, fi_shift)

    # [B, Cout, Nx] -> NCHW (pure reshape, output already channels-first)
    return out.reshape(B, Cout, Hx, Wx)


def _reference(zf, xf, p, top_k=32, eps=1e-5):
    """Pure-JAX reference mirroring the PyTorch forward (NCHW, eval-mode BN)."""
    B, C, Hz, Wz = zf.shape
    _, _, Hx, Wx = xf.shape

    def conv1x1(x, w, b=None):
        y = jnp.einsum('oc,bchw->bohw', w, x)
        return y if b is None else y + b[None, :, None, None]

    def bn(x, gamma, beta, mean, var):
        return (gamma[None, :, None, None] * (x - mean[None, :, None, None])
                / jnp.sqrt(var[None, :, None, None] + eps) + beta[None, :, None, None])

    xf_t = conv1x1(xf, p['wq'])
    zf_t = conv1x1(zf, p['ws'])

    def g(x):
        return jnp.maximum(
            bn(conv1x1(x, p['wg'], p['bg']),
               p['g_gamma'], p['g_beta'], p['g_mean'], p['g_var']), 0.0)

    xf_g, zf_g = g(xf), g(zf)
    Nz, Nx = Hz * Wz, Hx * Wx
    zf_t_p = zf_t.reshape(B, C, Nz)
    zf_g_p = zf_g.reshape(B, C, Nz).transpose(0, 2, 1)
    xf_t_p = xf_t.reshape(B, C, Nx).transpose(0, 2, 1)

    attn = jnp.einsum('bnc,bcm->bnm', xf_t_p, zf_t_p)
    attn = jax.nn.softmax(attn, axis=2)
    k = min(top_k, attn.shape[-1])
    vals, _ = lax.top_k(attn, k)
    attn = jnp.where(attn >= vals[..., -1:], attn, 0.0)

    emb = jnp.einsum('bnm,bmc->bnc', attn, zf_g_p).transpose(0, 2, 1)
    emb = emb.reshape(B, C, Hx, Wx)
    cat = jnp.concatenate([emb, xf_g], axis=1)
    out = conv1x1(cat, p['wfi'], p['bfi'])
    out = jnp.maximum(bn(out, p['fi_gamma'], p['fi_beta'], p['fi_mean'], p['fi_var']), 0.0)
    return out


def _init_params(key, in_channel, out_channel):
    ks = jax.random.split(key, 16)
    u = lambda k, s, lo, hi: jax.random.uniform(k, s, jnp.float32, lo, hi)
    n = lambda k, s, sc: sc * jax.random.normal(k, s, jnp.float32)
    C, O = in_channel, out_channel
    return {
        'wq': n(ks[0], (C, C), 0.1),
        'ws': n(ks[1], (C, C), 0.1),
        'wg': n(ks[2], (C, C), 0.1),
        'bg': n(ks[3], (C,), 0.1),
        'g_gamma': u(ks[4], (C,), 0.5, 1.5),
        'g_beta': n(ks[5], (C,), 0.1),
        'g_mean': n(ks[6], (C,), 0.1),
        'g_var': u(ks[7], (C,), 0.5, 1.5),
        'wfi': n(ks[8], (O, 2 * C), 0.1),
        'bfi': n(ks[9], (O,), 0.1),
        'fi_gamma': u(ks[10], (O,), 0.5, 1.5),
        'fi_beta': n(ks[11], (O,), 0.1),
        'fi_mean': n(ks[12], (O,), 0.1),
        'fi_var': u(ks[13], (O,), 0.5, 1.5),
    }


if __name__ == "__main__":
    key = jax.random.PRNGKey(0)
    k_z, k_x, k_p = jax.random.split(key, 3)

    B, C, Cout = 2, 32, 32
    Hz = Wz = 8      # template (zf):  Nz = 64  (> top_k = 32)
    Hx = Wx = 16     # search  (xf):  Nx = 256

    zf = jax.random.normal(k_z, (B, C, Hz, Wz), jnp.float32)
    xf = jax.random.normal(k_x, (B, C, Hx, Wx), jnp.float32)
    params = _init_params(k_p, C, Cout)

    out = graph_attention_union(zf, xf, params, top_k=32)
    out = jax.block_until_ready(out)

    ref = jax.block_until_ready(_reference(zf, xf, params, top_k=32))
    assert out.shape == (B, Cout, Hx, Wx)
    assert jnp.allclose(out, ref, rtol=1e-4, atol=1e-4), \
        f"max abs err {jnp.max(jnp.abs(out - ref))}"

    print("KERNEL_OK")
</pallas_src>

<mosaic_0001>
module attributes {stable_mosaic.version = 11 : i64} {
  func.func @_gau_kernel(%arg0: i32, %arg1: memref<1x32x64xf32, #tpu.memory_space<vmem>>, %arg2: memref<1x32x256xf32, #tpu.memory_space<vmem>>, %arg3: memref<64x32xf32, #tpu.memory_space<vmem>>, %arg4: memref<64x32xf32, #tpu.memory_space<vmem>>, %arg5: memref<32x1xf32, #tpu.memory_space<vmem>>, %arg6: memref<32x32xf32, #tpu.memory_space<vmem>>, %arg7: memref<32x32xf32, #tpu.memory_space<vmem>>, %arg8: memref<32x1xf32, #tpu.memory_space<vmem>>, %arg9: memref<1x32x256xf32, #tpu.memory_space<vmem>>) attributes {dimension_semantics = [#tpu.dimension_semantics<parallel>], iteration_bounds = array<i64: 2>, scalar_prefetch = 0 : i64, scratch_operands = 0 : i64, tpu.core_type = #tpu.core_type<tc>, window_params = [{transform_indices = @transform_0, window_bounds = array<i64: 1, 32, 64>}, {transform_indices = @transform_1, window_bounds = array<i64: 1, 32, 256>}, {pipeline_mode = #tpu.pipeline_mode<synchronous>, transform_indices = @transform_2, window_bounds = array<i64: 64, 32>}, {pipeline_mode = #tpu.pipeline_mode<synchronous>, transform_indices = @transform_3, window_bounds = array<i64: 64, 32>}, {pipeline_mode = #tpu.pipeline_mode<synchronous>, transform_indices = @transform_4, window_bounds = array<i64: 32, 1>}, {pipeline_mode = #tpu.pipeline_mode<synchronous>, transform_indices = @transform_5, window_bounds = array<i64: 32, 32>}, {pipeline_mode = #tpu.pipeline_mode<synchronous>, transform_indices = @transform_6, window_bounds = array<i64: 32, 32>}, {pipeline_mode = #tpu.pipeline_mode<synchronous>, transform_indices = @transform_7, window_bounds = array<i64: 32, 1>}, {transform_indices = @transform_8, window_bounds = array<i64: 1, 32, 256>}]} {
    %c0 = arith.constant 0 : index
    %c0_0 = arith.constant 0 : index
    %c0_1 = arith.constant 0 : index
    %0 = vector.load %arg1[%c0, %c0_0, %c0_1] : memref<1x32x64xf32, #tpu.memory_space<vmem>>, vector<1x32x64xf32>
    %1 = vector.shape_cast %0 : vector<1x32x64xf32> to vector<32x64xf32>
    %c0_2 = arith.constant 0 : index
    %c0_3 = arith.constant 0 : index
    %c0_4 = arith.constant 0 : index
    %2 = vector.load %arg2[%c0_2, %c0_3, %c0_4] : memref<1x32x256xf32, #tpu.memory_space<vmem>>, vector<1x32x256xf32>
    %3 = vector.shape_cast %2 : vector<1x32x256xf32> to vector<32x256xf32>
    %c0_5 = arith.constant 0 : index
    %c0_6 = arith.constant 0 : index
    %4 = vector.load %arg3[%c0_5, %c0_6] : memref<64x32xf32, #tpu.memory_space<vmem>>, vector<64x32xf32>
    %c0_7 = arith.constant 0 : index
    %c0_8 = arith.constant 0 : index
    %5 = vector.load %arg4[%c0_7, %c0_8] : memref<64x32xf32, #tpu.memory_space<vmem>>, vector<64x32xf32>
    %c0_9 = arith.constant 0 : index
    %c0_10 = arith.constant 0 : index
    %6 = vector.load %arg5[%c0_9, %c0_10] : memref<32x1xf32, #tpu.memory_space<vmem>>, vector<32x1xf32>
    %c0_11 = arith.constant 0 : index
    %c0_12 = arith.constant 0 : index
    %7 = vector.load %arg6[%c0_11, %c0_12] : memref<32x32xf32, #tpu.memory_space<vmem>>, vector<32x32xf32>
    %c0_13 = arith.constant 0 : index
    %c0_14 = arith.constant 0 : index
    %8 = vector.load %arg7[%c0_13, %c0_14] : memref<32x32xf32, #tpu.memory_space<vmem>>, vector<32x32xf32>
    %c0_15 = arith.constant 0 : index
    %c0_16 = arith.constant 0 : index
    %9 = vector.load %arg8[%c0_15, %c0_16] : memref<32x1xf32, #tpu.memory_space<vmem>>, vector<32x1xf32>
    %cst = arith.constant dense<0.000000e+00> : vector<64x256xf32>
    %10 = tpu.matmul %4, %3, %cst {dimension_numbers = #tpu.dot_dimension_numbers<[1], [0], [0], [1], [0, 0, 1, 1], [], []>} : vector<64x32xf32>, vector<32x256xf32>, vector<64x256xf32> -> vector<64x256xf32>
    %cst_17 = arith.constant dense<0.000000e+00> : vector<64x64xf32>
    %11 = tpu.matmul %5, %1, %cst_17 {dimension_numbers = #tpu.dot_dimension_numbers<[1], [0], [0], [1], [0, 0, 1, 1], [], []>} : vector<64x32xf32>, vector<32x64xf32>, vector<64x64xf32> -> vector<64x64xf32>
    %12 = vector.extract_strided_slice %10 {offsets = [0, 0], sizes = [32, 256], strides = [1, 1]} : vector<64x256xf32> to vector<32x256xf32>
    %13 = vector.extract_strided_slice %10 {offsets = [32, 0], sizes = [32, 256], strides = [1, 1]} : vector<64x256xf32> to vector<32x256xf32>
    %14 = vector.broadcast %6 : vector<32x1xf32> to vector<32x256xf32>
    %15 = arith.addf %13, %14 : vector<32x256xf32>
    %cst_18 = arith.constant 0.000000e+00 : f32
    %16 = vector.broadcast %cst_18 : f32 to vector<32x256xf32>
    %17 = arith.maximumf %15, %16 : vector<32x256xf32>
    %18 = vector.extract_strided_slice %11 {offsets = [0, 0], sizes = [32, 64], strides = [1, 1]} : vector<64x64xf32> to vector<32x64xf32>
    %19 = vector.extract_strided_slice %11 {offsets = [32, 0], sizes = [32, 64], strides = [1, 1]} : vector<64x64xf32> to vector<32x64xf32>
    %20 = vector.broadcast %6 : vector<32x1xf32> to vector<32x64xf32>
    %21 = arith.addf %19, %20 : vector<32x64xf32>
    %cst_19 = arith.constant 0.000000e+00 : f32
    %22 = vector.broadcast %cst_19 : f32 to vector<32x64xf32>
    %23 = arith.maximumf %21, %22 : vector<32x64xf32>
    %24 = tpu.transpose %18, [1, 0] : vector<32x64xf32> -> vector<64x32xf32>
    %cst_20 = arith.constant dense<0.000000e+00> : vector<64x256xf32>
    %25 = tpu.matmul %24, %12, %cst_20 {dimension_numbers = #tpu.dot_dimension_numbers<[1], [0], [0], [1], [0, 0, 1, 1], [], []>} : vector<64x32xf32>, vector<32x256xf32>, vector<64x256xf32> -> vector<64x256xf32>
    %cst_21 = arith.constant dense<0xFF800000> : vector<256xf32>
    %26 = vector.multi_reduction <maximumf>, %25, %cst_21 [0] : vector<64x256xf32> to vector<256xf32>
    %27 = vector.shape_cast %26 : vector<256xf32> to vector<1x256xf32>
    %cst_22 = arith.constant 0xFF800000 : f32
    %c0_i32 = arith.constant 0 : i32
    %28 = vector.broadcast %27 : vector<1x256xf32> to vector<64x256xf32>
    %29 = arith.cmpf olt, %25, %28 : vector<64x256xf32>
    %30 = vector.broadcast %cst_22 : f32 to vector<64x256xf32>
    %31 = arith.select %29, %25, %30 : vector<64x256xi1>, vector<64x256xf32>
    %cst_23 = arith.constant dense<0xFF800000> : vector<256xf32>
    %32 = vector.multi_reduction <maximumf>, %31, %cst_23 [0] : vector<64x256xf32> to vector<256xf32>
    %33 = vector.shape_cast %32 : vector<256xf32> to vector<1x256xf32>
    %c1_i32 = arith.constant 1 : i32
    %34 = vector.broadcast %33 : vector<1x256xf32> to vector<64x256xf32>
    %35 = arith.cmpf olt, %25, %34 : vector<64x256xf32>
    %36 = vector.broadcast %cst_22 : f32 to vector<64x256xf32>
    %37 = arith.select %35, %25, %36 : vector<64x256xi1>, vector<64x256xf32>
    %cst_24 = arith.constant dense<0xFF800000> : vector<256xf32>
    %38 = vector.multi_reduction <maximumf>, %37, %cst_24 [0] : vector<64x256xf32> to vector<256xf32>
    %39 = vector.shape_cast %38 : vector<256xf32> to vector<1x256xf32>
    %c2_i32 = arith.constant 2 : i32
    %40 = vector.broadcast %39 : vector<1x256xf32> to vector<64x256xf32>
    %41 = arith.cmpf olt, %25, %40 : vector<64x256xf32>
    %42 = vector.broadcast %cst_22 : f32 to vector<64x256xf32>
    %43 = arith.select %41, %25, %42 : vector<64x256xi1>, vector<64x256xf32>
    %cst_25 = arith.constant dense<0xFF800000> : vector<256xf32>
    %44 = vector.multi_reduction <maximumf>, %43, %cst_25 [0] : vector<64x256xf32> to vector<256xf32>
    %45 = vector.shape_cast %44 : vector<256xf32> to vector<1x256xf32>
    %c3_i32 = arith.constant 3 : i32
    %46 = vector.broadcast %45 : vector<1x256xf32> to vector<64x256xf32>
    %47 = arith.cmpf olt, %25, %46 : vector<64x256xf32>
    %48 = vector.broadcast %cst_22 : f32 to vector<64x256xf32>
    %49 = arith.select %47, %25, %48 : vector<64x256xi1>, vector<64x256xf32>
    %cst_26 = arith.constant dense<0xFF800000> : vector<256xf32>
    %50 = vector.multi_reduction <maximumf>, %49, %cst_26 [0] : vector<64x256xf32> to vector<256xf32>
    %51 = vector.shape_cast %50 : vector<256xf32> to vector<1x256xf32>
    %c4_i32 = arith.constant 4 : i32
    %52 = vector.broadcast %51 : vector<1x256xf32> to vector<64x256xf32>
    %53 = arith.cmpf olt, %25, %52 : vector<64x256xf32>
    %54 = vector.broadcast %cst_22 : f32 to vector<64x256xf32>
    %55 = arith.select %53, %25, %54 : vector<64x256xi1>, vector<64x256xf32>
    %cst_27 = arith.constant dense<0xFF800000> : vector<256xf32>
    %56 = vector.multi_reduction <maximumf>, %55, %cst_27 [0] : vector<64x256xf32> to vector<256xf32>
    %57 = vector.shape_cast %56 : vector<256xf32> to vector<1x256xf32>
    %c5_i32 = arith.constant 5 : i32
    %58 = vector.broadcast %57 : vector<1x256xf32> to vector<64x256xf32>
    %59 = arith.cmpf olt, %25, %58 : vector<64x256xf32>
    %60 = vector.broadcast %cst_22 : f32 to vector<64x256xf32>
    %61 = arith.select %59, %25, %60 : vector<64x256xi1>, vector<64x256xf32>
    %cst_28 = arith.constant dense<0xFF800000> : vector<256xf32>
    %62 = vector.multi_reduction <maximumf>, %61, %cst_28 [0] : vector<64x256xf32> to vector<256xf32>
    %63 = vector.shape_cast %62 : vector<256xf32> to vector<1x256xf32>
    %c6_i32 = arith.constant 6 : i32
    %64 = vector.broadcast %63 : vector<1x256xf32> to vector<64x256xf32>
    %65 = arith.cmpf olt, %25, %64 : vector<64x256xf32>
    %66 = vector.broadcast %cst_22 : f32 to vector<64x256xf32>
    %67 = arith.select %65, %25, %66 : vector<64x256xi1>, vector<64x256xf32>
    %cst_29 = arith.constant dense<0xFF800000> : vector<256xf32>
    %68 = vector.multi_reduction <maximumf>, %67, %cst_29 [0] : vector<64x256xf32> to vector<256xf32>
    %69 = vector.shape_cast %68 : vector<256xf32> to vector<1x256xf32>
    %c7_i32 = arith.constant 7 : i32
    %70 = vector.broadcast %69 : vector<1x256xf32> to vector<64x256xf32>
    %71 = arith.cmpf olt, %25, %70 : vector<64x256xf32>
    %72 = vector.broadcast %cst_22 : f32 to vector<64x256xf32>
    %73 = arith.select %71, %25, %72 : vector<64x256xi1>, vector<64x256xf32>
    %cst_30 = arith.constant dense<0xFF800000> : vector<256xf32>
    %74 = vector.multi_reduction <maximumf>, %73, %cst_30 [0] : vector<64x256xf32> to vector<256xf32>
    %75 = vector.shape_cast %74 : vector<256xf32> to vector<1x256xf32>
    %c8_i32 = arith.constant 8 : i32
    %76 = vector.broadcast %75 : vector<1x256xf32> to vector<64x256xf32>
    %77 = arith.cmpf olt, %25, %76 : vector<64x256xf32>
    %78 = vector.broadcast %cst_22 : f32 to vector<64x256xf32>
    %79 = arith.select %77, %25, %78 : vector<64x256xi1>, vector<64x256xf32>
    %cst_31 = arith.constant dense<0xFF800000> : vector<256xf32>
    %80 = vector.multi_reduction <maximumf>, %79, %cst_31 [0] : vector<64x256xf32> to vector<256xf32>
    %81 = vector.shape_cast %80 : vector<256xf32> to vector<1x256xf32>
    %c9_i32 = arith.constant 9 : i32
    %82 = vector.broadcast %81 : vector<1x256xf32> to vector<64x256xf32>
    %83 = arith.cmpf olt, %25, %82 : vector<64x256xf32>
    %84 = vector.broadcast %cst_22 : f32 to vector<64x256xf32>
    %85 = arith.select %83, %25, %84 : vector<64x256xi1>, vector<64x256xf32>
    %cst_32 = arith.constant dense<0xFF800000> : vector<256xf32>
    %86 = vector.multi_reduction <maximumf>, %85, %cst_32 [0] : vector<64x256xf32> to vector<256xf32>
    %87 = vector.shape_cast %86 : vector<256xf32> to vector<1x256xf32>
    %c10_i32 = arith.constant 10 : i32
    %88 = vector.broadcast %87 : vector<1x256xf32> to vector<64x256xf32>
    %89 = arith.cmpf olt, %25, %88 : vector<64x256xf32>
    %90 = vector.broadcast %cst_22 : f32 to vector<64x256xf32>
    %91 = arith.select %89, %25, %90 : vector<64x256xi1>, vector<64x256xf32>
    %cst_33 = arith.constant dense<0xFF800000> : vector<256xf32>
    %92 = vector.multi_reduction <maximumf>, %91, %cst_33 [0] : vector<64x256xf32> to vector<256xf32>
    %93 = vector.shape_cast %92 : vector<256xf32> to vector<1x256xf32>
    %c11_i32 = arith.constant 11 : i32
    %94 = vector.broadcast %93 : vector<1x256xf32> to vector<64x256xf32>
    %95 = arith.cmpf olt, %25, %94 : vector<64x256xf32>
    %96 = vector.broadcast %cst_22 : f32 to vector<64x256xf32>
    %97 = arith.select %95, %25, %96 : vector<64x256xi1>, vector<64x256xf32>
    %cst_34 = arith.constant dense<0xFF800000> : vector<256xf32>
    %98 = vector.multi_reduction <maximumf>, %97, %cst_34 [0] : vector<64x256xf32> to vector<256xf32>
    %99 = vector.shape_cast %98 : vector<256xf32> to vector<1x256xf32>
    %c12_i32 = arith.constant 12 : i32
    %100 = vector.broadcast %99 : vector<1x256xf32> to vector<64x256xf32>
    %101 = arith.cmpf olt, %25, %100 : vector<64x256xf32>
    %102 = vector.broadcast %cst_22 : f32 to vector<64x256xf32>
    %103 = arith.select %101, %25, %102 : vector<64x256xi1>, vector<64x256xf32>
    %cst_35 = arith.constant dense<0xFF800000> : vector<256xf32>
    %104 = vector.multi_reduction <maximumf>, %103, %cst_35 [0] : vector<64x256xf32> to vector<256xf32>
    %105 = vector.shape_cast %104 : vector<256xf32> to vector<1x256xf32>
    %c13_i32 = arith.constant 13 : i32
    %106 = vector.broadcast %105 : vector<1x256xf32> to vector<64x256xf32>
    %107 = arith.cmpf olt, %25, %106 : vector<64x256xf32>
    %108 = vector.broadcast %cst_22 : f32 to vector<64x256xf32>
    %109 = arith.select %107, %25, %108 : vector<64x256xi1>, vector<64x256xf32>
    %cst_36 = arith.constant dense<0xFF800000> : vector<256xf32>
    %110 = vector.multi_reduction <maximumf>, %109, %cst_36 [0] : vector<64x256xf32> to vector<256xf32>
    %111 = vector.shape_cast %110 : vector<256xf32> to vector<1x256xf32>
    %c14_i32 = arith.constant 14 : i32
    %112 = vector.broadcast %111 : vector<1x256xf32> to vector<64x256xf32>
    %113 = arith.cmpf olt, %25, %112 : vector<64x256xf32>
    %114 = vector.broadcast %cst_22 : f32 to vector<64x256xf32>
    %115 = arith.select %113, %25, %114 : vector<64x256xi1>, vector<64x256xf32>
    %cst_37 = arith.constant dense<0xFF800000> : vector<256xf32>
    %116 = vector.multi_reduction <maximumf>, %115, %cst_37 [0] : vector<64x256xf32> to vector<256xf32>
    %117 = vector.shape_cast %116 : vector<256xf32> to vector<1x256xf32>
    %c15_i32 = arith.constant 15 : i32
    %118 = vector.broadcast %117 : vector<1x256xf32> to vector<64x256xf32>
    %119 = arith.cmpf olt, %25, %118 : vector<64x256xf32>
    %120 = vector.broadcast %cst_22 : f32 to vector<64x256xf32>
    %121 = arith.select %119, %25, %120 : vector<64x256xi1>, vector<64x256xf32>
    %cst_38 = arith.constant dense<0xFF800000> : vector<256xf32>
    %122 = vector.multi_reduction <maximumf>, %121, %cst_38 [0] : vector<64x256xf32> to vector<256xf32>
    %123 = vector.shape_cast %122 : vector<256xf32> to vector<1x256xf32>
    %c16_i32 = arith.constant 16 : i32
    %124 = vector.broadcast %123 : vector<1x256xf32> to vector<64x256xf32>
    %125 = arith.cmpf olt, %25, %124 : vector<64x256xf32>
    %126 = vector.broadcast %cst_22 : f32 to vector<64x256xf32>
    %127 = arith.select %125, %25, %126 : vector<64x256xi1>, vector<64x256xf32>
    %cst_39 = arith.constant dense<0xFF800000> : vector<256xf32>
    %128 = vector.multi_reduction <maximumf>, %127, %cst_39 [0] : vector<64x256xf32> to vector<256xf32>
    %129 = vector.shape_cast %128 : vector<256xf32> to vector<1x256xf32>
    %c17_i32 = arith.constant 17 : i32
    %130 = vector.broadcast %129 : vector<1x256xf32> to vector<64x256xf32>
    %131 = arith.cmpf olt, %25, %130 : vector<64x256xf32>
    %132 = vector.broadcast %cst_22 : f32 to vector<64x256xf32>
    %133 = arith.select %131, %25, %132 : vector<64x256xi1>, vector<64x256xf32>
    %cst_40 = arith.constant dense<0xFF800000> : vector<256xf32>
    %134 = vector.multi_reduction <maximumf>, %133, %cst_40 [0] : vector<64x256xf32> to vector<256xf32>
    %135 = vector.shape_cast %134 : vector<256xf32> to vector<1x256xf32>
    %c18_i32 = arith.constant 18 : i32
    %136 = vector.broadcast %135 : vector<1x256xf32> to vector<64x256xf32>
    %137 = arith.cmpf olt, %25, %136 : vector<64x256xf32>
    %138 = vector.broadcast %cst_22 : f32 to vector<64x256xf32>
    %139 = arith.select %137, %25, %138 : vector<64x256xi1>, vector<64x256xf32>
    %cst_41 = arith.constant dense<0xFF800000> : vector<256xf32>
    %140 = vector.multi_reduction <maximumf>, %139, %cst_41 [0] : vector<64x256xf32> to vector<256xf32>
    %141 = vector.shape_cast %140 : vector<256xf32> to vector<1x256xf32>
    %c19_i32 = arith.constant 19 : i32
    %142 = vector.broadcast %141 : vector<1x256xf32> to vector<64x256xf32>
    %143 = arith.cmpf olt, %25, %142 : vector<64x256xf32>
    %144 = vector.broadcast %cst_22 : f32 to vector<64x256xf32>
    %145 = arith.select %143, %25, %144 : vector<64x256xi1>, vector<64x256xf32>
    %cst_42 = arith.constant dense<0xFF800000> : vector<256xf32>
    %146 = vector.multi_reduction <maximumf>, %145, %cst_42 [0] : vector<64x256xf32> to vector<256xf32>
    %147 = vector.shape_cast %146 : vector<256xf32> to vector<1x256xf32>
    %c20_i32 = arith.constant 20 : i32
    %148 = vector.broadcast %147 : vector<1x256xf32> to vector<64x256xf32>
    %149 = arith.cmpf olt, %25, %148 : vector<64x256xf32>
    %150 = vector.broadcast %cst_22 : f32 to vector<64x256xf32>
    %151 = arith.select %149, %25, %150 : vector<64x256xi1>, vector<64x256xf32>
    %cst_43 = arith.constant dense<0xFF800000> : vector<256xf32>
    %152 = vector.multi_reduction <maximumf>, %151, %cst_43 [0] : vector<64x256xf32> to vector<256xf32>
    %153 = vector.shape_cast %152 : vector<256xf32> to vector<1x256xf32>
    %c21_i32 = arith.constant 21 : i32
    %154 = vector.broadcast %153 : vector<1x256xf32> to vector<64x256xf32>
    %155 = arith.cmpf olt, %25, %154 : vector<64x256xf32>
    %156 = vector.broadcast %cst_22 : f32 to vector<64x256xf32>
    %157 = arith.select %155, %25, %156 : vector<64x256xi1>, vector<64x256xf32>
    %cst_44 = arith.constant dense<0xFF800000> : vector<256xf32>
    %158 = vector.multi_reduction <maximumf>, %157, %cst_44 [0] : vector<64x256xf32> to vector<256xf32>
    %159 = vector.shape_cast %158 : vector<256xf32> to vector<1x256xf32>
    %c22_i32 = arith.constant 22 : i32
    %160 = vector.broadcast %159 : vector<1x256xf32> to vector<64x256xf32>
    %161 = arith.cmpf olt, %25, %160 : vector<64x256xf32>
    %162 = vector.broadcast %cst_22 : f32 to vector<64x256xf32>
    %163 = arith.select %161, %25, %162 : vector<64x256xi1>, vector<64x256xf32>
    %cst_45 = arith.constant dense<0xFF800000> : vector<256xf32>
    %164 = vector.multi_reduction <maximumf>, %163, %cst_45 [0] : vector<64x256xf32> to vector<256xf32>
    %165 = vector.shape_cast %164 : vector<256xf32> to vector<1x256xf32>
    %c23_i32 = arith.constant 23 : i32
    %166 = vector.broadcast %165 : vector<1x256xf32> to vector<64x256xf32>
    %167 = arith.cmpf olt, %25, %166 : vector<64x256xf32>
    %168 = vector.broadcast %cst_22 : f32 to vector<64x256xf32>
    %169 = arith.select %167, %25, %168 : vector<64x256xi1>, vector<64x256xf32>
    %cst_46 = arith.constant dense<0xFF800000> : vector<256xf32>
    %170 = vector.multi_reduction <maximumf>, %169, %cst_46 [0] : vector<64x256xf32> to vector<256xf32>
    %171 = vector.shape_cast %170 : vector<256xf32> to vector<1x256xf32>
    %c24_i32 = arith.constant 24 : i32
    %172 = vector.broadcast %171 : vector<1x256xf32> to vector<64x256xf32>
    %173 = arith.cmpf olt, %25, %172 : vector<64x256xf32>
    %174 = vector.broadcast %cst_22 : f32 to vector<64x256xf32>
    %175 = arith.select %173, %25, %174 : vector<64x256xi1>, vector<64x256xf32>
    %cst_47 = arith.constant dense<0xFF800000> : vector<256xf32>
    %176 = vector.multi_reduction <maximumf>, %175, %cst_47 [0] : vector<64x256xf32> to vector<256xf32>
    %177 = vector.shape_cast %176 : vector<256xf32> to vector<1x256xf32>
    %c25_i32 = arith.constant 25 : i32
    %178 = vector.broadcast %177 : vector<1x256xf32> to vector<64x256xf32>
    %179 = arith.cmpf olt, %25, %178 : vector<64x256xf32>
    %180 = vector.broadcast %cst_22 : f32 to vector<64x256xf32>
    %181 = arith.select %179, %25, %180 : vector<64x256xi1>, vector<64x256xf32>
    %cst_48 = arith.constant dense<0xFF800000> : vector<256xf32>
    %182 = vector.multi_reduction <maximumf>, %181, %cst_48 [0] : vector<64x256xf32> to vector<256xf32>
    %183 = vector.shape_cast %182 : vector<256xf32> to vector<1x256xf32>
    %c26_i32 = arith.constant 26 : i32
    %184 = vector.broadcast %183 : vector<1x256xf32> to vector<64x256xf32>
    %185 = arith.cmpf olt, %25, %184 : vector<64x256xf32>
    %186 = vector.broadcast %cst_22 : f32 to vector<64x256xf32>
    %187 = arith.select %185, %25, %186 : vector<64x256xi1>, vector<64x256xf32>
    %cst_49 = arith.constant dense<0xFF800000> : vector<256xf32>
    %188 = vector.multi_reduction <maximumf>, %187, %cst_49 [0] : vector<64x256xf32> to vector<256xf32>
    %189 = vector.shape_cast %188 : vector<256xf32> to vector<1x256xf32>
    %c27_i32 = arith.constant 27 : i32
    %190 = vector.broadcast %189 : vector<1x256xf32> to vector<64x256xf32>
    %191 = arith.cmpf olt, %25, %190 : vector<64x256xf32>
    %192 = vector.broadcast %cst_22 : f32 to vector<64x256xf32>
    %193 = arith.select %191, %25, %192 : vector<64x256xi1>, vector<64x256xf32>
    %cst_50 = arith.constant dense<0xFF800000> : vector<256xf32>
    %194 = vector.multi_reduction <maximumf>, %193, %cst_50 [0] : vector<64x256xf32> to vector<256xf32>
    %195 = vector.shape_cast %194 : vector<256xf32> to vector<1x256xf32>
    %c28_i32 = arith.constant 28 : i32
    %196 = vector.broadcast %195 : vector<1x256xf32> to vector<64x256xf32>
    %197 = arith.cmpf olt, %25, %196 : vector<64x256xf32>
    %198 = vector.broadcast %cst_22 : f32 to vector<64x256xf32>
    %199 = arith.select %197, %25, %198 : vector<64x256xi1>, vector<64x256xf32>
    %cst_51 = arith.constant dense<0xFF800000> : vector<256xf32>
    %200 = vector.multi_reduction <maximumf>, %199, %cst_51 [0] : vector<64x256xf32> to vector<256xf32>
    %201 = vector.shape_cast %200 : vector<256xf32> to vector<1x256xf32>
    %c29_i32 = arith.constant 29 : i32
    %202 = vector.broadcast %201 : vector<1x256xf32> to vector<64x256xf32>
    %203 = arith.cmpf olt, %25, %202 : vector<64x256xf32>
    %204 = vector.broadcast %cst_22 : f32 to vector<64x256xf32>
    %205 = arith.select %203, %25, %204 : vector<64x256xi1>, vector<64x256xf32>
    %cst_52 = arith.constant dense<0xFF800000> : vector<256xf32>
    %206 = vector.multi_reduction <maximumf>, %205, %cst_52 [0] : vector<64x256xf32> to vector<256xf32>
    %207 = vector.shape_cast %206 : vector<256xf32> to vector<1x256xf32>
    %c30_i32 = arith.constant 30 : i32
    %208 = vector.broadcast %207 : vector<1x256xf32> to vector<64x256xf32>
    %209 = arith.cmpf olt, %25, %208 : vector<64x256xf32>
    %210 = vector.broadcast %cst_22 : f32 to vector<64x256xf32>
    %211 = arith.select %209, %25, %210 : vector<64x256xi1>, vector<64x256xf32>
    %cst_53 = arith.constant dense<0xFF800000> : vector<256xf32>
    %212 = vector.multi_reduction <maximumf>, %211, %cst_53 [0] : vector<64x256xf32> to vector<256xf32>
    %213 = vector.shape_cast %212 : vector<256xf32> to vector<1x256xf32>
    %214 = vector.broadcast %213 : vector<1x256xf32> to vector<64x256xf32>
    %215 = arith.cmpf oge, %25, %214 : vector<64x256xf32>
    %216 = vector.broadcast %27 : vector<1x256xf32> to vector<64x256xf32>
    %217 = arith.subf %25, %216 : vector<64x256xf32>
    %218 = math.exp %217 : vector<64x256xf32>
    %cst_54 = arith.constant dense<0.000000e+00> : vector<256xf32>
    %219 = vector.multi_reduction <add>, %218, %cst_54 [0] : vector<64x256xf32> to vector<256xf32>
    %220 = vector.shape_cast %219 : vector<256xf32> to vector<1x256xf32>
    %cst_55 = arith.constant 0.000000e+00 : f32
    %221 = vector.broadcast %cst_55 : f32 to vector<64x256xf32>
    %222 = arith.select %215, %218, %221 : vector<64x256xi1>, vector<64x256xf32>
    %cst_56 = arith.constant dense<0.000000e+00> : vector<32x256xf32>
    %223 = tpu.matmul %23, %222, %cst_56 {dimension_numbers = #tpu.dot_dimension_numbers<[1], [0], [0], [1], [0, 0, 1, 1], [], []>} : vector<32x64xf32>, vector<64x256xf32>, vector<32x256xf32> -> vector<32x256xf32>
    %cst_57 = arith.constant 1.000000e+00 : f32
    %224 = vector.broadcast %cst_57 : f32 to vector<1x256xf32>
    %225 = arith.divf %224, %220 : vector<1x256xf32>
    %226 = vector.broadcast %225 : vector<1x256xf32> to vector<32x256xf32>
    %227 = arith.mulf %223, %226 : vector<32x256xf32>
    %cst_58 = arith.constant dense<0.000000e+00> : vector<32x256xf32>
    %228 = tpu.matmul %7, %227, %cst_58 {dimension_numbers = #tpu.dot_dimension_numbers<[1], [0], [0], [1], [0, 0, 1, 1], [], []>} : vector<32x32xf32>, vector<32x256xf32>, vector<32x256xf32> -> vector<32x256xf32>
    %cst_59 = arith.constant dense<0.000000e+00> : vector<32x256xf32>
    %229 = tpu.matmul %8, %17, %cst_59 {dimension_numbers = #tpu.dot_dimension_numbers<[1], [0], [0], [1], [0, 0, 1, 1], [], []>} : vector<32x32xf32>, vector<32x256xf32>, vector<32x256xf32> -> vector<32x256xf32>
    %230 = arith.addf %228, %229 : vector<32x256xf32>
    %231 = vector.broadcast %9 : vector<32x1xf32> to vector<32x256xf32>
    %232 = arith.addf %230, %231 : vector<32x256xf32>
    %cst_60 = arith.constant 0.000000e+00 : f32
    %233 = vector.broadcast %cst_60 : f32 to vector<32x256xf32>
    %234 = arith.maximumf %232, %233 : vector<32x256xf32>
    %c0_61 = arith.constant 0 : index
    %c0_62 = arith.constant 0 : index
    %c0_63 = arith.constant 0 : index
    %235 = vector.load %arg9[%c0_61, %c0_62, %c0_63] : memref<1x32x256xf32, #tpu.memory_space<vmem>>, vector<1x32x256xf32>
    %236 = vector.shape_cast %235 : vector<1x32x256xf32> to vector<32x256xf32>
    %237 = vector.shape_cast %234 : vector<32x256xf32> to vector<1x32x256xf32>
    tpu.vector_store %arg9[%c0_61, %c0_62, %c0_63], %237 {strides = array<i32>} : memref<1x32x256xf32, #tpu.memory_space<vmem>>, vector<1x32x256xf32>,
    return
  }
  func.func @transform_0(%arg0: i32) -> (i32, i32, i32) {
    %c0_i32 = arith.constant 0 : i32
    %c0_i32_0 = arith.constant 0 : i32
    %c0_i32_1 = arith.constant 0 : i32
    return %arg0, %c0_i32, %c0_i32_0 : i32, i32, i32
  }
  func.func @transform_1(%arg0: i32) -> (i32, i32, i32) {
    %c0_i32 = arith.constant 0 : i32
    %c0_i32_0 = arith.constant 0 : i32
    %c0_i32_1 = arith.constant 0 : i32
    return %arg0, %c0_i32, %c0_i32_0 : i32, i32, i32
  }
  func.func @transform_2(%arg0: i32) -> (i32, i32) {
    %c0_i32 = arith.constant 0 : i32
    %c0_i32_0 = arith.constant 0 : i32
    %c0_i32_1 = arith.constant 0 : i32
    return %c0_i32, %c0_i32_0 : i32, i32
  }
  func.func @transform_3(%arg0: i32) -> (i32, i32) {
    %c0_i32 = arith.constant 0 : i32
    %c0_i32_0 = arith.constant 0 : i32
    %c0_i32_1 = arith.constant 0 : i32
    return %c0_i32, %c0_i32_0 : i32, i32
  }
  func.func @transform_4(%arg0: i32) -> (i32, i32) {
    %c0_i32 = arith.constant 0 : i32
    %c0_i32_0 = arith.constant 0 : i32
    %c0_i32_1 = arith.constant 0 : i32
    return %c0_i32, %c0_i32_0 : i32, i32
  }
  func.func @transform_5(%arg0: i32) -> (i32, i32) {
    %c0_i32 = arith.constant 0 : i32
    %c0_i32_0 = arith.constant 0 : i32
    %c0_i32_1 = arith.constant 0 : i32
    return %c0_i32, %c0_i32_0 : i32, i32
  }
  func.func @transform_6(%arg0: i32) -> (i32, i32) {
    %c0_i32 = arith.constant 0 : i32
    %c0_i32_0 = arith.constant 0 : i32
    %c0_i32_1 = arith.constant 0 : i32
    return %c0_i32, %c0_i32_0 : i32, i32
  }
  func.func @transform_7(%arg0: i32) -> (i32, i32) {
    %c0_i32 = arith.constant 0 : i32
    %c0_i32_0 = arith.constant 0 : i32
    %c0_i32_1 = arith.constant 0 : i32
    return %c0_i32, %c0_i32_0 : i32, i32
  }
  func.func @transform_8(%arg0: i32) -> (i32, i32, i32) {
    %c0_i32 = arith.constant 0 : i32
    %c0_i32_0 = arith.constant 0 : i32
    %c0_i32_1 = arith.constant 0 : i32
    return %arg0, %c0_i32, %c0_i32_0 : i32, i32, i32
  }
}

</mosaic_0001>

<bundles_post_ra>
// kernel: tpu_custom_call.1
= control target key start
LH: loop header
LB: loop body
LE: loop exit
PB: predicated region body
PF: predicated region fallthrough
CT: control target
= control target key end

     0   :  { %13 = vsyncpa [#allocation3], 0  ;;  %s5430_s0 = inlined_call_operand.vmem [shape: f32[2,32,64], index: 0, kind: input, shape index: {}]   ;;  %s5431_s1 = inlined_call_operand.vmem [shape: f32[2,32,256], index: 1, kind: input, shape index: {}]   ;;  %s5432_s2 = inlined_call_operand.vmem [shape: f32[64,32], index: 2, kind: input, shape index: {}]   ;;  %s5433_s3 = inlined_call_operand.vmem [shape: f32[64,32], index: 3, kind: input, shape index: {}]   ;;  %s5434_s4 = inlined_call_operand.vmem [shape: f32[32,1], index: 4, kind: input, shape index: {}]   ;;  %s5435_s5 = inlined_call_operand.hbm [shape: f32[32,32], index: 5, kind: input, shape index: {}]   ;;  %s5436_s6 = inlined_call_operand.hbm [shape: f32[32,32], index: 6, kind: input, shape index: {}]   ;;  %s5437_s7 = inlined_call_operand.vmem [shape: f32[32,1], index: 7, kind: input, shape index: {}]   ;;  %s5438_s8 = inlined_call_operand.hbm [shape: f32[2,32,256], index: 8, kind: output, shape index: {}]  }
   0x1   :  { %14 = vsyncpa [#allocation6], 0 }
   0x2   :  { %15 = vsyncpa [#allocation4], 0 }
   0x3   :  { %17 = vsyncpa [#allocation4 + $0x1], 0  ;;  %s3745_s27 = smov 0   ;;  %s3747_s28 = smov 0  }
   0x4   :  { %s3749_s29 = smov 0   ;;  %s3751_s30 = smov 0  }
   0x5 LB: > { %5455 = sst [smem:[#allocation11_spill]] %s3685_s29  ;;  %s3766_s9 = sadd.s32 4294967295, %s3689_s30   ;;  %s3689_s30 = sphi %s3751_s30, %s5527_s30   ;;  %s3685_s29 = sphi %s3749_s29, %s5524_s29   ;;  %s3681_s28 = sphi %s3747_s28, %s5526_s28   ;;  %s3677_s27 = sphi %s3745_s27, %s5525_s27  }
   0x6   : > { %s3278_s10 = sadd.s32 4294967294, %s3689_s30   ;;  %s3770_s11 = sadd.s32 1, %s3689_s30  }
   0x7   : > { %s208_s12 = sadd.s32 1, %s3685_s29  ;;  %s205_s13 = ssub.s32 %s3689_s30, %s3770_s11 }
   0x8   : > { %p218_p0 = scmp.ne.s32.totalorder %s3685_s29, %s3681_s28  ;;  %p206_p1 = scmp.eq.s32.totalorder %s205_s13, 0 }
   0x9   : > { %p219_p2 = scmp.eq.s32.totalorder %s3766_s9, 1  ;;  %p224_p3 = scmp.ne.s32.totalorder %s3681_s28, %s3677_s27 }
   0xa   : > { %p225_p4 = scmp.eq.s32.totalorder %s3278_s10, 1  ;;  %p3279_p7 = scmp.ge.s32.totalorder %s3689_s30, 1 }
   0xb   : > { %s3781_s14 = scalar_select %p206_p1, %s3685_s29, %s208_s12  }
   0xc   : > { %p3783_p5 = por %p219_p2, %p218_p0  ;;  %p3787_p6 = por %p225_p4, %p224_p3 }
   0xd   : > { %5456 = sst [smem:[#allocation12_spill]] %s3781_s14  ;;  %p232_p8 = scmp.lt.s32.totalorder %s3689_s30, 3 }
   0xe   : > { %s5457_s15 = scalar_select %p3783_p5, 1, 0 }
   0xf   : > { %s5458_s16 = scalar_select %p3787_p6, 1, 0 }
  0x10   : > { %p5439_p9 = scmp.eq.s32.totalorder %s3766_s9, 0  ;;  %p3794_p10 = pnand %p3279_p7, %p232_p8 }
  0x11   : > { %s3691_s18 = smov [#allocation2]   ;;  %s3692_s21 = smov [#allocation5]  }
  0x12   : > { %s5459_s17 = scalar_select %p3794_p10, 1, 0 }
  0x13   : > { %s253_s19 = sshll.u32 %s3691_s18, 4  ;;  %p3469_p11 = pneg %p3794_p10  ;;  %s254_s19 = int_to_ptr.vmem [resolvable:$true] %s253_s19 }
  0x14   : > { %s266_s22 = sshll.u32 %s3692_s21, 4  ;;  %s3563_s25 = scalar_lea.hbm %s5435_s5, 512  ;;  %s3806_s22 = int_to_ptr.vmem [resolvable:$true] %s266_s22 }
  0x15   : > { %p3802_p12 = pnand %p5439_p9, %p3469_p11  ;;  %p3564_p13 = scmp.ne.s32.totalorder %s5435_s5, %s3563_s25 }
  0x16   : > { %p3570_p3 = scmp.lt.u32.totalorder %s3563_s25, %s5435_s5 }
  0x17   : > { %p3565_p0 = pneg %p3802_p12 }
  0x19   : > { %p3566_p1 = pnand %p3565_p0, %p3564_p13 }
  0x1b   : > { %p3567_p2 = pneg %p3566_p1 }
  0x1d   : > { %p3572_p4 = pnand %p3570_p3, %p3567_p2 }
  0x1f   : > { %3575 = shalt.err (!%p3572_p4)
}
  0x20   : > { %s3576_s18 = scalar_lea.vmem %s254_s19, 512  ;;  %p3584_p9 = scmp.lt.s32.totalorder %s254_s19, %s254_s19 }
  0x21   : > { %p3577_p7 = scmp.ne.s32.totalorder %s254_s19, %s3576_s18  ;;  %p3585_p6 = scmp.lt.s32.totalorder %s3576_s18, %s3576_s18 }
  0x23   : > { %p3579_p8 = pnand %p3577_p7, %p3565_p0  ;;  %p3586_p5 = por %p3585_p6, %p3584_p9 }
  0x25   : > { %p3580_p11 = pneg %p3579_p8 }
  0x27   : > { %p3587_p10 = pnand %p3586_p5, %p3580_p11 }
  0x29   : > { %3590 = shalt.err (!%p3587_p10)
}
  0x2a   : > { %s3693_s21 = smov 128   ;;  %s3694_s23 = smov 8  }
  0x2b   : > { %3472 = dma.hbm_to_vmem [thread:$0]  (!%p3802_p12), %s5435_s5, 512, %s254_s19, [#allocation3], %s3693_s21, %s3693_s21, %s3694_s23  }
  0x2c   : > { %s3591_s12 = scalar_lea.hbm %s5436_s6, 512 }
  0x2d   : > { %p3592_p13 = scmp.ne.s32.totalorder %s5436_s6, %s3591_s12  ;;  %p3598_p9 = scmp.lt.u32.totalorder %s3591_s12, %s5436_s6 }
  0x2f   : > { %p3594_p5 = pnand %p3592_p13, %p3565_p0 }
  0x31   : > { %p3595_p6 = pneg %p3594_p5 }
  0x33   : > { %p3600_p10 = pnand %p3598_p9, %p3595_p6 }
  0x35   : > { %3603 = shalt.err (!%p3600_p10)
}
  0x36   : > { %s3604_s19 = scalar_lea.vmem %s3806_s22, 512  ;;  %p3612_p4 = scmp.lt.s32.totalorder %s3806_s22, %s3806_s22 }
  0x37   : > { %p3605_p1 = scmp.ne.s32.totalorder %s3806_s22, %s3604_s19  ;;  %p3613_p7 = scmp.lt.s32.totalorder %s3604_s19, %s3604_s19 }
  0x39   : > { %p3607_p2 = pnand %p3605_p1, %p3565_p0  ;;  %p3614_p8 = por %p3613_p7, %p3612_p4 }
  0x3b   : > { %p3608_p3 = pneg %p3607_p2 }
  0x3d   : > { %p3615_p11 = pnand %p3614_p8, %p3608_p3 }
  0x3f   : > { %3618 = shalt.err (!%p3615_p11)
}
  0x40   : > { %3475 = dma.hbm_to_vmem [thread:$0]  (!%p3802_p12), %s5436_s6, 512, %s3806_s22, [#allocation6], %s3693_s21, %s3693_s21, %s3694_s23  }
  0x41   : > { %p5461_p13 = scmp.ne.s32.totalorder %s5459_s17, 0 }
  0x43   : > { %301 = sbr.rel (%p5461_p13) target bundleno = 2077 (0x81d), region = 52 }
  0x4a   : > { %p5462_p5 = scmp.eq.s32.totalorder %s3766_s9, 0 }
  0x4c   : > { %3664 = dma.done.wait (%p5462_p5), [#allocation3], 512   ;;  %p5463_p0 = pmov %p5462_p5 }
  0x4e   : > { %3666 = vsyncadd (%p5463_p0), [#allocation3], 4294966784  ;;  %p5464_p6 = pmov %p5463_p0 }
  0x4f   : > { %p5465_p9 = pmov %p5463_p0 }
  0x50   : > { %3668 = dma.done.wait (%p5464_p6), [#allocation6], 512  }
  0x51   : > { %3670 = vsyncadd (%p5465_p9), [#allocation6], 4294966784  ;;  %p344_p10 = scmp.lt.s32.totalorder %s3766_s9, 1  ;;  %v5443_v0 = vmov 0.0   ;;  %v3696_v1 = vmov 0   ;;  %v382_v19 = vld [vmem:[%s5434_s4] sm:$0xff] }
  0x52   : > { %511 = vmatprep.mubr.f32.mxu1 %v5443_v0  ;;  %3525 = vset.pattern.permute.xlu1 %v3696_v1  ;;  %v370_v20 = vld [vmem:[%s5432_s2 + $0x20] sm:$0xff]  ;;  %vm5447_vm0 = vcmask 261120   ;;  %v383_v21 = vld [vmem:[%s5434_s4 + $0x8] sm:$0xff]  ;;  %v384_v25 = vld [vmem:[%s5434_s4 + $0x10] sm:$0xff]  ;;  %s341_s19 = sand.u32 1, %s3681_s28   ;;  %p5521_p1 = scmp.ne.s32.totalorder %s5457_s15, 0 }
  0x53   : > { %s345_s17 = scalar_select %p344_p10, %s3766_s9, 1  ;;  %487 = vmatprep.mubr.f32.mxu0 %v5443_v0  ;;  %667 = vperm.xlu1 %3525, %v382_v19   ;;  %v366_v23 = vld [vmem:[%s5432_s2] sm:$0xff]  ;;  %v371_v24 = vld [vmem:[%s5432_s2 + $0x28] sm:$0xff]  ;;  %v372_v27 = vld [vmem:[%s5432_s2 + $0x30] sm:$0xff] }
  0x54   : > { %v367_v26 = vld [vmem:[%s5432_s2 + $0x8] sm:$0xff]  ;;  %v385_v28 = vld [vmem:[%s5434_s4 + $0x18] sm:$0xff]  ;;  %v368_v29 = vld [vmem:[%s5432_s2 + $0x10] sm:$0xff]  ;;  %s3286_s29 = sshll.u32 %s341_s19, 6  ;;  %s3697_s25 = smov [#allocation7]  }
  0x55   : > { %s3349_s20 = sshll.u32 %s345_s17, 6  ;;  %s3348_s22 = sshll.u32 %s345_s17, 5  ;;  %v373_v30 = vld [vmem:[%s5432_s2 + $0x38] sm:$0xff]  ;;  %v374_v31 = vld [vmem:[%s5433_s3] sm:$0xff]  ;;  %v375_v33 = vld [vmem:[%s5433_s3 + $0x8] sm:$0xff] }
  0x56   : > { %s353_s24 = scalar_lea.vmem %s5431_s1, %s3349_s20  ;;  %s348_s10 = scalar_lea.vmem %s5430_s0, %s3348_s22  ;;  %v369_v32 = vld [vmem:[%s5432_s2 + $0x18] sm:$0xff]  ;;  %v376_v34 = vld [vmem:[%s5433_s3 + $0x10] sm:$0xff]  ;;  %v378_v36 = vld [vmem:[%s5433_s3 + $0x20] sm:$0xff] }
  0x57   : > { %v359_v2 = vld [vmem:[%s353_s24 + $0x8] sm:$0xff]  ;;  %v361_v3 = vld [vmem:[%s353_s24 + $0x18] sm:$0xff]  ;;  %v358_v4 = vld [vmem:[%s353_s24] sm:$0xff]  ;;  %672 = vperm.xlu1 %3525, %v383_v21   ;;  %s5368_s14 = scalar_lea.vmem [#allocation7], %s3286_s29  ;;  %s3350_s20 = sshll.u32 %s3766_s9, 10 }
  0x58   : > { %v3383_v5 = vpack.c.bf16 %v361_v3, %v359_v2  ;;  %v360_v6 = vld [vmem:[%s353_s24 + $0x10] sm:$0xff]  ;;  %v363_v7 = vld [vmem:[%s353_s24 + $0x28] sm:$0xff]  ;;  %v365_v8 = vld [vmem:[%s353_s24 + $0x38] sm:$0xff]  ;;  %s3182_s17 = sshll.u32 %s5368_s14, 4  ;;  %s5383_s23 = scalar_lea.hbm %s5438_s8, %s3350_s20  ;;  %s5378_s17 = int_to_ptr.vmem [resolvable:$true] %s3182_s17 }
  0x59   : > { %v3385_v9 = vpack.c.bf16 %v360_v6, %v358_v4  ;;  %v3387_v10 = vpack.c.bf16 %v365_v8, %v363_v7  ;;  %v362_v11 = vld [vmem:[%s353_s24 + $0x20] sm:$0xff]  ;;  %v364_v12 = vld [vmem:[%s353_s24 + $0x30] sm:$0xff]  ;;  %v355_v14 = vld [vmem:[%s348_s10 + $0x8] sm:$0xff]  ;;  %s5389_s24 = scalar_lea.sflag [#allocation4], %s341_s19  ;;  %s3619_s9 = scalar_lea.vmem %s5378_s17, 1024 }
  0x5a   : > { %3447 = vmatprep.subr.bf16.mxu1 %v3383_v5  ;;  %v354_v13 = vld [vmem:[%s348_s10] sm:$0xff]  ;;  %3384 = vmatprep.subr.bf16.mxu0 %v3383_v5  ;;  %v3389_v15 = vpack.c.bf16 %v364_v12, %v362_v11  ;;  %v356_v17 = vld [vmem:[%s348_s10 + $0x10] sm:$0xff]  ;;  %v357_v18 = vld [vmem:[%s348_s10 + $0x18] sm:$0xff]  ;;  %p3620_p12 = scmp.ne.s32.totalorder %s5378_s17, %s3619_s9  ;;  %s3623_s26 = sshll.u32 %s3697_s25, 4  ;;  %s3624_s26 = int_to_ptr.vmem [resolvable:$false] %s3623_s26 }
  0x5b   : > { %3449 = vmatpush1.bf16.msra.mxu1 %v3385_v9  ;;  %3386 = vmatpush1.bf16.msra.mxu0 %v3385_v9  ;;  %v3391_v16 = vpack.c.bf16 %v355_v14, %v354_v13  ;;  %v3395_v22 = vpack.c.bf16 %v357_v18, %v356_v17  ;;  %v377_v35 = vld [vmem:[%s5433_s3 + $0x18] sm:$0xff]  ;;  %v379_v37 = vld [vmem:[%s5433_s3 + $0x28] sm:$0xff]  ;;  %v380_v38 = vld [vmem:[%s5433_s3 + $0x30] sm:$0xff]  ;;  %s3625_s10 = scalar_lea.vmem %s3624_s26, 2048  ;;  %p3626_p4 = scmp.lt.s32.totalorder %s5378_s17, %s3624_s26 }
  0x5c   : > { %3448 = vmatprep.subr.bf16.mxu1 %v3387_v10  ;;  %3388 = vmatprep.subr.bf16.mxu0 %v3387_v10  ;;  %v381_v39 = vld [vmem:[%s5433_s3 + $0x38] sm:$0xff]  ;;  %p3621_p2 = pnand %p3620_p12, %p5521_p1  ;;  %p3627_p7 = scmp.lt.s32.totalorder %s3625_s10, %s3619_s9 }
  0x5d   : > { %677 = vperm.xlu1 %3525, %v384_v25  }
  0x5e   : > { %p3622_p3 = pneg %p3621_p2  ;;  %p3628_p8 = por %p3627_p7, %p3626_p4 }
  0x5f   : > { %3450 = vmatpush1.bf16.msra.mxu1 %v3389_v15  ;;  %3390 = vmatpush1.bf16.msra.mxu0 %v3389_v15 }
  0x60   : > { %3392 = vmatprep.subr.bf16.mxu1 %v3391_v16  ;;  %p3629_p11 = pnand %p3628_p8, %p3622_p3 }
  0x61   : > { %682 = vperm.xlu1 %3525, %v385_v28  }
  0x62   : > { %3295 = vmatmul.mubr.msk.f32.vlgmr.msra.gmra.mrb[0].mxu1 %vm5447_vm0, %v370_v20  ;;  %3291 = vmatmul.mubr.msk.f32.vlgmr.msra.gmra.mrb[0].mxu0 %vm5447_vm0, %v366_v23 }
  0x63   : > { %517 = vmatprep.mubr.f32.mxu1 %v5443_v0  ;;  %3394 = vmatpush3.bf16.msra.mxu1 %v3391_v16 }
  0x64   : > { %3396 = vmatprep.subr.bf16.mxu1 %v3395_v22  ;;  %493 = vmatprep.mubr.f32.mxu0 %v5443_v0 }
  0x66   : > { %3296 = vmatmul.mubr.msk.f32.gmra.mrb[2].mxu1 %vm5447_vm0, %v371_v24  ;;  %3292 = vmatmul.mubr.msk.f32.gmra.mrb[2].mxu0 %vm5447_vm0, %v367_v26 }
  0x67   : > { %523 = vmatprep.mubr.f32.mxu1 %v5443_v0  ;;  %3398 = vmatpush3.bf16.msra.mxu1 %v3395_v22 }
  0x68   : > { %499 = vmatprep.mubr.f32.mxu0 %v5443_v0 }
  0x6a   : > { %3297 = vmatmul.mubr.msk.f32.gmra.mrb[4].mxu1 %vm5447_vm0, %v372_v27  ;;  %3293 = vmatmul.mubr.msk.f32.gmra.mrb[4].mxu0 %vm5447_vm0, %v368_v29 }
  0x6b   : > { %529 = vmatprep.mubr.f32.mxu1 %v5443_v0  ;;  %505 = vmatprep.mubr.f32.mxu0 %v5443_v0 }
  0x6e   : > { %3298 = vmatmul.mubr.msk.f32.gmra.mrb[6].mxu1 %vm5447_vm0, %v373_v30  ;;  %3294 = vmatmul.mubr.msk.f32.gmra.mrb[6].mxu0 %vm5447_vm0, %v369_v32 }
  0x6f   : > { %3371 = vmatprep.mubr.msk.f32.mxu1 %vm5447_vm0, %v374_v31  ;;  %2885 = vmatprep.mubr.f32.mxu0 %v5443_v0 }
  0x72   : > { %3372 = vmatmul.mubr.msk.f32.vlgmr.msra.gmra.mrb[8].mxu1 %vm5447_vm0, %v375_v33 }
  0x73   : > { %3374 = vmatprep.mubr.msk.f32.mxu1 %vm5447_vm0, %v376_v34 }
  0x76   : > { %3375 = vmatmul.mubr.msk.f32.gmra.mrb[10].mxu1 %vm5447_vm0, %v377_v35 }
  0x77   : > { %3377 = vmatprep.mubr.msk.f32.mxu1 %vm5447_vm0, %v378_v36 }
  0x7a   : > { %3378 = vmatmul.mubr.msk.f32.gmra.mrb[12].mxu1 %vm5447_vm0, %v379_v37  ;;  %v395_v37 = vld [vmem:[%s5437_s7 + $0x8] sm:$0xff] }
  0x7b   : > { %3380 = vmatprep.mubr.msk.f32.mxu1 %vm5447_vm0, %v380_v38  ;;  %3131 = vperm.xlu1 %3525, %v395_v37   ;;  %v396_v38 = vld [vmem:[%s5437_s7 + $0x10] sm:$0xff] }
  0x7e   : > { %3381 = vmatmul.mubr.msk.f32.gmra.mrb[14].mxu1 %vm5447_vm0, %v381_v39  ;;  %v397_v39 = vld [vmem:[%s5437_s7 + $0x18] sm:$0xff] }
  0x7f   : > { %829 = vmatprep.mubr.f32.mxu1 %v5443_v0  ;;  %3136 = vperm.xlu1 %3525, %v396_v38  }
  0x83   : > { %3141 = vperm.xlu1 %3525, %v397_v39  }
  0xd2   : > { %v3960_v40 = vpop.permute.xlu1 %667 }
  0xd6   : > { %v3962_v41 = vpop.permute.xlu1 %672 }
  0xd7   : > { %5466 = vst [vmem:[#allocation13_spill] sm:$0xff] %v3962_v41 }
  0xdc   : > { %v3966_v49 = vpop.permute.xlu1 %677 }
  0xdd   : > { %5467 = vst [vmem:[#allocation14_spill] sm:$0xff] %v3966_v49 }
  0xe0   : > { %v3974_v3 = vpop.permute.xlu1 %682 }
  0xe1   : > { %5470 = vst [vmem:[#allocation17_spill] sm:$0xff] %v3974_v3 }
 0x135   : > { %v513_v42 = vpop.f32.mrb[0].mxu1  ;;  %v489_v44 = vpop.f32.mrb[0].mxu0 }
 0x136   : > { %v515_v43 = vpop.f32.mrb[1].mxu1  ;;  %v685_v45 = vadd.f32 %v3960_v40, %v513_v42  ;;  %v491_v46 = vpop.f32.mrb[1].mxu0 }
 0x137   : > { %v686_v47 = vadd.f32 %v3960_v40, %v515_v43 }
 0x138   : > { %v693_v54 = vmax.f32 %v685_v45, 0.0 }
 0x139   : > { %v519_v48 = vpop.f32.mrb[2].mxu1  ;;  %v495_v53 = vpop.f32.mrb[2].mxu0  ;;  %v694_v58 = vmax.f32 %v686_v47, 0.0 }
 0x13a   : > { %v687_v50 = vadd.f32 %v3962_v41, %v519_v48  ;;  %v521_v51 = vpop.f32.mrb[3].mxu1  ;;  %v3401_v56 = vpack.c.bf16 %v495_v53, %v489_v44  ;;  %v497_v57 = vpop.f32.mrb[3].mxu0 }
 0x13b   : > { %v688_v52 = vadd.f32 %v3962_v41, %v521_v51  ;;  %v3399_v61 = vpack.c.bf16 %v497_v57, %v491_v46 }
 0x13c   : > { %v695_v55 = vmax.f32 %v687_v50, 0.0 }
 0x13d   : > { %v696_v59 = vmax.f32 %v688_v52, 0.0  ;;  %v525_v60 = vpop.f32.mrb[4].mxu1  ;;  %3400 = vmatprep.subr.bf16.mxu1 %v3399_v61  ;;  %v501_v4 = vpop.f32.mrb[4].mxu0 }
 0x13e   : > { %v3970_v62 = vpack.c.bf16 %v695_v55, %v693_v54  ;;  %v527_v63 = vpop.f32.mrb[5].mxu1  ;;  %v689_v5 = vadd.f32 %v3966_v49, %v525_v60  ;;  %3402 = vmatpush1.bf16.msra.mxu1 %v3401_v56  ;;  %v503_v6 = vpop.f32.mrb[5].mxu0 }
 0x13f   : > { %v3972_v2 = vpack.c.bf16 %v696_v59, %v694_v58  ;;  %v690_v7 = vadd.f32 %v3966_v49, %v527_v63 }
 0x140   : > { %5468 = vst [vmem:[#allocation15_spill] sm:$0xff] %v3970_v62  ;;  %v697_v13 = vmax.f32 %v689_v5, 0.0 }
 0x141   : > { %5469 = vst [vmem:[#allocation16_spill] sm:$0xff] %v3972_v2  ;;  %v531_v8 = vpop.f32.mrb[6].mxu1  ;;  %v507_v12 = vpop.f32.mrb[6].mxu0  ;;  %v698_v17 = vmax.f32 %v690_v7, 0.0 }
 0x142   : > { %v691_v9 = vadd.f32 %v3974_v3, %v531_v8  ;;  %v533_v10 = vpop.f32.mrb[7].mxu1  ;;  %v3405_v15 = vpack.c.bf16 %v507_v12, %v501_v4  ;;  %v509_v16 = vpop.f32.mrb[7].mxu0 }
 0x143   : > { %v692_v11 = vadd.f32 %v3974_v3, %v533_v10  ;;  %v3403_v20 = vpack.c.bf16 %v509_v16, %v503_v6 }
 0x144   : > { %v699_v14 = vmax.f32 %v691_v9, 0.0 }
 0x145   : > { %v700_v18 = vmax.f32 %v692_v11, 0.0  ;;  %v3373_v19 = vpop.f32.mrb[8].mxu1  ;;  %3404 = vmatprep.subr.bf16.mxu1 %v3403_v20 }
 0x146   : > { %v3980_v21 = vpack.c.bf16 %v699_v14, %v697_v13  ;;  %v626_v22 = vpop.f32.mrb[9].mxu1  ;;  %3406 = vmatpush1.bf16.msra.mxu1 %v3405_v15 }
 0x147   : > { %v3982_v23 = vpack.c.bf16 %v700_v18, %v698_v17  ;;  %709 = vxpose.xlu0.b32.start [1/4] (short) (narrow) %v626_v22, 64 }
 0x148   : > { %5471 = vst [vmem:[#allocation18_spill] sm:$0xff] %v3980_v21 }
 0x149   : > { %5472 = vst [vmem:[#allocation19_spill] sm:$0xff] %v3982_v23  ;;  %v3376_v24 = vpop.f32.mrb[10].mxu1 }
 0x14a   : > { %v636_v25 = vpop.f32.mrb[11].mxu1 }
 0x14b   : > { %710 = vxpose.xlu0.b32.cont [2/4] (short) (narrow) %v3373_v19, 64 }
 0x14d   : > { %v3985_v26 = vpop.f32.mrb[12].mxu1 }
 0x14e   : > { %5473 = vst [vmem:[#allocation20_spill] sm:$0xff] %v3985_v26  ;;  %v3987_v27 = vpop.f32.mrb[13].mxu1 }
 0x14f   : > { %711 = vxpose.xlu0.b32.cont [3/4] (short) (narrow) %v636_v25, 64 }
 0x151   : > { %v3989_v28 = vpop.f32.mrb[14].mxu1 }
 0x152   : > { %5474 = vst [vmem:[#allocation21_spill] sm:$0xff] %v3989_v28  ;;  %v3991_v29 = vpop.f32.mrb[15].mxu1 }
 0x153   : > { %712 = vxpose.xlu0.b32.end [4/4] (short) (narrow) %v3376_v24, 64  ;;  %5475 = vst [vmem:[#allocation22_spill] sm:$0xff] %v3991_v29 }
 0x17c   : > { %3526 = vset.pattern.permute.xlu0 %v3696_v1 }
 0x1c7   : > { %v725_v30 = vpop.trf.xlu0 }
 0x1c8   : > { %3307 = vmatmul.mubr.msk.f32.vlgmr.msra.gmra.mrb[16].mxu1 %vm5447_vm0, %v725_v30 }
 0x1c9   : > { %835 = vmatprep.mubr.f32.mxu1 %v5443_v0 }
 0x1cb   : > { %v726_v31 = vpop.trf.xlu0 }
 0x1cc   : > { %3308 = vmatmul.mubr.msk.f32.gmra.mrb[18].mxu1 %vm5447_vm0, %v726_v31 }
 0x1cd   : > { %841 = vmatprep.mubr.f32.mxu1 %v5443_v0 }
 0x1cf   : > { %v727_v32 = vpop.trf.xlu0 }
 0x1d0   : > { %3309 = vmatmul.mubr.msk.f32.gmra.mrb[20].mxu1 %vm5447_vm0, %v727_v32 }
 0x1d1   : > { %847 = vmatprep.mubr.f32.mxu1 %v5443_v0 }
 0x1d3   : > { %v728_v1 = vpop.trf.xlu0 }
 0x1d4   : > { %3310 = vmatmul.mubr.msk.f32.gmra.mrb[22].mxu1 %vm5447_vm0, %v728_v1 }
 0x1d5   : > { %853 = vmatprep.mubr.f32.mxu1 %v5443_v0 }
 0x1d7   : > { %v729_v33 = vpop.trf.xlu0 }
 0x1d8   : > { %3311 = vmatmul.mubr.msk.f32.gmra.mrb[24].mxu1 %vm5447_vm0, %v729_v33 }
 0x1d9   : > { %859 = vmatprep.mubr.f32.mxu1 %v5443_v0 }
 0x1db   : > { %v730_v34 = vpop.trf.xlu0 }
 0x1dc   : > { %3312 = vmatmul.mubr.msk.f32.gmra.mrb[26].mxu1 %vm5447_vm0, %v730_v34 }
 0x1dd   : > { %865 = vmatprep.mubr.f32.mxu1 %v5443_v0 }
 0x1df   : > { %v731_v35 = vpop.trf.xlu0 }
 0x1e0   : > { %3313 = vmatmul.mubr.msk.f32.gmra.mrb[28].mxu1 %vm5447_vm0, %v731_v35 }
 0x1e1   : > { %871 = vmatprep.mubr.f32.mxu1 %v5443_v0 }
 0x1e3   : > { %v732_v36 = vpop.trf.xlu0 }
 0x1e4   : > { %3314 = vmatmul.mubr.msk.f32.gmra.mrb[30].mxu1 %vm5447_vm0, %v732_v36 }
 0x29b   : > { %v4017_v42 = vpop.f32.mrb[16].mxu1 }
 0x29c   : > { %v4019_v43 = vpop.f32.mrb[17].mxu1 }
 0x29f   : > { %v4021_v44 = vpop.f32.mrb[18].mxu1 }
 0x2a0   : > { %v4023_v45 = vpop.f32.mrb[19].mxu1 }
 0x2a3   : > { %v4025_v46 = vpop.f32.mrb[20].mxu1 }
 0x2a4   : > { %v4027_v47 = vpop.f32.mrb[21].mxu1  ;;  %v878_v48 = vmax.f32 %v4017_v42, %v4025_v46 }
 0x2a5   : > { %v891_v50 = vmax.f32 %v4019_v43, %v4027_v47 }
 0x2a7   : > { %v4033_v51 = vpop.f32.mrb[22].mxu1 }
 0x2a8   : > { %v4035_v52 = vpop.f32.mrb[23].mxu1  ;;  %v879_v53 = vmax.f32 %v4021_v44, %v4033_v51 }
 0x2a9   : > { %v892_v54 = vmax.f32 %v4023_v45, %v4035_v52 }
 0x2ab   : > { %v4041_v55 = vpop.f32.mrb[24].mxu1 }
 0x2ac   : > { %v4043_v56 = vpop.f32.mrb[25].mxu1  ;;  %v880_v57 = vmax.f32 %v878_v48, %v4041_v55 }
 0x2ad   : > { %v893_v58 = vmax.f32 %v891_v50, %v4043_v56 }
 0x2af   : > { %v4047_v59 = vpop.f32.mrb[26].mxu1 }
 0x2b0   : > { %v4049_v60 = vpop.f32.mrb[27].mxu1  ;;  %v881_v61 = vmax.f32 %v879_v53, %v4047_v59 }
 0x2b1   : > { %v894_v63 = vmax.f32 %v892_v54, %v4049_v60 }
 0x2b3   : > { %v4053_v4 = vpop.f32.mrb[28].mxu1 }
 0x2b4   : > { %v4055_v5 = vpop.f32.mrb[29].mxu1  ;;  %v882_v6 = vmax.f32 %v880_v57, %v4053_v4 }
 0x2b5   : > { %v895_v7 = vmax.f32 %v893_v58, %v4055_v5 }
 0x2b7   : > { %v4059_v8 = vpop.f32.mrb[30].mxu1 }
 0x2b8   : > { %v4061_v9 = vpop.f32.mrb[31].mxu1  ;;  %v883_v10 = vmax.f32 %v881_v61, %v4059_v8 }
 0x2b9   : > { %v896_v11 = vmax.f32 %v894_v63, %v4061_v9 }
 0x2ba   : > { %v884_v12 = vmax.f32 %v882_v6, %v883_v10 }
 0x2bb   : > { %v897_v13 = vmax.f32 %v895_v7, %v896_v11 }
 0x2bc   : > { %v885_v14 = vrot.slane %v884_v12, 4 }
 0x2bd   : > { %v898_v15 = vrot.slane %v897_v13, 4 }
 0x2be   : > { %v886_v16 = vmax.f32 %v884_v12, %v885_v14 }
 0x2bf   : > { %v899_v17 = vmax.f32 %v897_v13, %v898_v15 }
 0x2c0   : > { %v887_v18 = vrot.slane %v886_v16, 2 }
 0x2c1   : > { %v900_v19 = vrot.slane %v899_v17, 2 }
 0x2c2   : > { %v888_v20 = vmax.f32 %v886_v16, %v887_v18 }
 0x2c3   : > { %v901_v22 = vmax.f32 %v899_v17, %v900_v19 }
 0x2c4   : > { %v889_v24 = vrot.slane %v888_v20, 1 }
 0x2c5   : > { %v902_v25 = vrot.slane %v901_v22, 1 }
 0x2c6   : > { %v4065_v30 = vmax.f32 %v888_v20, %v889_v24 }
 0x2c7   : > { %v4067_v31 = vmax.f32 %v901_v22, %v902_v25 }
 0x2c8   : > { %vm904_vm1 = vcmp.lt.f32.partialorder %v4017_v42, %v4065_v30  ;;  %vm906_vm10 = vcmp.lt.f32.partialorder %v4021_v44, %v4065_v30  ;;  %vm908_vm11 = vcmp.lt.f32.partialorder %v4025_v46, %v4065_v30  ;;  %vm910_vm12 = vcmp.lt.f32.partialorder %v4033_v51, %v4065_v30 }
 0x2c9   : > { %vm905_vm2 = vcmp.lt.f32.partialorder %v4019_v43, %v4067_v31  ;;  %vm907_vm3 = vcmp.lt.f32.partialorder %v4023_v45, %v4067_v31  ;;  %vm909_vm4 = vcmp.lt.f32.partialorder %v4027_v47, %v4067_v31  ;;  %vm911_vm5 = vcmp.lt.f32.partialorder %v4035_v52, %v4067_v31 }
 0x2ca   : > { %vm913_vm6 = vcmp.lt.f32.partialorder %v4043_v56, %v4067_v31  ;;  %vm915_vm7 = vcmp.lt.f32.partialorder %v4049_v60, %v4067_v31  ;;  %vm917_vm8 = vcmp.lt.f32.partialorder %v4055_v5, %v4067_v31  ;;  %vm919_vm9 = vcmp.lt.f32.partialorder %v4061_v9, %v4067_v31 }
 0x2cb   : > { %v921_v32 = vsel %vm905_vm2, %v4019_v43, -inf  ;;  %v923_v1 = vsel %vm907_vm3, %v4023_v45, -inf  ;;  %v925_v33 = vsel %vm909_vm4, %v4027_v47, -inf  ;;  %v927_v34 = vsel %vm911_vm5, %v4035_v52, -inf }
 0x2cc   : > { %v929_v35 = vsel %vm913_vm6, %v4043_v56, -inf  ;;  %v949_v36 = vmax.f32 %v921_v32, %v925_v33  ;;  %v950_v37 = vmax.f32 %v923_v1, %v927_v34  ;;  %v2719_v38 = vsub.f32 %v4019_v43, %v4067_v31 }
 0x2cd   : > { %v2721_v39 = vsub.f32 %v4023_v45, %v4067_v31  ;;  %v931_v48 = vsel %vm915_vm7, %v4049_v60, -inf  ;;  %v933_v50 = vsel %vm917_vm8, %v4055_v5, -inf  ;;  %v935_v53 = vsel %vm919_vm9, %v4061_v9, -inf }
 0x2ce   : > { %vm912_vm13 = vcmp.lt.f32.partialorder %v4041_v55, %v4065_v30  ;;  %v951_v54 = vmax.f32 %v949_v36, %v929_v35  ;;  %v952_v57 = vmax.f32 %v950_v37, %v931_v48  ;;  %v2736_v58 = vmul.f32 1.442695, %v2719_v38 }
 0x2cf   : > { %v2740_v61 = vmul.f32 1.442695, %v2721_v39  ;;  %v920_v63 = vsel %vm904_vm1, %v4017_v42, -inf  ;;  %v922_v6 = vsel %vm906_vm10, %v4021_v44, -inf  ;;  %v924_v7 = vsel %vm908_vm11, %v4025_v46, -inf }
 0x2d0   : > { %v926_v10 = vsel %vm910_vm12, %v4033_v51, -inf  ;;  %v953_v11 = vmax.f32 %v951_v54, %v933_v50  ;;  %v954_v12 = vmax.f32 %v952_v57, %v935_v53  ;;  %3527 = vpow2.f32 %v2736_v58 }
 0x2d1   : > { %vm914_vm14 = vcmp.lt.f32.partialorder %v4047_v59, %v4065_v30  ;;  %3529 = vpow2.f32 %v2740_v61  ;;  %vm916_vm15 = vcmp.lt.f32.partialorder %v4053_v4, %v4065_v30  ;;  %vm918_vm1 = vcmp.lt.f32.partialorder %v4059_v8, %v4065_v30 }
 0x2d2   : > { %v955_v13 = vmax.f32 %v953_v11, %v954_v12  ;;  %v936_v14 = vmax.f32 %v920_v63, %v924_v7  ;;  %v937_v15 = vmax.f32 %v922_v6, %v926_v10  ;;  %v928_v16 = vsel %vm912_vm13, %v4041_v55, -inf }
 0x2d3   : > { %v930_v17 = vsel %vm914_vm14, %v4047_v59, -inf  ;;  %v932_v22 = vsel %vm916_vm15, %v4053_v4, -inf  ;;  %v934_v24 = vsel %vm918_vm1, %v4059_v8, -inf }
 0x2d4   : > { %v956_v18 = vrot.slane %v955_v13, 4  ;;  %v938_v19 = vmax.f32 %v936_v14, %v928_v16  ;;  %v939_v20 = vmax.f32 %v937_v15, %v930_v17 }
 0x2d6   : > { %v957_v25 = vmax.f32 %v955_v13, %v956_v18  ;;  %v940_v32 = vmax.f32 %v938_v19, %v932_v22  ;;  %v941_v1 = vmax.f32 %v939_v20, %v934_v24 }
 0x2d8   : > { %v958_v33 = vrot.slane %v957_v25, 2  ;;  %v942_v34 = vmax.f32 %v940_v32, %v941_v1 }
 0x2da   : > { %v4136_v35 = vpop.eup %3527  ;;  %v959_v36 = vmax.f32 %v957_v25, %v958_v33  ;;  %v943_v37 = vrot.slane %v942_v34, 4 }
 0x2db   : > { %v4138_v38 = vpop.eup %3529 }
 0x2dc   : > { %v960_v39 = vrot.slane %v959_v36, 1  ;;  %v4142_v48 = vadd.f32 %v4138_v38, %v4136_v35  ;;  %v944_v53 = vmax.f32 %v942_v34, %v943_v37 }
 0x2de   : > { %v961_v54 = vmax.f32 %v959_v36, %v960_v39  ;;  %v945_v57 = vrot.slane %v944_v53, 2 }
 0x2e0   : > { %vm963_vm2 = vcmp.lt.f32.partialorder %v4019_v43, %v961_v54  ;;  %vm965_vm3 = vcmp.lt.f32.partialorder %v4023_v45, %v961_v54  ;;  %vm967_vm4 = vcmp.lt.f32.partialorder %v4027_v47, %v961_v54  ;;  %vm969_vm5 = vcmp.lt.f32.partialorder %v4035_v52, %v961_v54 }
 0x2e1   : > { %vm971_vm6 = vcmp.lt.f32.partialorder %v4043_v56, %v961_v54  ;;  %vm973_vm7 = vcmp.lt.f32.partialorder %v4049_v60, %v961_v54  ;;  %vm975_vm8 = vcmp.lt.f32.partialorder %v4055_v5, %v961_v54  ;;  %vm977_vm9 = vcmp.lt.f32.partialorder %v4061_v9, %v961_v54 }
 0x2e2   : > { %v979_v58 = vsel %vm963_vm2, %v4019_v43, -inf  ;;  %v981_v61 = vsel %vm965_vm3, %v4023_v45, -inf  ;;  %v983_v63 = vsel %vm967_vm4, %v4027_v47, -inf  ;;  %v985_v6 = vsel %vm969_vm5, %v4035_v52, -inf }
 0x2e3   : > { %v987_v7 = vsel %vm971_vm6, %v4043_v56, -inf  ;;  %v989_v10 = vsel %vm973_vm7, %v4049_v60, -inf  ;;  %v991_v11 = vsel %vm975_vm8, %v4055_v5, -inf  ;;  %v993_v12 = vsel %vm977_vm9, %v4061_v9, -inf }
 0x2e4   : > { %v1007_v13 = vmax.f32 %v979_v58, %v983_v63  ;;  %v1008_v14 = vmax.f32 %v981_v61, %v985_v6  ;;  %v946_v15 = vmax.f32 %v944_v53, %v945_v57 }
 0x2e6   : > { %v1009_v16 = vmax.f32 %v1007_v13, %v987_v7  ;;  %v1010_v17 = vmax.f32 %v1008_v14, %v989_v10  ;;  %v947_v18 = vrot.slane %v946_v15, 1 }
 0x2e8   : > { %v1011_v19 = vmax.f32 %v1009_v16, %v991_v11  ;;  %v1012_v20 = vmax.f32 %v1010_v17, %v993_v12  ;;  %v948_v22 = vmax.f32 %v946_v15, %v947_v18 }
 0x2ea   : > { %v1013_v24 = vmax.f32 %v1011_v19, %v1012_v20  ;;  %vm962_vm10 = vcmp.lt.f32.partialorder %v4017_v42, %v948_v22  ;;  %vm964_vm11 = vcmp.lt.f32.partialorder %v4021_v44, %v948_v22  ;;  %vm966_vm12 = vcmp.lt.f32.partialorder %v4025_v46, %v948_v22 }
 0x2eb   : > { %vm968_vm13 = vcmp.lt.f32.partialorder %v4033_v51, %v948_v22  ;;  %vm970_vm14 = vcmp.lt.f32.partialorder %v4041_v55, %v948_v22  ;;  %vm972_vm15 = vcmp.lt.f32.partialorder %v4047_v59, %v948_v22  ;;  %vm974_vm1 = vcmp.lt.f32.partialorder %v4053_v4, %v948_v22 }
 0x2ec   : > { %v1014_v25 = vrot.slane %v1013_v24, 4  ;;  %vm976_vm2 = vcmp.lt.f32.partialorder %v4059_v8, %v948_v22  ;;  %v978_v32 = vsel %vm962_vm10, %v4017_v42, -inf  ;;  %v980_v1 = vsel %vm964_vm11, %v4021_v44, -inf }
 0x2ed   : > { %v982_v33 = vsel %vm966_vm12, %v4025_v46, -inf  ;;  %v984_v34 = vsel %vm968_vm13, %v4033_v51, -inf  ;;  %v986_v36 = vsel %vm970_vm14, %v4041_v55, -inf  ;;  %v988_v37 = vsel %vm972_vm15, %v4047_v59, -inf }
 0x2ee   : > { %v1015_v39 = vmax.f32 %v1013_v24, %v1014_v25  ;;  %v990_v53 = vsel %vm974_vm1, %v4053_v4, -inf  ;;  %v992_v54 = vsel %vm976_vm2, %v4059_v8, -inf  ;;  %v994_v57 = vmax.f32 %v978_v32, %v982_v33 }
 0x2ef   : > { %v995_v58 = vmax.f32 %v980_v1, %v984_v34 }
 0x2f0   : > { %v1016_v61 = vrot.slane %v1015_v39, 2  ;;  %v996_v63 = vmax.f32 %v994_v57, %v986_v36 }
 0x2f1   : > { %v997_v6 = vmax.f32 %v995_v58, %v988_v37 }
 0x2f2   : > { %v1017_v7 = vmax.f32 %v1015_v39, %v1016_v61  ;;  %v998_v10 = vmax.f32 %v996_v63, %v990_v53 }
 0x2f3   : > { %v999_v11 = vmax.f32 %v997_v6, %v992_v54  ;;  %v2718_v6 = vsub.f32 %v4017_v42, %v4065_v30 }
 0x2f4   : > { %v1018_v12 = vrot.slane %v1017_v7, 1 }
 0x2f5   : > { %v1000_v13 = vmax.f32 %v998_v10, %v999_v11  ;;  %v2722_v10 = vsub.f32 %v4025_v46, %v4065_v30  ;;  %v2724_v11 = vsub.f32 %v4033_v51, %v4065_v30 }
 0x2f6   : > { %v1019_v14 = vmax.f32 %v1017_v7, %v1018_v12  ;;  %v2720_v7 = vsub.f32 %v4021_v44, %v4065_v30 }
 0x2f7   : > { %v1001_v15 = vrot.slane %v1000_v13, 4 }
 0x2f8   : > { %vm1021_vm3 = vcmp.lt.f32.partialorder %v4019_v43, %v1019_v14  ;;  %vm1023_vm4 = vcmp.lt.f32.partialorder %v4023_v45, %v1019_v14  ;;  %vm1025_vm5 = vcmp.lt.f32.partialorder %v4027_v47, %v1019_v14  ;;  %vm1027_vm6 = vcmp.lt.f32.partialorder %v4035_v52, %v1019_v14 }
 0x2f9   : > { %vm1029_vm7 = vcmp.lt.f32.partialorder %v4043_v56, %v1019_v14  ;;  %vm1031_vm8 = vcmp.lt.f32.partialorder %v4049_v60, %v1019_v14  ;;  %vm1033_vm9 = vcmp.lt.f32.partialorder %v4055_v5, %v1019_v14  ;;  %vm1035_vm10 = vcmp.lt.f32.partialorder %v4061_v9, %v1019_v14 }
 0x2fa   : > { %v1037_v16 = vsel %vm1021_vm3, %v4019_v43, -inf  ;;  %v1039_v17 = vsel %vm1023_vm4, %v4023_v45, -inf  ;;  %v1041_v18 = vsel %vm1025_vm5, %v4027_v47, -inf  ;;  %v1043_v19 = vsel %vm1027_vm6, %v4035_v52, -inf }
 0x2fb   : > { %v1045_v20 = vsel %vm1029_vm7, %v4043_v56, -inf  ;;  %v1047_v22 = vsel %vm1031_vm8, %v4049_v60, -inf  ;;  %v1049_v24 = vsel %vm1033_vm9, %v4055_v5, -inf  ;;  %v1051_v25 = vsel %vm1035_vm10, %v4061_v9, -inf }
 0x2fc   : > { %v1065_v32 = vmax.f32 %v1037_v16, %v1041_v18  ;;  %v1066_v1 = vmax.f32 %v1039_v17, %v1043_v19  ;;  %v1002_v33 = vmax.f32 %v1000_v13, %v1001_v15 }
 0x2fe   : > { %v1067_v34 = vmax.f32 %v1065_v32, %v1045_v20  ;;  %v1068_v36 = vmax.f32 %v1066_v1, %v1047_v22  ;;  %v1003_v37 = vrot.slane %v1002_v33, 2  ;;  %v2734_v1 = vmul.f32 1.442695, %v2718_v6 }
 0x2ff   : > { %v2727_v6 = vsub.f32 %v4043_v56, %v4067_v31 }
 0x300   : > { %v1069_v39 = vmax.f32 %v1067_v34, %v1049_v24  ;;  %v1070_v53 = vmax.f32 %v1068_v36, %v1051_v25  ;;  %v1004_v54 = vmax.f32 %v1002_v33, %v1003_v37  ;;  %v2738_v33 = vmul.f32 1.442695, %v2720_v7 }
 0x301   : > { %v2723_v34 = vsub.f32 %v4027_v47, %v4067_v31  ;;  %3531 = vpow2.f32 %v2734_v1  ;;  %v2729_v7 = vsub.f32 %v4049_v60, %v4067_v31  ;;  %v2726_v1 = vsub.f32 %v4041_v55, %v4065_v30 }
 0x302   : > { %v1071_v57 = vmax.f32 %v1069_v39, %v1070_v53  ;;  %v1005_v58 = vrot.slane %v1004_v54, 1  ;;  %v2725_v39 = vsub.f32 %v4035_v52, %v4067_v31  ;;  %v2742_v53 = vmul.f32 1.442695, %v2722_v10 }
 0x303   : > { %3533 = vpow2.f32 %v2738_v33 }
 0x304   : > { %v1072_v61 = vrot.slane %v1071_v57, 4  ;;  %v1006_v63 = vmax.f32 %v1004_v54, %v1005_v58  ;;  %v2746_v58 = vmul.f32 1.442695, %v2724_v11 }
 0x306   : > { %v1073_v12 = vmax.f32 %v1071_v57, %v1072_v61  ;;  %vm1020_vm11 = vcmp.lt.f32.partialorder %v4017_v42, %v1006_v63  ;;  %vm1022_vm12 = vcmp.lt.f32.partialorder %v4021_v44, %v1006_v63  ;;  %vm1024_vm13 = vcmp.lt.f32.partialorder %v4025_v46, %v1006_v63 }
 0x307   : > { %vm1026_vm14 = vcmp.lt.f32.partialorder %v4033_v51, %v1006_v63  ;;  %vm1028_vm15 = vcmp.lt.f32.partialorder %v4041_v55, %v1006_v63  ;;  %vm1030_vm1 = vcmp.lt.f32.partialorder %v4047_v59, %v1006_v63  ;;  %vm1032_vm2 = vcmp.lt.f32.partialorder %v4053_v4, %v1006_v63 }
 0x308   : > { %v1074_v13 = vrot.slane %v1073_v12, 2  ;;  %vm1034_vm3 = vcmp.lt.f32.partialorder %v4059_v8, %v1006_v63  ;;  %v1036_v14 = vsel %vm1020_vm11, %v4017_v42, -inf  ;;  %v1038_v15 = vsel %vm1022_vm12, %v4021_v44, -inf }
 0x309   : > { %v1040_v16 = vsel %vm1024_vm13, %v4025_v46, -inf  ;;  %v1042_v17 = vsel %vm1026_vm14, %v4033_v51, -inf  ;;  %v1044_v18 = vsel %vm1028_vm15, %v4041_v55, -inf  ;;  %v1046_v19 = vsel %vm1030_vm1, %v4047_v59, -inf }
 0x30a   : > { %v1075_v20 = vmax.f32 %v1073_v12, %v1074_v13  ;;  %v1048_v22 = vsel %vm1032_vm2, %v4053_v4, -inf  ;;  %v1050_v24 = vsel %vm1034_vm3, %v4059_v8, -inf  ;;  %v1052_v25 = vmax.f32 %v1036_v14, %v1040_v16 }
 0x30b   : > { %v1053_v32 = vmax.f32 %v1038_v15, %v1042_v17  ;;  %v2744_v57 = vmul.f32 1.442695, %v2723_v34  ;;  %v2748_v12 = vmul.f32 1.442695, %v2725_v39  ;;  %v2728_v39 = vsub.f32 %v4047_v59, %v4065_v30 }
 0x30c   : > { %v1076_v36 = vrot.slane %v1075_v20, 1  ;;  %v1054_v37 = vmax.f32 %v1052_v25, %v1044_v18  ;;  %v2752_v25 = vmul.f32 1.442695, %v2727_v6 }
 0x30d   : > { %v1055_v54 = vmax.f32 %v1053_v32, %v1046_v19  ;;  %3535 = vpow2.f32 %v2744_v57  ;;  %v2756_v32 = vmul.f32 1.442695, %v2729_v7  ;;  %v2754_v7 = vmul.f32 1.442695, %v2728_v39 }
 0x30e   : > { %v1077_v61 = vmax.f32 %v1075_v20, %v1076_v36  ;;  %v1056_v63 = vmax.f32 %v1054_v37, %v1048_v22  ;;  %3537 = vpow2.f32 %v2748_v12  ;;  %v4244_v37 = vpop.eup %3531  ;;  %v2750_v12 = vmul.f32 1.442695, %v2726_v1 }
 0x30f   : > { %v1057_v13 = vmax.f32 %v1055_v54, %v1050_v24  ;;  %3539 = vpow2.f32 %v2742_v53  ;;  %v2731_v54 = vsub.f32 %v4055_v5, %v4067_v31  ;;  %v4250_v57 = vpop.eup %3533 }
 0x310   : > { %vm1079_vm4 = vcmp.lt.f32.partialorder %v4019_v43, %v1077_v61  ;;  %vm1081_vm5 = vcmp.lt.f32.partialorder %v4023_v45, %v1077_v61  ;;  %vm1083_vm6 = vcmp.lt.f32.partialorder %v4027_v47, %v1077_v61  ;;  %vm1085_vm7 = vcmp.lt.f32.partialorder %v4035_v52, %v1077_v61 }
 0x311   : > { %vm1087_vm8 = vcmp.lt.f32.partialorder %v4043_v56, %v1077_v61  ;;  %vm1089_vm9 = vcmp.lt.f32.partialorder %v4049_v60, %v1077_v61  ;;  %vm1091_vm10 = vcmp.lt.f32.partialorder %v4055_v5, %v1077_v61  ;;  %vm1093_vm11 = vcmp.lt.f32.partialorder %v4061_v9, %v1077_v61 }
 0x312   : > { %v1095_v10 = vsel %vm1079_vm4, %v4019_v43, -inf  ;;  %v1097_v11 = vsel %vm1081_vm5, %v4023_v45, -inf  ;;  %v1099_v14 = vsel %vm1083_vm6, %v4027_v47, -inf  ;;  %v1101_v15 = vsel %vm1085_vm7, %v4035_v52, -inf }
 0x313   : > { %v1103_v16 = vsel %vm1087_vm8, %v4043_v56, -inf  ;;  %v1105_v17 = vsel %vm1089_vm9, %v4049_v60, -inf  ;;  %v1107_v18 = vsel %vm1091_vm10, %v4055_v5, -inf  ;;  %v1109_v19 = vsel %vm1093_vm11, %v4061_v9, -inf }
 0x314   : > { %v1123_v20 = vmax.f32 %v1095_v10, %v1099_v14  ;;  %v1124_v22 = vmax.f32 %v1097_v11, %v1101_v15  ;;  %v1058_v24 = vmax.f32 %v1056_v63, %v1057_v13  ;;  %3541 = vpow2.f32 %v2746_v58 }
 0x315   : > { %3543 = vpow2.f32 %v2752_v25  ;;  %v2766_v58 = vadd.f32 %v4250_v57, %v4244_v37  ;;  %v2733_v15 = vsub.f32 %v4061_v9, %v4067_v31 }
 0x316   : > { %v1125_v33 = vmax.f32 %v1123_v20, %v1103_v16  ;;  %v1126_v34 = vmax.f32 %v1124_v22, %v1105_v17  ;;  %v1059_v36 = vrot.slane %v1058_v24, 4  ;;  %3545 = vpow2.f32 %v2756_v32 }
 0x317   : > { %v4252_v13 = vpop.eup %3535  ;;  %v2760_v16 = vmul.f32 1.442695, %v2731_v54  ;;  %v2730_v17 = vsub.f32 %v4053_v4, %v4065_v30  ;;  %3547 = vpow2.f32 %v2750_v12  ;;  %v2764_v22 = vmul.f32 1.442695, %v2733_v15 }
 0x318   : > { %v1127_v53 = vmax.f32 %v1125_v33, %v1107_v18  ;;  %v1128_v61 = vmax.f32 %v1126_v34, %v1109_v19  ;;  %v1060_v63 = vmax.f32 %v1058_v24, %v1059_v36  ;;  %v2780_v14 = vadd.f32 %v4252_v13, %v4142_v48  ;;  %v4266_v32 = vpop.eup %3537 }
 0x319   : > { %v2732_v18 = vsub.f32 %v4059_v8, %v4065_v30  ;;  %3549 = vpow2.f32 %v2754_v7  ;;  %v2758_v24 = vmul.f32 1.442695, %v2730_v17  ;;  %v4268_v31 = vpop.eup %3539 }
 0x31a   : > { %v1129_v10 = vmax.f32 %v1127_v53, %v1128_v61  ;;  %v1061_v11 = vrot.slane %v1060_v63, 2  ;;  %3551 = vpow2.f32 %v2760_v16  ;;  %v2781_v33 = vadd.f32 %v4266_v32, %v2780_v14 }
 0x31b   : > { %v2762_v25 = vmul.f32 1.442695, %v2732_v18  ;;  %3553 = vpow2.f32 %v2764_v22  ;;  %v2767_v54 = vadd.f32 %v4268_v31, %v2766_v58 }
 0x31c   : > { %v1130_v19 = vrot.slane %v1129_v10, 4  ;;  %v1062_v20 = vmax.f32 %v1060_v63, %v1061_v11  ;;  %3555 = vpow2.f32 %v2758_v24 }
 0x31d   : > { %3557 = vpow2.f32 %v2762_v25 }
 0x31e   : > { %v1131_v48 = vmax.f32 %v1129_v10, %v1130_v19  ;;  %v1063_v1 = vrot.slane %v1062_v20, 1  ;;  %v4273_v30 = vpop.eup %3541 }
 0x31f   : > { %v4276_v53 = vpop.eup %3543 }
 0x320   : > { %v1132_v36 = vrot.slane %v1131_v48, 2  ;;  %v1064_v39 = vmax.f32 %v1062_v20, %v1063_v1  ;;  %v4283_v12 = vpop.eup %3545  ;;  %v2782_v1 = vadd.f32 %v4276_v53, %v2781_v33 }
 0x321   : > { %v4296_v17 = vpop.eup %3547 }
 0x322   : > { %v1133_v63 = vmax.f32 %v1131_v48, %v1132_v36  ;;  %vm1078_vm12 = vcmp.lt.f32.partialorder %v4017_v42, %v1064_v39  ;;  %vm1080_vm13 = vcmp.lt.f32.partialorder %v4021_v44, %v1064_v39  ;;  %vm1082_vm14 = vcmp.lt.f32.partialorder %v4025_v46, %v1064_v39 }
 0x323   : > { %vm1084_vm15 = vcmp.lt.f32.partialorder %v4033_v51, %v1064_v39  ;;  %vm1086_vm1 = vcmp.lt.f32.partialorder %v4041_v55, %v1064_v39  ;;  %vm1088_vm2 = vcmp.lt.f32.partialorder %v4047_v59, %v1064_v39  ;;  %vm1090_vm3 = vcmp.lt.f32.partialorder %v4053_v4, %v1064_v39  ;;  %v4300_v24 = vpop.eup %3549 }
 0x324   : > { %v1134_v58 = vrot.slane %v1133_v63, 1  ;;  %vm1092_vm4 = vcmp.lt.f32.partialorder %v4059_v8, %v1064_v39  ;;  %v1094_v7 = vsel %vm1078_vm12, %v4017_v42, -inf  ;;  %v1096_v10 = vsel %vm1080_vm13, %v4021_v44, -inf  ;;  %v4306_v39 = vpop.eup %3551 }
 0x325   : > { %v1098_v11 = vsel %vm1082_vm14, %v4025_v46, -inf  ;;  %v1100_v14 = vsel %vm1084_vm15, %v4033_v51, -inf  ;;  %v1102_v15 = vsel %vm1086_vm1, %v4041_v55, -inf  ;;  %v1104_v16 = vsel %vm1088_vm2, %v4047_v59, -inf  ;;  %5476 = vst [vmem:[#allocation23_spill] sm:$0xff] %v4306_v39 }
 0x326   : > { %v1135_v18 = vmax.f32 %v1133_v63, %v1134_v58  ;;  %v1106_v19 = vsel %vm1090_vm3, %v4053_v4, -inf  ;;  %v1108_v20 = vsel %vm1092_vm4, %v4059_v8, -inf  ;;  %v1110_v22 = vmax.f32 %v1094_v7, %v1098_v11  ;;  %v4312_v63 = vpop.eup %3553 }
 0x327   : > { %v1111_v25 = vmax.f32 %v1096_v10, %v1100_v14  ;;  %v2768_v48 = vadd.f32 %v4273_v30, %v2767_v54  ;;  %5477 = vst [vmem:[#allocation24_spill] sm:$0xff] %v4312_v63  ;;  %v4318_v33 = vpop.eup %3555  ;;  %v2783_v28 = vadd.f32 %v4283_v12, %v2782_v1 }
 0x328   : > { %vm1137_vm5 = vcmp.lt.f32.partialorder %v4019_v43, %v1135_v18  ;;  %vm1139_vm6 = vcmp.lt.f32.partialorder %v4023_v45, %v1135_v18  ;;  %vm1141_vm7 = vcmp.lt.f32.partialorder %v4027_v47, %v1135_v18  ;;  %vm1143_vm8 = vcmp.lt.f32.partialorder %v4035_v52, %v1135_v18  ;;  %5478 = vst [vmem:[#allocation25_spill] sm:$0xff] %v4318_v33  ;;  %v4324_v11 = vpop.eup %3557 }
 0x329   : > { %vm1145_vm9 = vcmp.lt.f32.partialorder %v4043_v56, %v1135_v18  ;;  %vm1147_vm10 = vcmp.lt.f32.partialorder %v4049_v60, %v1135_v18  ;;  %vm1149_vm11 = vcmp.lt.f32.partialorder %v4055_v5, %v1135_v18  ;;  %vm1151_vm12 = vcmp.lt.f32.partialorder %v4061_v9, %v1135_v18  ;;  %5479 = vst [vmem:[#allocation26_spill] sm:$0xff] %v4324_v11 }
 0x32a   : > { %v1153_v54 = vsel %vm1137_vm5, %v4019_v43, -inf  ;;  %v1155_v58 = vsel %vm1139_vm6, %v4023_v45, -inf  ;;  %v1157_v7 = vsel %vm1141_vm7, %v4027_v47, -inf  ;;  %v1159_v10 = vsel %vm1143_vm8, %v4035_v52, -inf }
 0x32b   : > { %v1161_v14 = vsel %vm1145_vm9, %v4043_v56, -inf  ;;  %v1163_v0 = vsel %vm1147_vm10, %v4049_v60, -inf  ;;  %v1165_v36 = vsel %vm1149_vm11, %v4055_v5, -inf  ;;  %v1167_v18 = vsel %vm1151_vm12, %v4061_v9, -inf }
 0x32c   : > { %v1181_v61 = vmax.f32 %v1153_v54, %v1157_v7  ;;  %v1182_v34 = vmax.f32 %v1155_v58, %v1159_v10  ;;  %v1112_v6 = vmax.f32 %v1110_v22, %v1102_v15  ;;  %v1113_v50 = vmax.f32 %v1111_v25, %v1104_v16 }
 0x32d   : > { %v2769_v3 = vadd.f32 %v4296_v17, %v2768_v48  ;;  %v2784_v54 = vadd.f32 %v4306_v39, %v2783_v28 }
 0x32e   : > { %v1183_v49 = vmax.f32 %v1181_v61, %v1161_v14  ;;  %v1184_v29 = vmax.f32 %v1182_v34, %v1163_v0  ;;  %v1114_v62 = vmax.f32 %v1112_v6, %v1106_v19  ;;  %v1115_v2 = vmax.f32 %v1113_v50, %v1108_v20 }
 0x32f   : > { %v2770_v26 = vadd.f32 %v4300_v24, %v2769_v3  ;;  %v4341_v48 = vadd.f32 %v4312_v63, %v2784_v54 }
 0x330   : > { %v1185_v16 = vmax.f32 %v1183_v49, %v1165_v36  ;;  %v1186_v22 = vmax.f32 %v1184_v29, %v1167_v18  ;;  %v1116_v25 = vmax.f32 %v1114_v62, %v1115_v2 }
 0x331   : > { %5480 = vst [vmem:[#allocation27_spill] sm:$0xff] %v4341_v48  ;;  %v2771_v1 = vadd.f32 %v4318_v33, %v2770_v26 }
 0x332   : > { %v1187_v58 = vmax.f32 %v1185_v16, %v1186_v22  ;;  %v1117_v61 = vrot.slane %v1116_v25, 4 }
 0x333   : > { %v4345_v0 = vadd.f32 %v4324_v11, %v2771_v1 }
 0x334   : > { %v1188_v50 = vrot.slane %v1187_v58, 4  ;;  %v1118_v3 = vmax.f32 %v1116_v25, %v1117_v61 }
 0x335   : > { %5481 = vst [vmem:[#allocation28_spill] sm:$0xff] %v4345_v0 }
 0x336   : > { %v1189_v6 = vmax.f32 %v1187_v58, %v1188_v50  ;;  %v1119_v28 = vrot.slane %v1118_v3, 2 }
 0x338   : > { %v1190_v34 = vrot.slane %v1189_v6, 2  ;;  %v1120_v19 = vmax.f32 %v1118_v3, %v1119_v28 }
 0x33a   : > { %v1191_v20 = vmax.f32 %v1189_v6, %v1190_v34  ;;  %v1121_v49 = vrot.slane %v1120_v19, 1 }
 0x33c   : > { %v1192_v29 = vrot.slane %v1191_v20, 1  ;;  %v1122_v62 = vmax.f32 %v1120_v19, %v1121_v49 }
 0x33e   : > { %v1193_v2 = vmax.f32 %v1191_v20, %v1192_v29  ;;  %vm1136_vm13 = vcmp.lt.f32.partialorder %v4017_v42, %v1122_v62  ;;  %vm1138_vm14 = vcmp.lt.f32.partialorder %v4021_v44, %v1122_v62  ;;  %vm1140_vm15 = vcmp.lt.f32.partialorder %v4025_v46, %v1122_v62 }
 0x33f   : > { %vm1142_vm1 = vcmp.lt.f32.partialorder %v4033_v51, %v1122_v62  ;;  %vm1144_vm2 = vcmp.lt.f32.partialorder %v4041_v55, %v1122_v62  ;;  %vm1146_vm3 = vcmp.lt.f32.partialorder %v4047_v59, %v1122_v62  ;;  %vm1148_vm4 = vcmp.lt.f32.partialorder %v4053_v4, %v1122_v62 }
 0x340   : > { %vm1195_vm5 = vcmp.lt.f32.partialorder %v4019_v43, %v1193_v2  ;;  %vm1197_vm6 = vcmp.lt.f32.partialorder %v4023_v45, %v1193_v2  ;;  %vm1199_vm7 = vcmp.lt.f32.partialorder %v4027_v47, %v1193_v2  ;;  %vm1201_vm8 = vcmp.lt.f32.partialorder %v4035_v52, %v1193_v2 }
 0x341   : > { %vm1203_vm9 = vcmp.lt.f32.partialorder %v4043_v56, %v1193_v2  ;;  %vm1205_vm10 = vcmp.lt.f32.partialorder %v4049_v60, %v1193_v2  ;;  %vm1207_vm11 = vcmp.lt.f32.partialorder %v4055_v5, %v1193_v2  ;;  %vm1209_vm12 = vcmp.lt.f32.partialorder %v4061_v9, %v1193_v2 }
 0x342   : > { %v1211_v26 = vsel %vm1195_vm5, %v4019_v43, -inf  ;;  %v1213_v36 = vsel %vm1197_vm6, %v4023_v45, -inf  ;;  %v1215_v7 = vsel %vm1199_vm7, %v4027_v47, -inf  ;;  %v1217_v10 = vsel %vm1201_vm8, %v4035_v52, -inf }
 0x343   : > { %v1219_v14 = vsel %vm1203_vm9, %v4043_v56, -inf  ;;  %v1221_v18 = vsel %vm1205_vm10, %v4049_v60, -inf  ;;  %v1223_v54 = vsel %vm1207_vm11, %v4055_v5, -inf  ;;  %v1225_v16 = vsel %vm1209_vm12, %v4061_v9, -inf }
 0x344   : > { %v1239_v22 = vmax.f32 %v1211_v26, %v1215_v7  ;;  %v1240_v25 = vmax.f32 %v1213_v36, %v1217_v10  ;;  %vm1150_vm0 = vcmp.lt.f32.partialorder %v4059_v8, %v1122_v62  ;;  %v1152_v1 = vsel %vm1136_vm13, %v4017_v42, -inf }
 0x345   : > { %v1154_v58 = vsel %vm1138_vm14, %v4021_v44, -inf  ;;  %v1156_v61 = vsel %vm1140_vm15, %v4025_v46, -inf  ;;  %v1158_v50 = vsel %vm1142_vm1, %v4033_v51, -inf  ;;  %v1160_v3 = vsel %vm1144_vm2, %v4041_v55, -inf }
 0x346   : > { %v1241_v6 = vmax.f32 %v1239_v22, %v1219_v14  ;;  %v1242_v28 = vmax.f32 %v1240_v25, %v1221_v18  ;;  %v1162_v34 = vsel %vm1146_vm3, %v4047_v59, -inf  ;;  %v1164_v19 = vsel %vm1148_vm4, %v4053_v4, -inf }
 0x347   : > { %v1166_v20 = vsel %vm1150_vm0, %v4059_v8, -inf  ;;  %v1168_v49 = vmax.f32 %v1152_v1, %v1156_v61  ;;  %v1169_v29 = vmax.f32 %v1154_v58, %v1158_v50 }
 0x348   : > { %v1243_v2 = vmax.f32 %v1241_v6, %v1223_v54  ;;  %v1244_v26 = vmax.f32 %v1242_v28, %v1225_v16 }
 0x349   : > { %v1170_v36 = vmax.f32 %v1168_v49, %v1160_v3  ;;  %v1171_v7 = vmax.f32 %v1169_v29, %v1162_v34 }
 0x34a   : > { %v1245_v10 = vmax.f32 %v1243_v2, %v1244_v26 }
 0x34b   : > { %v1172_v15 = vmax.f32 %v1170_v36, %v1164_v19  ;;  %v1173_v14 = vmax.f32 %v1171_v7, %v1166_v20 }
 0x34c   : > { %v1246_v18 = vrot.slane %v1245_v10, 4 }
 0x34d   : > { %v1174_v22 = vmax.f32 %v1172_v15, %v1173_v14 }
 0x34e   : > { %v1247_v25 = vmax.f32 %v1245_v10, %v1246_v18 }
 0x34f   : > { %v1175_v23 = vrot.slane %v1174_v22, 4 }
 0x350   : > { %v1248_v21 = vrot.slane %v1247_v25, 2 }
 0x351   : > { %v1176_v48 = vmax.f32 %v1174_v22, %v1175_v23 }
 0x352   : > { %v1249_v0 = vmax.f32 %v1247_v25, %v1248_v21 }
 0x353   : > { %v1177_v62 = vrot.slane %v1176_v48, 2 }
 0x354   : > { %v1250_v41 = vrot.slane %v1249_v0, 1 }
 0x355   : > { %v1178_v33 = vmax.f32 %v1176_v48, %v1177_v62 }
 0x356   : > { %v1251_v11 = vmax.f32 %v1249_v0, %v1250_v41 }
 0x357   : > { %v1179_v1 = vrot.slane %v1178_v33, 1 }
 0x358   : > { %vm1253_vm0 = vcmp.lt.f32.partialorder %v4019_v43, %v1251_v11  ;;  %vm1255_vm13 = vcmp.lt.f32.partialorder %v4023_v45, %v1251_v11  ;;  %vm1257_vm14 = vcmp.lt.f32.partialorder %v4027_v47, %v1251_v11  ;;  %vm1259_vm15 = vcmp.lt.f32.partialorder %v4035_v52, %v1251_v11 }
 0x359   : > { %vm1261_vm1 = vcmp.lt.f32.partialorder %v4043_v56, %v1251_v11  ;;  %vm1263_vm2 = vcmp.lt.f32.partialorder %v4049_v60, %v1251_v11  ;;  %vm1265_vm3 = vcmp.lt.f32.partialorder %v4055_v5, %v1251_v11  ;;  %vm1267_vm4 = vcmp.lt.f32.partialorder %v4061_v9, %v1251_v11 }
 0x35a   : > { %v1269_v21 = vsel %vm1253_vm0, %v4019_v43, -inf  ;;  %v1271_v41 = vsel %vm1255_vm13, %v4023_v45, -inf  ;;  %v1273_v23 = vsel %vm1257_vm14, %v4027_v47, -inf  ;;  %v1275_v15 = vsel %vm1259_vm15, %v4035_v52, -inf }
 0x35b   : > { %v1277_v48 = vsel %vm1261_vm1, %v4043_v56, -inf  ;;  %v1279_v0 = vsel %vm1263_vm2, %v4049_v60, -inf  ;;  %v1281_v54 = vsel %vm1265_vm3, %v4055_v5, -inf  ;;  %v1283_v16 = vsel %vm1267_vm4, %v4061_v9, -inf }
 0x35c   : > { %v1297_v58 = vmax.f32 %v1269_v21, %v1273_v23  ;;  %v1298_v61 = vmax.f32 %v1271_v41, %v1275_v15  ;;  %v1180_v50 = vmax.f32 %v1178_v33, %v1179_v1 }
 0x35e   : > { %v1299_v11 = vmax.f32 %v1297_v58, %v1277_v48  ;;  %v1300_v3 = vmax.f32 %v1298_v61, %v1279_v0  ;;  %vm1194_vm5 = vcmp.lt.f32.partialorder %v4017_v42, %v1180_v50  ;;  %vm1196_vm6 = vcmp.lt.f32.partialorder %v4021_v44, %v1180_v50 }
 0x35f   : > { %vm1198_vm7 = vcmp.lt.f32.partialorder %v4025_v46, %v1180_v50  ;;  %vm1200_vm8 = vcmp.lt.f32.partialorder %v4033_v51, %v1180_v50  ;;  %vm1202_vm9 = vcmp.lt.f32.partialorder %v4041_v55, %v1180_v50  ;;  %vm1204_vm10 = vcmp.lt.f32.partialorder %v4047_v59, %v1180_v50 }
 0x360   : > { %v1301_v6 = vmax.f32 %v1299_v11, %v1281_v54  ;;  %v1302_v28 = vmax.f32 %v1300_v3, %v1283_v16  ;;  %vm1206_vm11 = vcmp.lt.f32.partialorder %v4053_v4, %v1180_v50  ;;  %vm1208_vm12 = vcmp.lt.f32.partialorder %v4059_v8, %v1180_v50 }
 0x361   : > { %v1210_v33 = vsel %vm1194_vm5, %v4017_v42, -inf  ;;  %v1212_v34 = vsel %vm1196_vm6, %v4021_v44, -inf  ;;  %v1214_v19 = vsel %vm1198_vm7, %v4025_v46, -inf  ;;  %v1216_v20 = vsel %vm1200_vm8, %v4033_v51, -inf }
 0x362   : > { %v1303_v49 = vmax.f32 %v1301_v6, %v1302_v28  ;;  %v1218_v29 = vsel %vm1202_vm9, %v4041_v55, -inf  ;;  %v1220_v2 = vsel %vm1204_vm10, %v4047_v59, -inf  ;;  %v1222_v26 = vsel %vm1206_vm11, %v4053_v4, -inf }
 0x363   : > { %v1224_v36 = vsel %vm1208_vm12, %v4059_v8, -inf  ;;  %v1226_v7 = vmax.f32 %v1210_v33, %v1214_v19  ;;  %v1227_v10 = vmax.f32 %v1212_v34, %v1216_v20 }
 0x364   : > { %v1304_v14 = vrot.slane %v1303_v49, 4 }
 0x365   : > { %v1228_v18 = vmax.f32 %v1226_v7, %v1218_v29  ;;  %v1229_v22 = vmax.f32 %v1227_v10, %v1220_v2 }
 0x366   : > { %v1305_v25 = vmax.f32 %v1303_v49, %v1304_v14 }
 0x367   : > { %v1230_v62 = vmax.f32 %v1228_v18, %v1222_v26  ;;  %v1231_v1 = vmax.f32 %v1229_v22, %v1224_v36 }
 0x368   : > { %v1306_v21 = vrot.slane %v1305_v25, 2 }
 0x369   : > { %v1232_v41 = vmax.f32 %v1230_v62, %v1231_v1 }
 0x36a   : > { %v1307_v23 = vmax.f32 %v1305_v25, %v1306_v21 }
 0x36b   : > { %v1233_v15 = vrot.slane %v1232_v41, 4 }
 0x36c   : > { %v1308_v48 = vrot.slane %v1307_v23, 1 }
 0x36d   : > { %v1234_v0 = vmax.f32 %v1232_v41, %v1233_v15 }
 0x36e   : > { %v1309_v54 = vmax.f32 %v1307_v23, %v1308_v48 }
 0x36f   : > { %v1235_v16 = vrot.slane %v1234_v0, 2 }
 0x370   : > { %vm1311_vm0 = vcmp.lt.f32.partialorder %v4019_v43, %v1309_v54  ;;  %vm1313_vm13 = vcmp.lt.f32.partialorder %v4023_v45, %v1309_v54  ;;  %vm1315_vm14 = vcmp.lt.f32.partialorder %v4027_v47, %v1309_v54  ;;  %vm1317_vm15 = vcmp.lt.f32.partialorder %v4035_v52, %v1309_v54 }
 0x371   : > { %vm1319_vm1 = vcmp.lt.f32.partialorder %v4043_v56, %v1309_v54  ;;  %vm1321_vm2 = vcmp.lt.f32.partialorder %v4049_v60, %v1309_v54  ;;  %vm1323_vm3 = vcmp.lt.f32.partialorder %v4055_v5, %v1309_v54  ;;  %vm1325_vm4 = vcmp.lt.f32.partialorder %v4061_v9, %v1309_v54 }
 0x372   : > { %v1327_v58 = vsel %vm1311_vm0, %v4019_v43, -inf  ;;  %v1329_v61 = vsel %vm1313_vm13, %v4023_v45, -inf  ;;  %v1331_v50 = vsel %vm1315_vm14, %v4027_v47, -inf  ;;  %v1333_v11 = vsel %vm1317_vm15, %v4035_v52, -inf }
 0x373   : > { %v1335_v3 = vsel %vm1319_vm1, %v4043_v56, -inf  ;;  %v1337_v6 = vsel %vm1321_vm2, %v4049_v60, -inf  ;;  %v1339_v28 = vsel %vm1323_vm3, %v4055_v5, -inf  ;;  %v1341_v33 = vsel %vm1325_vm4, %v4061_v9, -inf }
 0x374   : > { %v1355_v34 = vmax.f32 %v1327_v58, %v1331_v50  ;;  %v1356_v19 = vmax.f32 %v1329_v61, %v1333_v11  ;;  %v1236_v20 = vmax.f32 %v1234_v0, %v1235_v16 }
 0x376   : > { %v1357_v49 = vmax.f32 %v1355_v34, %v1335_v3  ;;  %v1358_v29 = vmax.f32 %v1356_v19, %v1337_v6  ;;  %v1237_v2 = vrot.slane %v1236_v20, 1 }
 0x378   : > { %v1359_v26 = vmax.f32 %v1357_v49, %v1339_v28  ;;  %v1360_v36 = vmax.f32 %v1358_v29, %v1341_v33  ;;  %v1238_v7 = vmax.f32 %v1236_v20, %v1237_v2 }
 0x37a   : > { %v1361_v10 = vmax.f32 %v1359_v26, %v1360_v36  ;;  %vm1252_vm5 = vcmp.lt.f32.partialorder %v4017_v42, %v1238_v7  ;;  %vm1254_vm6 = vcmp.lt.f32.partialorder %v4021_v44, %v1238_v7  ;;  %vm1256_vm7 = vcmp.lt.f32.partialorder %v4025_v46, %v1238_v7 }
 0x37b   : > { %vm1258_vm8 = vcmp.lt.f32.partialorder %v4033_v51, %v1238_v7  ;;  %vm1260_vm9 = vcmp.lt.f32.partialorder %v4041_v55, %v1238_v7  ;;  %vm1262_vm10 = vcmp.lt.f32.partialorder %v4047_v59, %v1238_v7  ;;  %vm1264_vm11 = vcmp.lt.f32.partialorder %v4053_v4, %v1238_v7 }
 0x37c   : > { %v1362_v14 = vrot.slane %v1361_v10, 4  ;;  %vm1266_vm12 = vcmp.lt.f32.partialorder %v4059_v8, %v1238_v7  ;;  %v1268_v18 = vsel %vm1252_vm5, %v4017_v42, -inf  ;;  %v1270_v22 = vsel %vm1254_vm6, %v4021_v44, -inf }
 0x37d   : > { %v1272_v25 = vsel %vm1256_vm7, %v4025_v46, -inf  ;;  %v1274_v62 = vsel %vm1258_vm8, %v4033_v51, -inf  ;;  %v1276_v1 = vsel %vm1260_vm9, %v4041_v55, -inf  ;;  %v1278_v21 = vsel %vm1262_vm10, %v4047_v59, -inf }
 0x37e   : > { %v1363_v41 = vmax.f32 %v1361_v10, %v1362_v14  ;;  %v1280_v23 = vsel %vm1264_vm11, %v4053_v4, -inf  ;;  %v1282_v15 = vsel %vm1266_vm12, %v4059_v8, -inf  ;;  %v1284_v48 = vmax.f32 %v1268_v18, %v1272_v25 }
 0x37f   : > { %v1285_v0 = vmax.f32 %v1270_v22, %v1274_v62 }
 0x380   : > { %v1364_v54 = vrot.slane %v1363_v41, 2  ;;  %v1286_v16 = vmax.f32 %v1284_v48, %v1276_v1 }
 0x381   : > { %v1287_v58 = vmax.f32 %v1285_v0, %v1278_v21 }
 0x382   : > { %v1365_v61 = vmax.f32 %v1363_v41, %v1364_v54  ;;  %v1288_v50 = vmax.f32 %v1286_v16, %v1280_v23 }
 0x383   : > { %v1289_v11 = vmax.f32 %v1287_v58, %v1282_v15 }
 0x384   : > { %v1366_v3 = vrot.slane %v1365_v61, 1 }
 0x385   : > { %v1290_v6 = vmax.f32 %v1288_v50, %v1289_v11 }
 0x386   : > { %v1367_v28 = vmax.f32 %v1365_v61, %v1366_v3 }
 0x387   : > { %v1291_v33 = vrot.slane %v1290_v6, 4 }
 0x388   : > { %vm1369_vm0 = vcmp.lt.f32.partialorder %v4019_v43, %v1367_v28  ;;  %vm1371_vm13 = vcmp.lt.f32.partialorder %v4023_v45, %v1367_v28  ;;  %vm1373_vm14 = vcmp.lt.f32.partialorder %v4027_v47, %v1367_v28  ;;  %vm1375_vm15 = vcmp.lt.f32.partialorder %v4035_v52, %v1367_v28 }
 0x389   : > { %vm1377_vm1 = vcmp.lt.f32.partialorder %v4043_v56, %v1367_v28  ;;  %vm1379_vm2 = vcmp.lt.f32.partialorder %v4049_v60, %v1367_v28  ;;  %vm1381_vm3 = vcmp.lt.f32.partialorder %v4055_v5, %v1367_v28  ;;  %vm1383_vm4 = vcmp.lt.f32.partialorder %v4061_v9, %v1367_v28 }
 0x38a   : > { %v1385_v34 = vsel %vm1369_vm0, %v4019_v43, -inf  ;;  %v1387_v19 = vsel %vm1371_vm13, %v4023_v45, -inf  ;;  %v1389_v20 = vsel %vm1373_vm14, %v4027_v47, -inf  ;;  %v1391_v49 = vsel %vm1375_vm15, %v4035_v52, -inf }
 0x38b   : > { %v1393_v29 = vsel %vm1377_vm1, %v4043_v56, -inf  ;;  %v1395_v2 = vsel %vm1379_vm2, %v4049_v60, -inf  ;;  %v1397_v26 = vsel %vm1381_vm3, %v4055_v5, -inf  ;;  %v1399_v36 = vsel %vm1383_vm4, %v4061_v9, -inf }
 0x38c   : > { %v1413_v7 = vmax.f32 %v1385_v34, %v1389_v20  ;;  %v1414_v10 = vmax.f32 %v1387_v19, %v1391_v49  ;;  %v1292_v14 = vmax.f32 %v1290_v6, %v1291_v33 }
 0x38e   : > { %v1415_v18 = vmax.f32 %v1413_v7, %v1393_v29  ;;  %v1416_v22 = vmax.f32 %v1414_v10, %v1395_v2  ;;  %v1293_v25 = vrot.slane %v1292_v14, 2 }
 0x390   : > { %v1417_v62 = vmax.f32 %v1415_v18, %v1397_v26  ;;  %v1418_v1 = vmax.f32 %v1416_v22, %v1399_v36  ;;  %v1294_v21 = vmax.f32 %v1292_v14, %v1293_v25 }
 0x392   : > { %v1419_v41 = vmax.f32 %v1417_v62, %v1418_v1  ;;  %v1295_v23 = vrot.slane %v1294_v21, 1 }
 0x394   : > { %v1420_v15 = vrot.slane %v1419_v41, 4  ;;  %v1296_v48 = vmax.f32 %v1294_v21, %v1295_v23 }
 0x396   : > { %v1421_v0 = vmax.f32 %v1419_v41, %v1420_v15  ;;  %vm1310_vm5 = vcmp.lt.f32.partialorder %v4017_v42, %v1296_v48  ;;  %vm1312_vm6 = vcmp.lt.f32.partialorder %v4021_v44, %v1296_v48  ;;  %vm1314_vm7 = vcmp.lt.f32.partialorder %v4025_v46, %v1296_v48 }
 0x397   : > { %vm1316_vm8 = vcmp.lt.f32.partialorder %v4033_v51, %v1296_v48  ;;  %vm1318_vm9 = vcmp.lt.f32.partialorder %v4041_v55, %v1296_v48  ;;  %vm1320_vm10 = vcmp.lt.f32.partialorder %v4047_v59, %v1296_v48  ;;  %vm1322_vm11 = vcmp.lt.f32.partialorder %v4053_v4, %v1296_v48 }
 0x398   : > { %v1422_v54 = vrot.slane %v1421_v0, 2  ;;  %vm1324_vm12 = vcmp.lt.f32.partialorder %v4059_v8, %v1296_v48  ;;  %v1326_v16 = vsel %vm1310_vm5, %v4017_v42, -inf  ;;  %v1328_v58 = vsel %vm1312_vm6, %v4021_v44, -inf }
 0x399   : > { %v1330_v61 = vsel %vm1314_vm7, %v4025_v46, -inf  ;;  %v1332_v50 = vsel %vm1316_vm8, %v4033_v51, -inf  ;;  %v1334_v11 = vsel %vm1318_vm9, %v4041_v55, -inf  ;;  %v1336_v3 = vsel %vm1320_vm10, %v4047_v59, -inf }
 0x39a   : > { %v1423_v6 = vmax.f32 %v1421_v0, %v1422_v54  ;;  %v1338_v28 = vsel %vm1322_vm11, %v4053_v4, -inf  ;;  %v1340_v33 = vsel %vm1324_vm12, %v4059_v8, -inf  ;;  %v1342_v34 = vmax.f32 %v1326_v16, %v1330_v61 }
 0x39b   : > { %v1343_v19 = vmax.f32 %v1328_v58, %v1332_v50 }
 0x39c   : > { %v1424_v20 = vrot.slane %v1423_v6, 1  ;;  %v1344_v49 = vmax.f32 %v1342_v34, %v1334_v11 }
 0x39d   : > { %v1345_v29 = vmax.f32 %v1343_v19, %v1336_v3 }
 0x39e   : > { %v1425_v2 = vmax.f32 %v1423_v6, %v1424_v20  ;;  %v1346_v26 = vmax.f32 %v1344_v49, %v1338_v28 }
 0x39f   : > { %v1347_v36 = vmax.f32 %v1345_v29, %v1340_v33 }
 0x3a0   : > { %vm1427_vm0 = vcmp.lt.f32.partialorder %v4019_v43, %v1425_v2  ;;  %vm1429_vm13 = vcmp.lt.f32.partialorder %v4023_v45, %v1425_v2  ;;  %vm1431_vm14 = vcmp.lt.f32.partialorder %v4027_v47, %v1425_v2  ;;  %vm1433_vm15 = vcmp.lt.f32.partialorder %v4035_v52, %v1425_v2 }
 0x3a1   : > { %vm1435_vm1 = vcmp.lt.f32.partialorder %v4043_v56, %v1425_v2  ;;  %vm1437_vm2 = vcmp.lt.f32.partialorder %v4049_v60, %v1425_v2  ;;  %vm1439_vm3 = vcmp.lt.f32.partialorder %v4055_v5, %v1425_v2  ;;  %vm1441_vm4 = vcmp.lt.f32.partialorder %v4061_v9, %v1425_v2 }
 0x3a2   : > { %v1443_v7 = vsel %vm1427_vm0, %v4019_v43, -inf  ;;  %v1445_v10 = vsel %vm1429_vm13, %v4023_v45, -inf  ;;  %v1447_v14 = vsel %vm1431_vm14, %v4027_v47, -inf  ;;  %v1449_v18 = vsel %vm1433_vm15, %v4035_v52, -inf }
 0x3a3   : > { %v1451_v22 = vsel %vm1435_vm1, %v4043_v56, -inf  ;;  %v1453_v25 = vsel %vm1437_vm2, %v4049_v60, -inf  ;;  %v1455_v62 = vsel %vm1439_vm3, %v4055_v5, -inf  ;;  %v1457_v1 = vsel %vm1441_vm4, %v4061_v9, -inf }
 0x3a4   : > { %v1471_v21 = vmax.f32 %v1443_v7, %v1447_v14  ;;  %v1472_v41 = vmax.f32 %v1445_v10, %v1449_v18  ;;  %v1348_v23 = vmax.f32 %v1346_v26, %v1347_v36 }
 0x3a6   : > { %v1473_v15 = vmax.f32 %v1471_v21, %v1451_v22  ;;  %v1474_v48 = vmax.f32 %v1472_v41, %v1453_v25  ;;  %v1349_v0 = vrot.slane %v1348_v23, 4 }
 0x3a8   : > { %v1475_v54 = vmax.f32 %v1473_v15, %v1455_v62  ;;  %v1476_v16 = vmax.f32 %v1474_v48, %v1457_v1  ;;  %v1350_v58 = vmax.f32 %v1348_v23, %v1349_v0 }
 0x3aa   : > { %v1477_v61 = vmax.f32 %v1475_v54, %v1476_v16  ;;  %v1351_v50 = vrot.slane %v1350_v58, 2 }
 0x3ac   : > { %v1478_v11 = vrot.slane %v1477_v61, 4  ;;  %v1352_v3 = vmax.f32 %v1350_v58, %v1351_v50 }
 0x3ae   : > { %v1479_v6 = vmax.f32 %v1477_v61, %v1478_v11  ;;  %v1353_v28 = vrot.slane %v1352_v3, 1 }
 0x3b0   : > { %v1480_v33 = vrot.slane %v1479_v6, 2  ;;  %v1354_v34 = vmax.f32 %v1352_v3, %v1353_v28 }
 0x3b2   : > { %v1481_v19 = vmax.f32 %v1479_v6, %v1480_v33  ;;  %vm1368_vm5 = vcmp.lt.f32.partialorder %v4017_v42, %v1354_v34  ;;  %vm1370_vm6 = vcmp.lt.f32.partialorder %v4021_v44, %v1354_v34  ;;  %vm1372_vm7 = vcmp.lt.f32.partialorder %v4025_v46, %v1354_v34 }
 0x3b3   : > { %vm1374_vm8 = vcmp.lt.f32.partialorder %v4033_v51, %v1354_v34  ;;  %vm1376_vm9 = vcmp.lt.f32.partialorder %v4041_v55, %v1354_v34  ;;  %vm1378_vm10 = vcmp.lt.f32.partialorder %v4047_v59, %v1354_v34  ;;  %vm1380_vm11 = vcmp.lt.f32.partialorder %v4053_v4, %v1354_v34 }
 0x3b4   : > { %v1482_v20 = vrot.slane %v1481_v19, 1  ;;  %vm1382_vm12 = vcmp.lt.f32.partialorder %v4059_v8, %v1354_v34  ;;  %v1384_v49 = vsel %vm1368_vm5, %v4017_v42, -inf  ;;  %v1386_v29 = vsel %vm1370_vm6, %v4021_v44, -inf }
 0x3b5   : > { %v1388_v2 = vsel %vm1372_vm7, %v4025_v46, -inf  ;;  %v1390_v26 = vsel %vm1374_vm8, %v4033_v51, -inf  ;;  %v1392_v36 = vsel %vm1376_vm9, %v4041_v55, -inf  ;;  %v1394_v7 = vsel %vm1378_vm10, %v4047_v59, -inf }
 0x3b6   : > { %v1483_v10 = vmax.f32 %v1481_v19, %v1482_v20  ;;  %v1396_v14 = vsel %vm1380_vm11, %v4053_v4, -inf  ;;  %v1398_v18 = vsel %vm1382_vm12, %v4059_v8, -inf  ;;  %v1400_v22 = vmax.f32 %v1384_v49, %v1388_v2 }
 0x3b7   : > { %v1401_v25 = vmax.f32 %v1386_v29, %v1390_v26 }
 0x3b8   : > { %vm1485_vm0 = vcmp.lt.f32.partialorder %v4019_v43, %v1483_v10  ;;  %vm1487_vm13 = vcmp.lt.f32.partialorder %v4023_v45, %v1483_v10  ;;  %vm1489_vm14 = vcmp.lt.f32.partialorder %v4027_v47, %v1483_v10  ;;  %vm1491_vm15 = vcmp.lt.f32.partialorder %v4035_v52, %v1483_v10 }
 0x3b9   : > { %vm1493_vm1 = vcmp.lt.f32.partialorder %v4043_v56, %v1483_v10  ;;  %vm1495_vm2 = vcmp.lt.f32.partialorder %v4049_v60, %v1483_v10  ;;  %vm1497_vm3 = vcmp.lt.f32.partialorder %v4055_v5, %v1483_v10  ;;  %vm1499_vm4 = vcmp.lt.f32.partialorder %v4061_v9, %v1483_v10 }
 0x3ba   : > { %v1501_v62 = vsel %vm1485_vm0, %v4019_v43, -inf  ;;  %v1503_v1 = vsel %vm1487_vm13, %v4023_v45, -inf  ;;  %v1505_v21 = vsel %vm1489_vm14, %v4027_v47, -inf  ;;  %v1507_v41 = vsel %vm1491_vm15, %v4035_v52, -inf }
 0x3bb   : > { %v1509_v23 = vsel %vm1493_vm1, %v4043_v56, -inf  ;;  %v1511_v15 = vsel %vm1495_vm2, %v4049_v60, -inf  ;;  %v1513_v48 = vsel %vm1497_vm3, %v4055_v5, -inf  ;;  %v1515_v0 = vsel %vm1499_vm4, %v4061_v9, -inf }
 0x3bc   : > { %v1529_v54 = vmax.f32 %v1501_v62, %v1505_v21  ;;  %v1530_v16 = vmax.f32 %v1503_v1, %v1507_v41  ;;  %v1402_v58 = vmax.f32 %v1400_v22, %v1392_v36  ;;  %v1403_v61 = vmax.f32 %v1401_v25, %v1394_v7 }
 0x3be   : > { %v1531_v50 = vmax.f32 %v1529_v54, %v1509_v23  ;;  %v1532_v11 = vmax.f32 %v1530_v16, %v1511_v15  ;;  %v1404_v3 = vmax.f32 %v1402_v58, %v1396_v14  ;;  %v1405_v6 = vmax.f32 %v1403_v61, %v1398_v18 }
 0x3c0   : > { %v1533_v28 = vmax.f32 %v1531_v50, %v1513_v48  ;;  %v1534_v33 = vmax.f32 %v1532_v11, %v1515_v0  ;;  %v1406_v34 = vmax.f32 %v1404_v3, %v1405_v6 }
 0x3c2   : > { %v1535_v19 = vmax.f32 %v1533_v28, %v1534_v33  ;;  %v1407_v20 = vrot.slane %v1406_v34, 4 }
 0x3c4   : > { %v1536_v49 = vrot.slane %v1535_v19, 4  ;;  %v1408_v29 = vmax.f32 %v1406_v34, %v1407_v20 }
 0x3c6   : > { %v1537_v2 = vmax.f32 %v1535_v19, %v1536_v49  ;;  %v1409_v26 = vrot.slane %v1408_v29, 2 }
 0x3c8   : > { %v1538_v10 = vrot.slane %v1537_v2, 2  ;;  %v1410_v39 = vmax.f32 %v1408_v29, %v1409_v26 }
 0x3ca   : > { %v1539_v63 = vmax.f32 %v1537_v2, %v1538_v10  ;;  %v1411_v62 = vrot.slane %v1410_v39, 1 }
 0x3cc   : > { %v1540_v1 = vrot.slane %v1539_v63, 1  ;;  %v1412_v36 = vmax.f32 %v1410_v39, %v1411_v62 }
 0x3ce   : > { %v1541_v7 = vmax.f32 %v1539_v63, %v1540_v1  ;;  %vm1426_vm5 = vcmp.lt.f32.partialorder %v4017_v42, %v1412_v36  ;;  %vm1428_vm6 = vcmp.lt.f32.partialorder %v4021_v44, %v1412_v36  ;;  %vm1430_vm7 = vcmp.lt.f32.partialorder %v4025_v46, %v1412_v36 }
 0x3cf   : > { %vm1432_vm8 = vcmp.lt.f32.partialorder %v4033_v51, %v1412_v36  ;;  %vm1434_vm9 = vcmp.lt.f32.partialorder %v4041_v55, %v1412_v36  ;;  %vm1436_vm10 = vcmp.lt.f32.partialorder %v4047_v59, %v1412_v36  ;;  %vm1438_vm11 = vcmp.lt.f32.partialorder %v4053_v4, %v1412_v36 }
 0x3d0   : > { %vm1543_vm12 = vcmp.lt.f32.partialorder %v4019_v43, %v1541_v7  ;;  %vm1545_vm0 = vcmp.lt.f32.partialorder %v4023_v45, %v1541_v7  ;;  %vm1547_vm13 = vcmp.lt.f32.partialorder %v4027_v47, %v1541_v7  ;;  %vm1549_vm14 = vcmp.lt.f32.partialorder %v4035_v52, %v1541_v7 }
 0x3d1   : > { %vm1551_vm15 = vcmp.lt.f32.partialorder %v4043_v56, %v1541_v7  ;;  %vm1553_vm1 = vcmp.lt.f32.partialorder %v4049_v60, %v1541_v7  ;;  %vm1555_vm2 = vcmp.lt.f32.partialorder %v4055_v5, %v1541_v7  ;;  %vm1557_vm3 = vcmp.lt.f32.partialorder %v4061_v9, %v1541_v7 }
 0x3d2   : > { %v1559_v39 = vsel %vm1543_vm12, %v4019_v43, -inf  ;;  %v1561_v63 = vsel %vm1545_vm0, %v4023_v45, -inf  ;;  %v1563_v14 = vsel %vm1547_vm13, %v4027_v47, -inf  ;;  %v1565_v18 = vsel %vm1549_vm14, %v4035_v52, -inf }
 0x3d3   : > { %v1567_v22 = vsel %vm1551_vm15, %v4043_v56, -inf  ;;  %v1569_v25 = vsel %vm1553_vm1, %v4049_v60, -inf  ;;  %v1571_v21 = vsel %vm1555_vm2, %v4055_v5, -inf  ;;  %v1573_v41 = vsel %vm1557_vm3, %v4061_v9, -inf }
 0x3d4   : > { %v1587_v23 = vmax.f32 %v1559_v39, %v1563_v14  ;;  %v1588_v15 = vmax.f32 %v1561_v63, %v1565_v18  ;;  %vm1440_vm4 = vcmp.lt.f32.partialorder %v4059_v8, %v1412_v36  ;;  %v1442_v48 = vsel %vm1426_vm5, %v4017_v42, -inf }
 0x3d5   : > { %v1444_v0 = vsel %vm1428_vm6, %v4021_v44, -inf  ;;  %v1446_v54 = vsel %vm1430_vm7, %v4025_v46, -inf  ;;  %v1448_v16 = vsel %vm1432_vm8, %v4033_v51, -inf  ;;  %v1450_v58 = vsel %vm1434_vm9, %v4041_v55, -inf }
 0x3d6   : > { %v1589_v61 = vmax.f32 %v1587_v23, %v1567_v22  ;;  %v1590_v50 = vmax.f32 %v1588_v15, %v1569_v25  ;;  %v1452_v11 = vsel %vm1436_vm10, %v4047_v59, -inf  ;;  %v1454_v3 = vsel %vm1438_vm11, %v4053_v4, -inf }
 0x3d7   : > { %v1456_v6 = vsel %vm1440_vm4, %v4059_v8, -inf  ;;  %v1458_v28 = vmax.f32 %v1442_v48, %v1446_v54  ;;  %v1459_v33 = vmax.f32 %v1444_v0, %v1448_v16 }
 0x3d8   : > { %v1591_v34 = vmax.f32 %v1589_v61, %v1571_v21  ;;  %v1592_v19 = vmax.f32 %v1590_v50, %v1573_v41 }
 0x3d9   : > { %v1460_v20 = vmax.f32 %v1458_v28, %v1450_v58  ;;  %v1461_v49 = vmax.f32 %v1459_v33, %v1452_v11 }
 0x3da   : > { %v1593_v29 = vmax.f32 %v1591_v34, %v1592_v19 }
 0x3db   : > { %v1462_v2 = vmax.f32 %v1460_v20, %v1454_v3  ;;  %v1463_v26 = vmax.f32 %v1461_v49, %v1456_v6 }
 0x3dc   : > { %v1594_v10 = vrot.slane %v1593_v29, 4 }
 0x3dd   : > { %v1464_v62 = vmax.f32 %v1462_v2, %v1463_v26 }
 0x3de   : > { %v1595_v1 = vmax.f32 %v1593_v29, %v1594_v10 }
 0x3df   : > { %v1465_v7 = vrot.slane %v1464_v62, 4 }
 0x3e0   : > { %v1596_v39 = vrot.slane %v1595_v1, 2 }
 0x3e1   : > { %v1466_v63 = vmax.f32 %v1464_v62, %v1465_v7 }
 0x3e2   : > { %v1597_v14 = vmax.f32 %v1595_v1, %v1596_v39 }
 0x3e3   : > { %v1467_v36 = vrot.slane %v1466_v63, 2 }
 0x3e4   : > { %v1598_v18 = vrot.slane %v1597_v14, 1 }
 0x3e5   : > { %v1468_v22 = vmax.f32 %v1466_v63, %v1467_v36 }
 0x3e6   : > { %v1599_v25 = vmax.f32 %v1597_v14, %v1598_v18 }
 0x3e7   : > { %v1469_v23 = vrot.slane %v1468_v22, 1 }
 0x3e8   : > { %vm1601_vm5 = vcmp.lt.f32.partialorder %v4019_v43, %v1599_v25  ;;  %vm1603_vm6 = vcmp.lt.f32.partialorder %v4023_v45, %v1599_v25  ;;  %vm1605_vm7 = vcmp.lt.f32.partialorder %v4027_v47, %v1599_v25  ;;  %vm1607_vm8 = vcmp.lt.f32.partialorder %v4035_v52, %v1599_v25 }
 0x3e9   : > { %vm1609_vm9 = vcmp.lt.f32.partialorder %v4043_v56, %v1599_v25  ;;  %vm1611_vm10 = vcmp.lt.f32.partialorder %v4049_v60, %v1599_v25  ;;  %vm1613_vm11 = vcmp.lt.f32.partialorder %v4055_v5, %v1599_v25  ;;  %vm1615_vm12 = vcmp.lt.f32.partialorder %v4061_v9, %v1599_v25 }
 0x3ea   : > { %v1617_v21 = vsel %vm1601_vm5, %v4019_v43, -inf  ;;  %v1619_v41 = vsel %vm1603_vm6, %v4023_v45, -inf  ;;  %v1621_v15 = vsel %vm1605_vm7, %v4027_v47, -inf  ;;  %v1623_v48 = vsel %vm1607_vm8, %v4035_v52, -inf }
 0x3eb   : > { %v1625_v0 = vsel %vm1609_vm9, %v4043_v56, -inf  ;;  %v1627_v54 = vsel %vm1611_vm10, %v4049_v60, -inf  ;;  %v1629_v16 = vsel %vm1613_vm11, %v4055_v5, -inf  ;;  %v1631_v58 = vsel %vm1615_vm12, %v4061_v9, -inf }
 0x3ec   : > { %v1645_v61 = vmax.f32 %v1617_v21, %v1621_v15  ;;  %v1646_v50 = vmax.f32 %v1619_v41, %v1623_v48  ;;  %v1470_v11 = vmax.f32 %v1468_v22, %v1469_v23 }
 0x3ee   : > { %v1647_v3 = vmax.f32 %v1645_v61, %v1625_v0  ;;  %v1648_v6 = vmax.f32 %v1646_v50, %v1627_v54  ;;  %vm1484_vm0 = vcmp.lt.f32.partialorder %v4017_v42, %v1470_v11  ;;  %vm1486_vm13 = vcmp.lt.f32.partialorder %v4021_v44, %v1470_v11 }
 0x3ef   : > { %vm1488_vm14 = vcmp.lt.f32.partialorder %v4025_v46, %v1470_v11  ;;  %vm1490_vm15 = vcmp.lt.f32.partialorder %v4033_v51, %v1470_v11  ;;  %vm1492_vm1 = vcmp.lt.f32.partialorder %v4041_v55, %v1470_v11  ;;  %vm1494_vm2 = vcmp.lt.f32.partialorder %v4047_v59, %v1470_v11 }
 0x3f0   : > { %v1649_v28 = vmax.f32 %v1647_v3, %v1629_v16  ;;  %v1650_v33 = vmax.f32 %v1648_v6, %v1631_v58  ;;  %vm1496_vm3 = vcmp.lt.f32.partialorder %v4053_v4, %v1470_v11  ;;  %vm1498_vm4 = vcmp.lt.f32.partialorder %v4059_v8, %v1470_v11 }
 0x3f1   : > { %v1500_v34 = vsel %vm1484_vm0, %v4017_v42, -inf  ;;  %v1502_v19 = vsel %vm1486_vm13, %v4021_v44, -inf  ;;  %v1504_v20 = vsel %vm1488_vm14, %v4025_v46, -inf  ;;  %v1506_v49 = vsel %vm1490_vm15, %v4033_v51, -inf }
 0x3f2   : > { %v1651_v29 = vmax.f32 %v1649_v28, %v1650_v33  ;;  %v1508_v2 = vsel %vm1492_vm1, %v4041_v55, -inf  ;;  %v1510_v26 = vsel %vm1494_vm2, %v4047_v59, -inf  ;;  %v1512_v10 = vsel %vm1496_vm3, %v4053_v4, -inf }
 0x3f3   : > { %v1514_v62 = vsel %vm1498_vm4, %v4059_v8, -inf  ;;  %v1516_v1 = vmax.f32 %v1500_v34, %v1504_v20  ;;  %v1517_v7 = vmax.f32 %v1502_v19, %v1506_v49 }
 0x3f4   : > { %v1652_v39 = vrot.slane %v1651_v29, 4 }
 0x3f5   : > { %v1518_v63 = vmax.f32 %v1516_v1, %v1508_v2  ;;  %v1519_v14 = vmax.f32 %v1517_v7, %v1510_v26 }
 0x3f6   : > { %v1653_v36 = vmax.f32 %v1651_v29, %v1652_v39 }
 0x3f7   : > { %v1520_v18 = vmax.f32 %v1518_v63, %v1512_v10  ;;  %v1521_v22 = vmax.f32 %v1519_v14, %v1514_v62 }
 0x3f8   : > { %v1654_v25 = vrot.slane %v1653_v36, 2 }
 0x3f9   : > { %v1522_v23 = vmax.f32 %v1520_v18, %v1521_v22 }
 0x3fa   : > { %v1655_v21 = vmax.f32 %v1653_v36, %v1654_v25 }
 0x3fb   : > { %v1523_v41 = vrot.slane %v1522_v23, 4 }
 0x3fc   : > { %v1656_v15 = vrot.slane %v1655_v21, 1 }
 0x3fd   : > { %v1524_v48 = vmax.f32 %v1522_v23, %v1523_v41 }
 0x3fe   : > { %v1657_v0 = vmax.f32 %v1655_v21, %v1656_v15 }
 0x3ff   : > { %v1525_v54 = vrot.slane %v1524_v48, 2 }
 0x400   : > { %vm1659_vm5 = vcmp.lt.f32.partialorder %v4019_v43, %v1657_v0  ;;  %vm1661_vm6 = vcmp.lt.f32.partialorder %v4023_v45, %v1657_v0  ;;  %vm1663_vm7 = vcmp.lt.f32.partialorder %v4027_v47, %v1657_v0  ;;  %vm1665_vm8 = vcmp.lt.f32.partialorder %v4035_v52, %v1657_v0 }
 0x401   : > { %vm1667_vm9 = vcmp.lt.f32.partialorder %v4043_v56, %v1657_v0  ;;  %vm1669_vm10 = vcmp.lt.f32.partialorder %v4049_v60, %v1657_v0  ;;  %vm1671_vm11 = vcmp.lt.f32.partialorder %v4055_v5, %v1657_v0  ;;  %vm1673_vm12 = vcmp.lt.f32.partialorder %v4061_v9, %v1657_v0 }
 0x402   : > { %v1675_v16 = vsel %vm1659_vm5, %v4019_v43, -inf  ;;  %v1677_v58 = vsel %vm1661_vm6, %v4023_v45, -inf  ;;  %v1679_v61 = vsel %vm1663_vm7, %v4027_v47, -inf  ;;  %v1681_v50 = vsel %vm1665_vm8, %v4035_v52, -inf }
 0x403   : > { %v1683_v11 = vsel %vm1667_vm9, %v4043_v56, -inf  ;;  %v1685_v3 = vsel %vm1669_vm10, %v4049_v60, -inf  ;;  %v1687_v6 = vsel %vm1671_vm11, %v4055_v5, -inf  ;;  %v1689_v28 = vsel %vm1673_vm12, %v4061_v9, -inf }
 0x404   : > { %v1703_v33 = vmax.f32 %v1675_v16, %v1679_v61  ;;  %v1704_v34 = vmax.f32 %v1677_v58, %v1681_v50  ;;  %v1526_v19 = vmax.f32 %v1524_v48, %v1525_v54 }
 0x406   : > { %v1705_v20 = vmax.f32 %v1703_v33, %v1683_v11  ;;  %v1706_v49 = vmax.f32 %v1704_v34, %v1685_v3  ;;  %v1527_v29 = vrot.slane %v1526_v19, 1 }
 0x408   : > { %v1707_v2 = vmax.f32 %v1705_v20, %v1687_v6  ;;  %v1708_v26 = vmax.f32 %v1706_v49, %v1689_v28  ;;  %v1528_v10 = vmax.f32 %v1526_v19, %v1527_v29 }
 0x40a   : > { %v1709_v62 = vmax.f32 %v1707_v2, %v1708_v26  ;;  %vm1542_vm0 = vcmp.lt.f32.partialorder %v4017_v42, %v1528_v10  ;;  %vm1544_vm13 = vcmp.lt.f32.partialorder %v4021_v44, %v1528_v10  ;;  %vm1546_vm14 = vcmp.lt.f32.partialorder %v4025_v46, %v1528_v10 }
 0x40b   : > { %vm1548_vm15 = vcmp.lt.f32.partialorder %v4033_v51, %v1528_v10  ;;  %vm1550_vm1 = vcmp.lt.f32.partialorder %v4041_v55, %v1528_v10  ;;  %vm1552_vm2 = vcmp.lt.f32.partialorder %v4047_v59, %v1528_v10  ;;  %vm1554_vm3 = vcmp.lt.f32.partialorder %v4053_v4, %v1528_v10 }
 0x40c   : > { %v1710_v1 = vrot.slane %v1709_v62, 4  ;;  %vm1556_vm4 = vcmp.lt.f32.partialorder %v4059_v8, %v1528_v10  ;;  %v1558_v7 = vsel %vm1542_vm0, %v4017_v42, -inf  ;;  %v1560_v39 = vsel %vm1544_vm13, %v4021_v44, -inf }
 0x40d   : > { %v1562_v63 = vsel %vm1546_vm14, %v4025_v46, -inf  ;;  %v1564_v14 = vsel %vm1548_vm15, %v4033_v51, -inf  ;;  %v1566_v36 = vsel %vm1550_vm1, %v4041_v55, -inf  ;;  %v1568_v18 = vsel %vm1552_vm2, %v4047_v59, -inf }
 0x40e   : > { %v1711_v22 = vmax.f32 %v1709_v62, %v1710_v1  ;;  %v1570_v25 = vsel %vm1554_vm3, %v4053_v4, -inf  ;;  %v1572_v23 = vsel %vm1556_vm4, %v4059_v8, -inf  ;;  %v1574_v21 = vmax.f32 %v1558_v7, %v1562_v63 }
 0x40f   : > { %v1575_v41 = vmax.f32 %v1560_v39, %v1564_v14 }
 0x410   : > { %v1712_v15 = vrot.slane %v1711_v22, 2  ;;  %v1576_v48 = vmax.f32 %v1574_v21, %v1566_v36 }
 0x411   : > { %v1577_v0 = vmax.f32 %v1575_v41, %v1568_v18 }
 0x412   : > { %v1713_v54 = vmax.f32 %v1711_v22, %v1712_v15  ;;  %v1578_v16 = vmax.f32 %v1576_v48, %v1570_v25 }
 0x413   : > { %v1579_v58 = vmax.f32 %v1577_v0, %v1572_v23 }
 0x414   : > { %v1714_v61 = vrot.slane %v1713_v54, 1 }
 0x415   : > { %v1580_v50 = vmax.f32 %v1578_v16, %v1579_v58 }
 0x416   : > { %v1715_v11 = vmax.f32 %v1713_v54, %v1714_v61 }
 0x417   : > { %v1581_v3 = vrot.slane %v1580_v50, 4 }
 0x418   : > { %vm1717_vm5 = vcmp.lt.f32.partialorder %v4019_v43, %v1715_v11  ;;  %vm1719_vm6 = vcmp.lt.f32.partialorder %v4023_v45, %v1715_v11  ;;  %vm1721_vm7 = vcmp.lt.f32.partialorder %v4027_v47, %v1715_v11  ;;  %vm1723_vm8 = vcmp.lt.f32.partialorder %v4035_v52, %v1715_v11 }
 0x419   : > { %vm1725_vm9 = vcmp.lt.f32.partialorder %v4043_v56, %v1715_v11  ;;  %vm1727_vm10 = vcmp.lt.f32.partialorder %v4049_v60, %v1715_v11  ;;  %vm1729_vm11 = vcmp.lt.f32.partialorder %v4055_v5, %v1715_v11  ;;  %vm1731_vm12 = vcmp.lt.f32.partialorder %v4061_v9, %v1715_v11 }
 0x41a   : > { %v1733_v6 = vsel %vm1717_vm5, %v4019_v43, -inf  ;;  %v1735_v28 = vsel %vm1719_vm6, %v4023_v45, -inf  ;;  %v1737_v33 = vsel %vm1721_vm7, %v4027_v47, -inf  ;;  %v1739_v34 = vsel %vm1723_vm8, %v4035_v52, -inf }
 0x41b   : > { %v1741_v19 = vsel %vm1725_vm9, %v4043_v56, -inf  ;;  %v1743_v20 = vsel %vm1727_vm10, %v4049_v60, -inf  ;;  %v1745_v49 = vsel %vm1729_vm11, %v4055_v5, -inf  ;;  %v1747_v29 = vsel %vm1731_vm12, %v4061_v9, -inf }
 0x41c   : > { %v1761_v2 = vmax.f32 %v1733_v6, %v1737_v33  ;;  %v1762_v26 = vmax.f32 %v1735_v28, %v1739_v34  ;;  %v1582_v10 = vmax.f32 %v1580_v50, %v1581_v3 }
 0x41e   : > { %v1763_v62 = vmax.f32 %v1761_v2, %v1741_v19  ;;  %v1764_v1 = vmax.f32 %v1762_v26, %v1743_v20  ;;  %v1583_v7 = vrot.slane %v1582_v10, 2 }
 0x420   : > { %v1765_v39 = vmax.f32 %v1763_v62, %v1745_v49  ;;  %v1766_v63 = vmax.f32 %v1764_v1, %v1747_v29  ;;  %v1584_v14 = vmax.f32 %v1582_v10, %v1583_v7 }
 0x422   : > { %v1767_v36 = vmax.f32 %v1765_v39, %v1766_v63  ;;  %v1585_v18 = vrot.slane %v1584_v14, 1 }
 0x424   : > { %v1768_v22 = vrot.slane %v1767_v36, 4  ;;  %v1586_v25 = vmax.f32 %v1584_v14, %v1585_v18 }
 0x426   : > { %v1769_v23 = vmax.f32 %v1767_v36, %v1768_v22  ;;  %vm1600_vm0 = vcmp.lt.f32.partialorder %v4017_v42, %v1586_v25  ;;  %vm1602_vm13 = vcmp.lt.f32.partialorder %v4021_v44, %v1586_v25  ;;  %vm1604_vm14 = vcmp.lt.f32.partialorder %v4025_v46, %v1586_v25 }
 0x427   : > { %vm1606_vm15 = vcmp.lt.f32.partialorder %v4033_v51, %v1586_v25  ;;  %vm1608_vm1 = vcmp.lt.f32.partialorder %v4041_v55, %v1586_v25  ;;  %vm1610_vm2 = vcmp.lt.f32.partialorder %v4047_v59, %v1586_v25  ;;  %vm1612_vm3 = vcmp.lt.f32.partialorder %v4053_v4, %v1586_v25 }
 0x428   : > { %v1770_v21 = vrot.slane %v1769_v23, 2  ;;  %vm1614_vm4 = vcmp.lt.f32.partialorder %v4059_v8, %v1586_v25  ;;  %v1616_v41 = vsel %vm1600_vm0, %v4017_v42, -inf  ;;  %v1618_v15 = vsel %vm1602_vm13, %v4021_v44, -inf }
 0x429   : > { %v1620_v48 = vsel %vm1604_vm14, %v4025_v46, -inf  ;;  %v1622_v0 = vsel %vm1606_vm15, %v4033_v51, -inf  ;;  %v1624_v54 = vsel %vm1608_vm1, %v4041_v55, -inf  ;;  %v1626_v16 = vsel %vm1610_vm2, %v4047_v59, -inf }
 0x42a   : > { %v1771_v58 = vmax.f32 %v1769_v23, %v1770_v21  ;;  %v1628_v61 = vsel %vm1612_vm3, %v4053_v4, -inf  ;;  %v1630_v50 = vsel %vm1614_vm4, %v4059_v8, -inf  ;;  %v1632_v11 = vmax.f32 %v1616_v41, %v1620_v48 }
 0x42b   : > { %v1633_v3 = vmax.f32 %v1618_v15, %v1622_v0 }
 0x42c   : > { %v1772_v6 = vrot.slane %v1771_v58, 1  ;;  %v1634_v28 = vmax.f32 %v1632_v11, %v1624_v54 }
 0x42d   : > { %v1635_v33 = vmax.f32 %v1633_v3, %v1626_v16 }
 0x42e   : > { %v1773_v34 = vmax.f32 %v1771_v58, %v1772_v6  ;;  %v1636_v19 = vmax.f32 %v1634_v28, %v1628_v61 }
 0x42f   : > { %v1637_v20 = vmax.f32 %v1635_v33, %v1630_v50 }
 0x430   : > { %vm1775_vm5 = vcmp.lt.f32.partialorder %v4019_v43, %v1773_v34  ;;  %vm1777_vm6 = vcmp.lt.f32.partialorder %v4023_v45, %v1773_v34  ;;  %vm1779_vm7 = vcmp.lt.f32.partialorder %v4027_v47, %v1773_v34  ;;  %vm1781_vm8 = vcmp.lt.f32.partialorder %v4035_v52, %v1773_v34 }
 0x431   : > { %vm1783_vm9 = vcmp.lt.f32.partialorder %v4043_v56, %v1773_v34  ;;  %vm1785_vm10 = vcmp.lt.f32.partialorder %v4049_v60, %v1773_v34  ;;  %vm1787_vm11 = vcmp.lt.f32.partialorder %v4055_v5, %v1773_v34  ;;  %vm1789_vm12 = vcmp.lt.f32.partialorder %v4061_v9, %v1773_v34 }
 0x432   : > { %v1791_v49 = vsel %vm1775_vm5, %v4019_v43, -inf  ;;  %v1793_v29 = vsel %vm1777_vm6, %v4023_v45, -inf  ;;  %v1795_v2 = vsel %vm1779_vm7, %v4027_v47, -inf  ;;  %v1797_v26 = vsel %vm1781_vm8, %v4035_v52, -inf }
 0x433   : > { %v1799_v10 = vsel %vm1783_vm9, %v4043_v56, -inf  ;;  %v1801_v62 = vsel %vm1785_vm10, %v4049_v60, -inf  ;;  %v1803_v1 = vsel %vm1787_vm11, %v4055_v5, -inf  ;;  %v1805_v7 = vsel %vm1789_vm12, %v4061_v9, -inf }
 0x434   : > { %v1819_v39 = vmax.f32 %v1791_v49, %v1795_v2  ;;  %v1820_v63 = vmax.f32 %v1793_v29, %v1797_v26  ;;  %v1638_v14 = vmax.f32 %v1636_v19, %v1637_v20 }
 0x436   : > { %v1821_v36 = vmax.f32 %v1819_v39, %v1799_v10  ;;  %v1822_v18 = vmax.f32 %v1820_v63, %v1801_v62  ;;  %v1639_v22 = vrot.slane %v1638_v14, 4 }
 0x438   : > { %v1823_v25 = vmax.f32 %v1821_v36, %v1803_v1  ;;  %v1824_v23 = vmax.f32 %v1822_v18, %v1805_v7  ;;  %v1640_v21 = vmax.f32 %v1638_v14, %v1639_v22 }
 0x43a   : > { %v1825_v41 = vmax.f32 %v1823_v25, %v1824_v23  ;;  %v1641_v15 = vrot.slane %v1640_v21, 2 }
 0x43c   : > { %v1826_v48 = vrot.slane %v1825_v41, 4  ;;  %v1642_v0 = vmax.f32 %v1640_v21, %v1641_v15 }
 0x43e   : > { %v1827_v54 = vmax.f32 %v1825_v41, %v1826_v48  ;;  %v1643_v16 = vrot.slane %v1642_v0, 1 }
 0x440   : > { %v1828_v58 = vrot.slane %v1827_v54, 2  ;;  %v1644_v61 = vmax.f32 %v1642_v0, %v1643_v16 }
 0x442   : > { %v1829_v50 = vmax.f32 %v1827_v54, %v1828_v58  ;;  %vm1658_vm0 = vcmp.lt.f32.partialorder %v4017_v42, %v1644_v61  ;;  %vm1660_vm13 = vcmp.lt.f32.partialorder %v4021_v44, %v1644_v61  ;;  %vm1662_vm14 = vcmp.lt.f32.partialorder %v4025_v46, %v1644_v61 }
 0x443   : > { %vm1664_vm15 = vcmp.lt.f32.partialorder %v4033_v51, %v1644_v61  ;;  %vm1666_vm1 = vcmp.lt.f32.partialorder %v4041_v55, %v1644_v61  ;;  %vm1668_vm2 = vcmp.lt.f32.partialorder %v4047_v59, %v1644_v61  ;;  %vm1670_vm3 = vcmp.lt.f32.partialorder %v4053_v4, %v1644_v61 }
 0x444   : > { %v1830_v11 = vrot.slane %v1829_v50, 1  ;;  %vm1672_vm4 = vcmp.lt.f32.partialorder %v4059_v8, %v1644_v61  ;;  %v1674_v3 = vsel %vm1658_vm0, %v4017_v42, -inf  ;;  %v1676_v6 = vsel %vm1660_vm13, %v4021_v44, -inf }
 0x445   : > { %v1678_v28 = vsel %vm1662_vm14, %v4025_v46, -inf  ;;  %v1680_v33 = vsel %vm1664_vm15, %v4033_v51, -inf  ;;  %v1682_v34 = vsel %vm1666_vm1, %v4041_v55, -inf  ;;  %v1684_v19 = vsel %vm1668_vm2, %v4047_v59, -inf }
 0x446   : > { %v1831_v20 = vmax.f32 %v1829_v50, %v1830_v11  ;;  %v1686_v49 = vsel %vm1670_vm3, %v4053_v4, -inf  ;;  %v1688_v29 = vsel %vm1672_vm4, %v4059_v8, -inf  ;;  %v1690_v2 = vmax.f32 %v1674_v3, %v1678_v28 }
 0x447   : > { %v1691_v26 = vmax.f32 %v1676_v6, %v1680_v33 }
 0x448   : > { %vm1833_vm5 = vcmp.lt.f32.partialorder %v4019_v43, %v1831_v20  ;;  %vm1835_vm6 = vcmp.lt.f32.partialorder %v4023_v45, %v1831_v20  ;;  %vm1837_vm7 = vcmp.lt.f32.partialorder %v4027_v47, %v1831_v20  ;;  %vm1839_vm8 = vcmp.lt.f32.partialorder %v4035_v52, %v1831_v20 }
 0x449   : > { %vm1841_vm9 = vcmp.lt.f32.partialorder %v4043_v56, %v1831_v20  ;;  %vm1843_vm10 = vcmp.lt.f32.partialorder %v4049_v60, %v1831_v20  ;;  %vm1845_vm11 = vcmp.lt.f32.partialorder %v4055_v5, %v1831_v20  ;;  %vm1847_vm12 = vcmp.lt.f32.partialorder %v4061_v9, %v1831_v20 }
 0x44a   : > { %v1849_v10 = vsel %vm1833_vm5, %v4019_v43, -inf  ;;  %v1851_v62 = vsel %vm1835_vm6, %v4023_v45, -inf  ;;  %v1853_v1 = vsel %vm1837_vm7, %v4027_v47, -inf  ;;  %v1855_v7 = vsel %vm1839_vm8, %v4035_v52, -inf }
 0x44b   : > { %v1857_v39 = vsel %vm1841_vm9, %v4043_v56, -inf  ;;  %v1859_v63 = vsel %vm1843_vm10, %v4049_v60, -inf  ;;  %v1861_v14 = vsel %vm1845_vm11, %v4055_v5, -inf  ;;  %v1863_v36 = vsel %vm1847_vm12, %v4061_v9, -inf }
 0x44c   : > { %v1877_v18 = vmax.f32 %v1849_v10, %v1853_v1  ;;  %v1878_v22 = vmax.f32 %v1851_v62, %v1855_v7  ;;  %v1692_v25 = vmax.f32 %v1690_v2, %v1682_v34  ;;  %v1693_v23 = vmax.f32 %v1691_v26, %v1684_v19 }
 0x44e   : > { %v1879_v21 = vmax.f32 %v1877_v18, %v1857_v39  ;;  %v1880_v41 = vmax.f32 %v1878_v22, %v1859_v63  ;;  %v1694_v15 = vmax.f32 %v1692_v25, %v1686_v49  ;;  %v1695_v48 = vmax.f32 %v1693_v23, %v1688_v29 }
 0x450   : > { %v1881_v0 = vmax.f32 %v1879_v21, %v1861_v14  ;;  %v1882_v54 = vmax.f32 %v1880_v41, %v1863_v36  ;;  %v1696_v16 = vmax.f32 %v1694_v15, %v1695_v48 }
 0x452   : > { %v1883_v58 = vmax.f32 %v1881_v0, %v1882_v54  ;;  %v1697_v61 = vrot.slane %v1696_v16, 4 }
 0x454   : > { %v1884_v50 = vrot.slane %v1883_v58, 4  ;;  %v1698_v11 = vmax.f32 %v1696_v16, %v1697_v61 }
 0x456   : > { %v1885_v3 = vmax.f32 %v1883_v58, %v1884_v50  ;;  %v1699_v6 = vrot.slane %v1698_v11, 2 }
 0x458   : > { %v1886_v28 = vrot.slane %v1885_v3, 2  ;;  %v1700_v33 = vmax.f32 %v1698_v11, %v1699_v6 }
 0x45a   : > { %v1887_v20 = vmax.f32 %v1885_v3, %v1886_v28  ;;  %v1701_v10 = vrot.slane %v1700_v33, 1 }
 0x45c   : > { %v1888_v62 = vrot.slane %v1887_v20, 1  ;;  %v1702_v34 = vmax.f32 %v1700_v33, %v1701_v10 }
 0x45e   : > { %v1889_v19 = vmax.f32 %v1887_v20, %v1888_v62  ;;  %vm1716_vm0 = vcmp.lt.f32.partialorder %v4017_v42, %v1702_v34  ;;  %vm1718_vm13 = vcmp.lt.f32.partialorder %v4021_v44, %v1702_v34  ;;  %vm1720_vm14 = vcmp.lt.f32.partialorder %v4025_v46, %v1702_v34 }
 0x45f   : > { %vm1722_vm15 = vcmp.lt.f32.partialorder %v4033_v51, %v1702_v34  ;;  %vm1724_vm1 = vcmp.lt.f32.partialorder %v4041_v55, %v1702_v34  ;;  %vm1726_vm2 = vcmp.lt.f32.partialorder %v4047_v59, %v1702_v34  ;;  %vm1728_vm3 = vcmp.lt.f32.partialorder %v4053_v4, %v1702_v34 }
 0x460   : > { %vm1891_vm4 = vcmp.lt.f32.partialorder %v4019_v43, %v1889_v19  ;;  %vm1893_vm5 = vcmp.lt.f32.partialorder %v4023_v45, %v1889_v19  ;;  %vm1895_vm6 = vcmp.lt.f32.partialorder %v4027_v47, %v1889_v19  ;;  %vm1897_vm7 = vcmp.lt.f32.partialorder %v4035_v52, %v1889_v19 }
 0x461   : > { %vm1899_vm8 = vcmp.lt.f32.partialorder %v4043_v56, %v1889_v19  ;;  %vm1901_vm9 = vcmp.lt.f32.partialorder %v4049_v60, %v1889_v19  ;;  %vm1903_vm10 = vcmp.lt.f32.partialorder %v4055_v5, %v1889_v19  ;;  %vm1905_vm11 = vcmp.lt.f32.partialorder %v4061_v9, %v1889_v19 }
 0x462   : > { %v1907_v49 = vsel %vm1891_vm4, %v4019_v43, -inf  ;;  %v1909_v29 = vsel %vm1893_vm5, %v4023_v45, -inf  ;;  %v1911_v2 = vsel %vm1895_vm6, %v4027_v47, -inf  ;;  %v1913_v26 = vsel %vm1897_vm7, %v4035_v52, -inf }
 0x463   : > { %v1915_v1 = vsel %vm1899_vm8, %v4043_v56, -inf  ;;  %v1917_v7 = vsel %vm1901_vm9, %v4049_v60, -inf  ;;  %v1919_v39 = vsel %vm1903_vm10, %v4055_v5, -inf  ;;  %v1921_v63 = vsel %vm1905_vm11, %v4061_v9, -inf }
 0x464   : > { %v1935_v14 = vmax.f32 %v1907_v49, %v1911_v2  ;;  %v1936_v36 = vmax.f32 %v1909_v29, %v1913_v26  ;;  %vm1730_vm12 = vcmp.lt.f32.partialorder %v4059_v8, %v1702_v34  ;;  %v1732_v18 = vsel %vm1716_vm0, %v4017_v42, -inf }
 0x465   : > { %v1734_v22 = vsel %vm1718_vm13, %v4021_v44, -inf  ;;  %v1736_v25 = vsel %vm1720_vm14, %v4025_v46, -inf  ;;  %v1738_v23 = vsel %vm1722_vm15, %v4033_v51, -inf  ;;  %v1740_v21 = vsel %vm1724_vm1, %v4041_v55, -inf }
 0x466   : > { %v1937_v41 = vmax.f32 %v1935_v14, %v1915_v1  ;;  %v1938_v15 = vmax.f32 %v1936_v36, %v1917_v7  ;;  %v1742_v48 = vsel %vm1726_vm2, %v4047_v59, -inf  ;;  %v1744_v0 = vsel %vm1728_vm3, %v4053_v4, -inf }
 0x467   : > { %v1746_v54 = vsel %vm1730_vm12, %v4059_v8, -inf  ;;  %v1748_v16 = vmax.f32 %v1732_v18, %v1736_v25  ;;  %v1749_v58 = vmax.f32 %v1734_v22, %v1738_v23 }
 0x468   : > { %v1939_v61 = vmax.f32 %v1937_v41, %v1919_v39  ;;  %v1940_v50 = vmax.f32 %v1938_v15, %v1921_v63 }
 0x469   : > { %v1750_v11 = vmax.f32 %v1748_v16, %v1740_v21  ;;  %v1751_v3 = vmax.f32 %v1749_v58, %v1742_v48 }
 0x46a   : > { %v1941_v6 = vmax.f32 %v1939_v61, %v1940_v50 }
 0x46b   : > { %v1752_v28 = vmax.f32 %v1750_v11, %v1744_v0  ;;  %v1753_v33 = vmax.f32 %v1751_v3, %v1746_v54 }
 0x46c   : > { %v1942_v20 = vrot.slane %v1941_v6, 4 }
 0x46d   : > { %v1754_v10 = vmax.f32 %v1752_v28, %v1753_v33 }
 0x46e   : > { %v1943_v62 = vmax.f32 %v1941_v6, %v1942_v20 }
 0x46f   : > { %v1755_v19 = vrot.slane %v1754_v10, 4 }
 0x470   : > { %v1944_v49 = vrot.slane %v1943_v62, 2 }
 0x471   : > { %v1756_v29 = vmax.f32 %v1754_v10, %v1755_v19 }
 0x472   : > { %v1945_v2 = vmax.f32 %v1943_v62, %v1944_v49 }
 0x473   : > { %v1757_v34 = vrot.slane %v1756_v29, 2 }
 0x474   : > { %v1946_v26 = vrot.slane %v1945_v2, 1 }
 0x475   : > { %v1758_v1 = vmax.f32 %v1756_v29, %v1757_v34 }
 0x476   : > { %v1947_v7 = vmax.f32 %v1945_v2, %v1946_v26 }
 0x477   : > { %v1759_v14 = vrot.slane %v1758_v1, 1 }
 0x478   : > { %vm1949_vm0 = vcmp.lt.f32.partialorder %v4019_v43, %v1947_v7  ;;  %vm1951_vm13 = vcmp.lt.f32.partialorder %v4023_v45, %v1947_v7  ;;  %vm1953_vm14 = vcmp.lt.f32.partialorder %v4027_v47, %v1947_v7  ;;  %vm1955_vm15 = vcmp.lt.f32.partialorder %v4035_v52, %v1947_v7 }
 0x479   : > { %vm1957_vm1 = vcmp.lt.f32.partialorder %v4043_v56, %v1947_v7  ;;  %vm1959_vm2 = vcmp.lt.f32.partialorder %v4049_v60, %v1947_v7  ;;  %vm1961_vm3 = vcmp.lt.f32.partialorder %v4055_v5, %v1947_v7  ;;  %vm1963_vm4 = vcmp.lt.f32.partialorder %v4061_v9, %v1947_v7 }
 0x47a   : > { %v1965_v39 = vsel %vm1949_vm0, %v4019_v43, -inf  ;;  %v1967_v63 = vsel %vm1951_vm13, %v4023_v45, -inf  ;;  %v1969_v36 = vsel %vm1953_vm14, %v4027_v47, -inf  ;;  %v1971_v18 = vsel %vm1955_vm15, %v4035_v52, -inf }
 0x47b   : > { %v1973_v22 = vsel %vm1957_vm1, %v4043_v56, -inf  ;;  %v1975_v25 = vsel %vm1959_vm2, %v4049_v60, -inf  ;;  %v1977_v23 = vsel %vm1961_vm3, %v4055_v5, -inf  ;;  %v1979_v21 = vsel %vm1963_vm4, %v4061_v9, -inf }
 0x47c   : > { %v1993_v41 = vmax.f32 %v1965_v39, %v1969_v36  ;;  %v1994_v15 = vmax.f32 %v1967_v63, %v1971_v18  ;;  %v1760_v48 = vmax.f32 %v1758_v1, %v1759_v14 }
 0x47e   : > { %v1995_v0 = vmax.f32 %v1993_v41, %v1973_v22  ;;  %v1996_v54 = vmax.f32 %v1994_v15, %v1975_v25  ;;  %vm1774_vm5 = vcmp.lt.f32.partialorder %v4017_v42, %v1760_v48  ;;  %vm1776_vm6 = vcmp.lt.f32.partialorder %v4021_v44, %v1760_v48 }
 0x47f   : > { %vm1778_vm7 = vcmp.lt.f32.partialorder %v4025_v46, %v1760_v48  ;;  %vm1780_vm8 = vcmp.lt.f32.partialorder %v4033_v51, %v1760_v48  ;;  %vm1782_vm9 = vcmp.lt.f32.partialorder %v4041_v55, %v1760_v48  ;;  %vm1784_vm10 = vcmp.lt.f32.partialorder %v4047_v59, %v1760_v48 }
 0x480   : > { %v1997_v16 = vmax.f32 %v1995_v0, %v1977_v23  ;;  %v1998_v58 = vmax.f32 %v1996_v54, %v1979_v21  ;;  %vm1786_vm11 = vcmp.lt.f32.partialorder %v4053_v4, %v1760_v48  ;;  %vm1788_vm12 = vcmp.lt.f32.partialorder %v4059_v8, %v1760_v48 }
 0x481   : > { %v1790_v61 = vsel %vm1774_vm5, %v4017_v42, -inf  ;;  %v1792_v50 = vsel %vm1776_vm6, %v4021_v44, -inf  ;;  %v1794_v11 = vsel %vm1778_vm7, %v4025_v46, -inf  ;;  %v1796_v3 = vsel %vm1780_vm8, %v4033_v51, -inf }
 0x482   : > { %v1999_v6 = vmax.f32 %v1997_v16, %v1998_v58  ;;  %v1798_v28 = vsel %vm1782_vm9, %v4041_v55, -inf  ;;  %v1800_v33 = vsel %vm1784_vm10, %v4047_v59, -inf  ;;  %v1802_v20 = vsel %vm1786_vm11, %v4053_v4, -inf }
 0x483   : > { %v1804_v10 = vsel %vm1788_vm12, %v4059_v8, -inf  ;;  %v1806_v62 = vmax.f32 %v1790_v61, %v1794_v11  ;;  %v1807_v19 = vmax.f32 %v1792_v50, %v1796_v3 }
 0x484   : > { %v2000_v49 = vrot.slane %v1999_v6, 4 }
 0x485   : > { %v1808_v29 = vmax.f32 %v1806_v62, %v1798_v28  ;;  %v1809_v2 = vmax.f32 %v1807_v19, %v1800_v33 }
 0x486   : > { %v2001_v34 = vmax.f32 %v1999_v6, %v2000_v49 }
 0x487   : > { %v1810_v26 = vmax.f32 %v1808_v29, %v1802_v20  ;;  %v1811_v1 = vmax.f32 %v1809_v2, %v1804_v10 }
 0x488   : > { %v2002_v7 = vrot.slane %v2001_v34, 2 }
 0x489   : > { %v1812_v14 = vmax.f32 %v1810_v26, %v1811_v1 }
 0x48a   : > { %v2003_v39 = vmax.f32 %v2001_v34, %v2002_v7 }
 0x48b   : > { %v1813_v63 = vrot.slane %v1812_v14, 4 }
 0x48c   : > { %v2004_v36 = vrot.slane %v2003_v39, 1 }
 0x48d   : > { %v1814_v18 = vmax.f32 %v1812_v14, %v1813_v63 }
 0x48e   : > { %v2005_v22 = vmax.f32 %v2003_v39, %v2004_v36 }
 0x48f   : > { %v1815_v25 = vrot.slane %v1814_v18, 2 }
 0x490   : > { %vm2007_vm0 = vcmp.lt.f32.partialorder %v4019_v43, %v2005_v22  ;;  %vm2009_vm13 = vcmp.lt.f32.partialorder %v4023_v45, %v2005_v22  ;;  %vm2011_vm14 = vcmp.lt.f32.partialorder %v4027_v47, %v2005_v22  ;;  %vm2013_vm15 = vcmp.lt.f32.partialorder %v4035_v52, %v2005_v22 }
 0x491   : > { %vm2015_vm1 = vcmp.lt.f32.partialorder %v4043_v56, %v2005_v22  ;;  %vm2017_vm2 = vcmp.lt.f32.partialorder %v4049_v60, %v2005_v22  ;;  %vm2019_vm3 = vcmp.lt.f32.partialorder %v4055_v5, %v2005_v22  ;;  %vm2021_vm4 = vcmp.lt.f32.partialorder %v4061_v9, %v2005_v22 }
 0x492   : > { %v2023_v23 = vsel %vm2007_vm0, %v4019_v43, -inf  ;;  %v2025_v21 = vsel %vm2009_vm13, %v4023_v45, -inf  ;;  %v2027_v41 = vsel %vm2011_vm14, %v4027_v47, -inf  ;;  %v2029_v15 = vsel %vm2013_vm15, %v4035_v52, -inf }
 0x493   : > { %v2031_v48 = vsel %vm2015_vm1, %v4043_v56, -inf  ;;  %v2033_v0 = vsel %vm2017_vm2, %v4049_v60, -inf  ;;  %v2035_v54 = vsel %vm2019_vm3, %v4055_v5, -inf  ;;  %v2037_v16 = vsel %vm2021_vm4, %v4061_v9, -inf }
 0x494   : > { %v2051_v58 = vmax.f32 %v2023_v23, %v2027_v41  ;;  %v2052_v61 = vmax.f32 %v2025_v21, %v2029_v15  ;;  %v1816_v50 = vmax.f32 %v1814_v18, %v1815_v25 }
 0x496   : > { %v2053_v11 = vmax.f32 %v2051_v58, %v2031_v48  ;;  %v2054_v3 = vmax.f32 %v2052_v61, %v2033_v0  ;;  %v1817_v6 = vrot.slane %v1816_v50, 1 }
 0x498   : > { %v2055_v28 = vmax.f32 %v2053_v11, %v2035_v54  ;;  %v2056_v33 = vmax.f32 %v2054_v3, %v2037_v16  ;;  %v1818_v20 = vmax.f32 %v1816_v50, %v1817_v6 }
 0x49a   : > { %v2057_v10 = vmax.f32 %v2055_v28, %v2056_v33  ;;  %vm1832_vm5 = vcmp.lt.f32.partialorder %v4017_v42, %v1818_v20  ;;  %vm1834_vm6 = vcmp.lt.f32.partialorder %v4021_v44, %v1818_v20  ;;  %vm1836_vm7 = vcmp.lt.f32.partialorder %v4025_v46, %v1818_v20 }
 0x49b   : > { %vm1838_vm8 = vcmp.lt.f32.partialorder %v4033_v51, %v1818_v20  ;;  %vm1840_vm9 = vcmp.lt.f32.partialorder %v4041_v55, %v1818_v20  ;;  %vm1842_vm10 = vcmp.lt.f32.partialorder %v4047_v59, %v1818_v20  ;;  %vm1844_vm11 = vcmp.lt.f32.partialorder %v4053_v4, %v1818_v20 }
 0x49c   : > { %v2058_v62 = vrot.slane %v2057_v10, 4  ;;  %vm1846_vm12 = vcmp.lt.f32.partialorder %v4059_v8, %v1818_v20  ;;  %v1848_v19 = vsel %vm1832_vm5, %v4017_v42, -inf  ;;  %v1850_v49 = vsel %vm1834_vm6, %v4021_v44, -inf }
 0x49d   : > { %v1852_v29 = vsel %vm1836_vm7, %v4025_v46, -inf  ;;  %v1854_v2 = vsel %vm1838_vm8, %v4033_v51, -inf  ;;  %v1856_v34 = vsel %vm1840_vm9, %v4041_v55, -inf  ;;  %v1858_v26 = vsel %vm1842_vm10, %v4047_v59, -inf }
 0x49e   : > { %v2059_v1 = vmax.f32 %v2057_v10, %v2058_v62  ;;  %v1860_v7 = vsel %vm1844_vm11, %v4053_v4, -inf  ;;  %v1862_v14 = vsel %vm1846_vm12, %v4059_v8, -inf  ;;  %v1864_v39 = vmax.f32 %v1848_v19, %v1852_v29 }
 0x49f   : > { %v1865_v63 = vmax.f32 %v1850_v49, %v1854_v2 }
 0x4a0   : > { %v2060_v36 = vrot.slane %v2059_v1, 2  ;;  %v1866_v18 = vmax.f32 %v1864_v39, %v1856_v34 }
 0x4a1   : > { %v1867_v22 = vmax.f32 %v1865_v63, %v1858_v26 }
 0x4a2   : > { %v2061_v25 = vmax.f32 %v2059_v1, %v2060_v36  ;;  %v1868_v23 = vmax.f32 %v1866_v18, %v1860_v7 }
 0x4a3   : > { %v1869_v21 = vmax.f32 %v1867_v22, %v1862_v14 }
 0x4a4   : > { %v2062_v41 = vrot.slane %v2061_v25, 1 }
 0x4a5   : > { %v1870_v15 = vmax.f32 %v1868_v23, %v1869_v21 }
 0x4a6   : > { %v2063_v48 = vmax.f32 %v2061_v25, %v2062_v41 }
 0x4a7   : > { %v1871_v0 = vrot.slane %v1870_v15, 4 }
 0x4a8   : > { %vm2065_vm0 = vcmp.lt.f32.partialorder %v4019_v43, %v2063_v48  ;;  %vm2067_vm13 = vcmp.lt.f32.partialorder %v4023_v45, %v2063_v48  ;;  %vm2069_vm14 = vcmp.lt.f32.partialorder %v4027_v47, %v2063_v48  ;;  %vm2071_vm15 = vcmp.lt.f32.partialorder %v4035_v52, %v2063_v48 }
 0x4a9   : > { %vm2073_vm1 = vcmp.lt.f32.partialorder %v4043_v56, %v2063_v48  ;;  %vm2075_vm2 = vcmp.lt.f32.partialorder %v4049_v60, %v2063_v48  ;;  %vm2077_vm3 = vcmp.lt.f32.partialorder %v4055_v5, %v2063_v48  ;;  %vm2079_vm4 = vcmp.lt.f32.partialorder %v4061_v9, %v2063_v48 }
 0x4aa   : > { %v2081_v54 = vsel %vm2065_vm0, %v4019_v43, -inf  ;;  %v2083_v16 = vsel %vm2067_vm13, %v4023_v45, -inf  ;;  %v2085_v58 = vsel %vm2069_vm14, %v4027_v47, -inf  ;;  %v2087_v61 = vsel %vm2071_vm15, %v4035_v52, -inf }
 0x4ab   : > { %v2089_v50 = vsel %vm2073_vm1, %v4043_v56, -inf  ;;  %v2091_v11 = vsel %vm2075_vm2, %v4049_v60, -inf  ;;  %v2093_v3 = vsel %vm2077_vm3, %v4055_v5, -inf  ;;  %v2095_v6 = vsel %vm2079_vm4, %v4061_v9, -inf }
 0x4ac   : > { %v2109_v28 = vmax.f32 %v2081_v54, %v2085_v58  ;;  %v2110_v33 = vmax.f32 %v2083_v16, %v2087_v61  ;;  %v1872_v20 = vmax.f32 %v1870_v15, %v1871_v0 }
 0x4ae   : > { %v2111_v10 = vmax.f32 %v2109_v28, %v2089_v50  ;;  %v2112_v62 = vmax.f32 %v2110_v33, %v2091_v11  ;;  %v1873_v19 = vrot.slane %v1872_v20, 2 }
 0x4b0   : > { %v2113_v49 = vmax.f32 %v2111_v10, %v2093_v3  ;;  %v2114_v29 = vmax.f32 %v2112_v62, %v2095_v6  ;;  %v1874_v2 = vmax.f32 %v1872_v20, %v1873_v19 }
 0x4b2   : > { %v2115_v34 = vmax.f32 %v2113_v49, %v2114_v29  ;;  %v1875_v26 = vrot.slane %v1874_v2, 1 }
 0x4b4   : > { %v2116_v1 = vrot.slane %v2115_v34, 4  ;;  %v1876_v7 = vmax.f32 %v1874_v2, %v1875_v26 }
 0x4b6   : > { %v2117_v14 = vmax.f32 %v2115_v34, %v2116_v1  ;;  %vm1890_vm5 = vcmp.lt.f32.partialorder %v4017_v42, %v1876_v7  ;;  %vm1892_vm6 = vcmp.lt.f32.partialorder %v4021_v44, %v1876_v7  ;;  %vm1894_vm7 = vcmp.lt.f32.partialorder %v4025_v46, %v1876_v7 }
 0x4b7   : > { %vm1896_vm8 = vcmp.lt.f32.partialorder %v4033_v51, %v1876_v7  ;;  %vm1898_vm9 = vcmp.lt.f32.partialorder %v4041_v55, %v1876_v7  ;;  %vm1900_vm10 = vcmp.lt.f32.partialorder %v4047_v59, %v1876_v7  ;;  %vm1902_vm11 = vcmp.lt.f32.partialorder %v4053_v4, %v1876_v7 }
 0x4b8   : > { %v2118_v39 = vrot.slane %v2117_v14, 2  ;;  %vm1904_vm12 = vcmp.lt.f32.partialorder %v4059_v8, %v1876_v7  ;;  %v1906_v63 = vsel %vm1890_vm5, %v4017_v42, -inf  ;;  %v1908_v36 = vsel %vm1892_vm6, %v4021_v44, -inf }
 0x4b9   : > { %v1910_v18 = vsel %vm1894_vm7, %v4025_v46, -inf  ;;  %v1912_v22 = vsel %vm1896_vm8, %v4033_v51, -inf  ;;  %v1914_v25 = vsel %vm1898_vm9, %v4041_v55, -inf  ;;  %v1916_v23 = vsel %vm1900_vm10, %v4047_v59, -inf }
 0x4ba   : > { %v2119_v21 = vmax.f32 %v2117_v14, %v2118_v39  ;;  %v1918_v41 = vsel %vm1902_vm11, %v4053_v4, -inf  ;;  %v1920_v15 = vsel %vm1904_vm12, %v4059_v8, -inf  ;;  %v1922_v48 = vmax.f32 %v1906_v63, %v1910_v18 }
 0x4bb   : > { %v1923_v0 = vmax.f32 %v1908_v36, %v1912_v22 }
 0x4bc   : > { %v2120_v54 = vrot.slane %v2119_v21, 1  ;;  %v1924_v16 = vmax.f32 %v1922_v48, %v1914_v25 }
 0x4bd   : > { %v1925_v58 = vmax.f32 %v1923_v0, %v1916_v23 }
 0x4be   : > { %v2121_v61 = vmax.f32 %v2119_v21, %v2120_v54  ;;  %v1926_v50 = vmax.f32 %v1924_v16, %v1918_v41 }
 0x4bf   : > { %v1927_v11 = vmax.f32 %v1925_v58, %v1920_v15 }
 0x4c0   : > { %vm2123_vm0 = vcmp.lt.f32.partialorder %v4019_v43, %v2121_v61  ;;  %vm2125_vm13 = vcmp.lt.f32.partialorder %v4023_v45, %v2121_v61  ;;  %vm2127_vm14 = vcmp.lt.f32.partialorder %v4027_v47, %v2121_v61  ;;  %vm2129_vm15 = vcmp.lt.f32.partialorder %v4035_v52, %v2121_v61 }
 0x4c1   : > { %vm2131_vm1 = vcmp.lt.f32.partialorder %v4043_v56, %v2121_v61  ;;  %vm2133_vm2 = vcmp.lt.f32.partialorder %v4049_v60, %v2121_v61  ;;  %vm2135_vm3 = vcmp.lt.f32.partialorder %v4055_v5, %v2121_v61  ;;  %vm2137_vm4 = vcmp.lt.f32.partialorder %v4061_v9, %v2121_v61 }
 0x4c2   : > { %v2139_v3 = vsel %vm2123_vm0, %v4019_v43, -inf  ;;  %v2141_v6 = vsel %vm2125_vm13, %v4023_v45, -inf  ;;  %v2143_v28 = vsel %vm2127_vm14, %v4027_v47, -inf  ;;  %v2145_v33 = vsel %vm2129_vm15, %v4035_v52, -inf }
 0x4c3   : > { %v2147_v20 = vsel %vm2131_vm1, %v4043_v56, -inf  ;;  %v2149_v10 = vsel %vm2133_vm2, %v4049_v60, -inf  ;;  %v2151_v62 = vsel %vm2135_vm3, %v4055_v5, -inf  ;;  %v2153_v19 = vsel %vm2137_vm4, %v4061_v9, -inf }
 0x4c4   : > { %v2167_v49 = vmax.f32 %v2139_v3, %v2143_v28  ;;  %v2168_v29 = vmax.f32 %v2141_v6, %v2145_v33  ;;  %v1928_v2 = vmax.f32 %v1926_v50, %v1927_v11 }
 0x4c6   : > { %v2169_v34 = vmax.f32 %v2167_v49, %v2147_v20  ;;  %v2170_v26 = vmax.f32 %v2168_v29, %v2149_v10  ;;  %v1929_v1 = vrot.slane %v1928_v2, 4 }
 0x4c8   : > { %v2171_v7 = vmax.f32 %v2169_v34, %v2151_v62  ;;  %v2172_v14 = vmax.f32 %v2170_v26, %v2153_v19  ;;  %v1930_v39 = vmax.f32 %v1928_v2, %v1929_v1 }
 0x4ca   : > { %v2173_v63 = vmax.f32 %v2171_v7, %v2172_v14  ;;  %v1931_v36 = vrot.slane %v1930_v39, 2 }
 0x4cc   : > { %v2174_v18 = vrot.slane %v2173_v63, 4  ;;  %v1932_v22 = vmax.f32 %v1930_v39, %v1931_v36 }
 0x4ce   : > { %v2175_v25 = vmax.f32 %v2173_v63, %v2174_v18  ;;  %v1933_v23 = vrot.slane %v1932_v22, 1 }
 0x4d0   : > { %v2176_v21 = vrot.slane %v2175_v25, 2  ;;  %v1934_v41 = vmax.f32 %v1932_v22, %v1933_v23 }
 0x4d2   : > { %v2177_v15 = vmax.f32 %v2175_v25, %v2176_v21  ;;  %vm1948_vm5 = vcmp.lt.f32.partialorder %v4017_v42, %v1934_v41  ;;  %vm1950_vm6 = vcmp.lt.f32.partialorder %v4021_v44, %v1934_v41  ;;  %vm1952_vm7 = vcmp.lt.f32.partialorder %v4025_v46, %v1934_v41 }
 0x4d3   : > { %vm1954_vm8 = vcmp.lt.f32.partialorder %v4033_v51, %v1934_v41  ;;  %vm1956_vm9 = vcmp.lt.f32.partialorder %v4041_v55, %v1934_v41  ;;  %vm1958_vm10 = vcmp.lt.f32.partialorder %v4047_v59, %v1934_v41  ;;  %vm1960_vm11 = vcmp.lt.f32.partialorder %v4053_v4, %v1934_v41 }
 0x4d4   : > { %v2178_v48 = vrot.slane %v2177_v15, 1  ;;  %vm1962_vm12 = vcmp.lt.f32.partialorder %v4059_v8, %v1934_v41  ;;  %v1964_v0 = vsel %vm1948_vm5, %v4017_v42, -inf  ;;  %v1966_v54 = vsel %vm1950_vm6, %v4021_v44, -inf }
 0x4d5   : > { %v1968_v16 = vsel %vm1952_vm7, %v4025_v46, -inf  ;;  %v1970_v58 = vsel %vm1954_vm8, %v4033_v51, -inf  ;;  %v1972_v61 = vsel %vm1956_vm9, %v4041_v55, -inf  ;;  %v1974_v50 = vsel %vm1958_vm10, %v4047_v59, -inf }
 0x4d6   : > { %v2179_v11 = vmax.f32 %v2177_v15, %v2178_v48  ;;  %v1976_v3 = vsel %vm1960_vm11, %v4053_v4, -inf  ;;  %v1978_v6 = vsel %vm1962_vm12, %v4059_v8, -inf  ;;  %v1980_v28 = vmax.f32 %v1964_v0, %v1968_v16 }
 0x4d7   : > { %v1981_v33 = vmax.f32 %v1966_v54, %v1970_v58 }
 0x4d8   : > { %vm2181_vm0 = vcmp.lt.f32.partialorder %v4019_v43, %v2179_v11  ;;  %vm2183_vm13 = vcmp.lt.f32.partialorder %v4023_v45, %v2179_v11  ;;  %vm2185_vm14 = vcmp.lt.f32.partialorder %v4027_v47, %v2179_v11  ;;  %vm2187_vm15 = vcmp.lt.f32.partialorder %v4035_v52, %v2179_v11 }
 0x4d9   : > { %vm2189_vm1 = vcmp.lt.f32.partialorder %v4043_v56, %v2179_v11  ;;  %vm2191_vm2 = vcmp.lt.f32.partialorder %v4049_v60, %v2179_v11  ;;  %vm2193_vm3 = vcmp.lt.f32.partialorder %v4055_v5, %v2179_v11  ;;  %vm2195_vm4 = vcmp.lt.f32.partialorder %v4061_v9, %v2179_v11 }
 0x4da   : > { %v2197_v20 = vsel %vm2181_vm0, %v4019_v43, -inf  ;;  %v2199_v10 = vsel %vm2183_vm13, %v4023_v45, -inf  ;;  %v2201_v62 = vsel %vm2185_vm14, %v4027_v47, -inf  ;;  %v2203_v19 = vsel %vm2187_vm15, %v4035_v52, -inf }
 0x4db   : > { %v2205_v49 = vsel %vm2189_vm1, %v4043_v56, -inf  ;;  %v2207_v29 = vsel %vm2191_vm2, %v4049_v60, -inf  ;;  %v2209_v2 = vsel %vm2193_vm3, %v4055_v5, -inf  ;;  %v2211_v34 = vsel %vm2195_vm4, %v4061_v9, -inf }
 0x4dc   : > { %v2225_v26 = vmax.f32 %v2197_v20, %v2201_v62  ;;  %v2226_v1 = vmax.f32 %v2199_v10, %v2203_v19  ;;  %v1982_v7 = vmax.f32 %v1980_v28, %v1972_v61  ;;  %v1983_v14 = vmax.f32 %v1981_v33, %v1974_v50 }
 0x4de   : > { %v2227_v39 = vmax.f32 %v2225_v26, %v2205_v49  ;;  %v2228_v63 = vmax.f32 %v2226_v1, %v2207_v29  ;;  %v1984_v36 = vmax.f32 %v1982_v7, %v1976_v3  ;;  %v1985_v18 = vmax.f32 %v1983_v14, %v1978_v6 }
 0x4e0   : > { %v2229_v22 = vmax.f32 %v2227_v39, %v2209_v2  ;;  %v2230_v25 = vmax.f32 %v2228_v63, %v2211_v34  ;;  %v1986_v23 = vmax.f32 %v1984_v36, %v1985_v18 }
 0x4e2   : > { %v2231_v21 = vmax.f32 %v2229_v22, %v2230_v25  ;;  %v1987_v41 = vrot.slane %v1986_v23, 4 }
 0x4e4   : > { %v2232_v15 = vrot.slane %v2231_v21, 4  ;;  %v1988_v48 = vmax.f32 %v1986_v23, %v1987_v41 }
 0x4e6   : > { %v2233_v0 = vmax.f32 %v2231_v21, %v2232_v15  ;;  %v1989_v54 = vrot.slane %v1988_v48, 2 }
 0x4e8   : > { %v2234_v16 = vrot.slane %v2233_v0, 2  ;;  %v1990_v58 = vmax.f32 %v1988_v48, %v1989_v54 }
 0x4ea   : > { %v2235_v11 = vmax.f32 %v2233_v0, %v2234_v16  ;;  %v1991_v20 = vrot.slane %v1990_v58, 1 }
 0x4ec   : > { %v2236_v10 = vrot.slane %v2235_v11, 1  ;;  %v1992_v61 = vmax.f32 %v1990_v58, %v1991_v20 }
 0x4ee   : > { %v2237_v50 = vmax.f32 %v2235_v11, %v2236_v10  ;;  %vm2006_vm5 = vcmp.lt.f32.partialorder %v4017_v42, %v1992_v61  ;;  %vm2008_vm6 = vcmp.lt.f32.partialorder %v4021_v44, %v1992_v61  ;;  %vm2010_vm7 = vcmp.lt.f32.partialorder %v4025_v46, %v1992_v61 }
 0x4ef   : > { %vm2012_vm8 = vcmp.lt.f32.partialorder %v4033_v51, %v1992_v61  ;;  %vm2014_vm9 = vcmp.lt.f32.partialorder %v4041_v55, %v1992_v61  ;;  %vm2016_vm10 = vcmp.lt.f32.partialorder %v4047_v59, %v1992_v61  ;;  %vm2018_vm11 = vcmp.lt.f32.partialorder %v4053_v4, %v1992_v61 }
 0x4f0   : > { %vm2239_vm12 = vcmp.lt.f32.partialorder %v4019_v43, %v2237_v50  ;;  %vm2241_vm0 = vcmp.lt.f32.partialorder %v4023_v45, %v2237_v50  ;;  %vm2243_vm13 = vcmp.lt.f32.partialorder %v4027_v47, %v2237_v50  ;;  %vm2245_vm14 = vcmp.lt.f32.partialorder %v4035_v52, %v2237_v50 }
 0x4f1   : > { %vm2247_vm15 = vcmp.lt.f32.partialorder %v4043_v56, %v2237_v50  ;;  %vm2249_vm1 = vcmp.lt.f32.partialorder %v4049_v60, %v2237_v50  ;;  %vm2251_vm2 = vcmp.lt.f32.partialorder %v4055_v5, %v2237_v50  ;;  %vm2253_vm3 = vcmp.lt.f32.partialorder %v4061_v9, %v2237_v50 }
 0x4f2   : > { %v2255_v3 = vsel %vm2239_vm12, %v4019_v43, -inf  ;;  %v2257_v6 = vsel %vm2241_vm0, %v4023_v45, -inf  ;;  %v2259_v28 = vsel %vm2243_vm13, %v4027_v47, -inf  ;;  %v2261_v33 = vsel %vm2245_vm14, %v4035_v52, -inf }
 0x4f3   : > { %v2263_v62 = vsel %vm2247_vm15, %v4043_v56, -inf  ;;  %v2265_v19 = vsel %vm2249_vm1, %v4049_v60, -inf  ;;  %v2267_v49 = vsel %vm2251_vm2, %v4055_v5, -inf  ;;  %v2269_v29 = vsel %vm2253_vm3, %v4061_v9, -inf }
 0x4f4   : > { %v2283_v2 = vmax.f32 %v2255_v3, %v2259_v28  ;;  %v2284_v34 = vmax.f32 %v2257_v6, %v2261_v33  ;;  %vm2020_vm4 = vcmp.lt.f32.partialorder %v4059_v8, %v1992_v61  ;;  %v2022_v26 = vsel %vm2006_vm5, %v4017_v42, -inf }
 0x4f5   : > { %v2024_v1 = vsel %vm2008_vm6, %v4021_v44, -inf  ;;  %v2026_v7 = vsel %vm2010_vm7, %v4025_v46, -inf  ;;  %v2028_v14 = vsel %vm2012_vm8, %v4033_v51, -inf  ;;  %v2030_v39 = vsel %vm2014_vm9, %v4041_v55, -inf }
 0x4f6   : > { %v2285_v63 = vmax.f32 %v2283_v2, %v2263_v62  ;;  %v2286_v36 = vmax.f32 %v2284_v34, %v2265_v19  ;;  %v2032_v18 = vsel %vm2016_vm10, %v4047_v59, -inf  ;;  %v2034_v22 = vsel %vm2018_vm11, %v4053_v4, -inf }
 0x4f7   : > { %v2036_v25 = vsel %vm2020_vm4, %v4059_v8, -inf  ;;  %v2038_v23 = vmax.f32 %v2022_v26, %v2026_v7  ;;  %v2039_v21 = vmax.f32 %v2024_v1, %v2028_v14 }
 0x4f8   : > { %v2287_v41 = vmax.f32 %v2285_v63, %v2267_v49  ;;  %v2288_v15 = vmax.f32 %v2286_v36, %v2269_v29 }
 0x4f9   : > { %v2040_v48 = vmax.f32 %v2038_v23, %v2030_v39  ;;  %v2041_v0 = vmax.f32 %v2039_v21, %v2032_v18 }
 0x4fa   : > { %v2289_v54 = vmax.f32 %v2287_v41, %v2288_v15 }
 0x4fb   : > { %v2042_v16 = vmax.f32 %v2040_v48, %v2034_v22  ;;  %v2043_v58 = vmax.f32 %v2041_v0, %v2036_v25 }
 0x4fc   : > { %v2290_v11 = vrot.slane %v2289_v54, 4 }
 0x4fd   : > { %v2044_v20 = vmax.f32 %v2042_v16, %v2043_v58 }
 0x4fe   : > { %v2291_v10 = vmax.f32 %v2289_v54, %v2290_v11 }
 0x4ff   : > { %v2045_v50 = vrot.slane %v2044_v20, 4 }
 0x500   : > { %v2292_v3 = vrot.slane %v2291_v10, 2 }
 0x501   : > { %v2046_v6 = vmax.f32 %v2044_v20, %v2045_v50 }
 0x502   : > { %v2293_v28 = vmax.f32 %v2291_v10, %v2292_v3 }
 0x503   : > { %v2047_v61 = vrot.slane %v2046_v6, 2 }
 0x504   : > { %v2294_v33 = vrot.slane %v2293_v28, 1 }
 0x505   : > { %v2048_v62 = vmax.f32 %v2046_v6, %v2047_v61 }
 0x506   : > { %v2295_v19 = vmax.f32 %v2293_v28, %v2294_v33 }
 0x507   : > { %v2049_v2 = vrot.slane %v2048_v62, 1 }
 0x508   : > { %vm2297_vm5 = vcmp.lt.f32.partialorder %v4019_v43, %v2295_v19  ;;  %vm2299_vm6 = vcmp.lt.f32.partialorder %v4023_v45, %v2295_v19  ;;  %vm2301_vm7 = vcmp.lt.f32.partialorder %v4027_v47, %v2295_v19  ;;  %vm2303_vm8 = vcmp.lt.f32.partialorder %v4035_v52, %v2295_v19 }
 0x509   : > { %vm2305_vm9 = vcmp.lt.f32.partialorder %v4043_v56, %v2295_v19  ;;  %vm2307_vm10 = vcmp.lt.f32.partialorder %v4049_v60, %v2295_v19  ;;  %vm2309_vm11 = vcmp.lt.f32.partialorder %v4055_v5, %v2295_v19  ;;  %vm2311_vm12 = vcmp.lt.f32.partialorder %v4061_v9, %v2295_v19 }
 0x50a   : > { %v2313_v49 = vsel %vm2297_vm5, %v4019_v43, -inf  ;;  %v2315_v29 = vsel %vm2299_vm6, %v4023_v45, -inf  ;;  %v2317_v34 = vsel %vm2301_vm7, %v4027_v47, -inf  ;;  %v2319_v26 = vsel %vm2303_vm8, %v4035_v52, -inf }
 0x50b   : > { %v2321_v1 = vsel %vm2305_vm9, %v4043_v56, -inf  ;;  %v2323_v7 = vsel %vm2307_vm10, %v4049_v60, -inf  ;;  %v2325_v14 = vsel %vm2309_vm11, %v4055_v5, -inf  ;;  %v2327_v39 = vsel %vm2311_vm12, %v4061_v9, -inf }
 0x50c   : > { %v2341_v63 = vmax.f32 %v2313_v49, %v2317_v34  ;;  %v2342_v36 = vmax.f32 %v2315_v29, %v2319_v26  ;;  %v2050_v18 = vmax.f32 %v2048_v62, %v2049_v2 }
 0x50e   : > { %v2343_v22 = vmax.f32 %v2341_v63, %v2321_v1  ;;  %v2344_v25 = vmax.f32 %v2342_v36, %v2323_v7  ;;  %vm2064_vm0 = vcmp.lt.f32.partialorder %v4017_v42, %v2050_v18  ;;  %vm2066_vm13 = vcmp.lt.f32.partialorder %v4021_v44, %v2050_v18 }
 0x50f   : > { %vm2068_vm14 = vcmp.lt.f32.partialorder %v4025_v46, %v2050_v18  ;;  %vm2070_vm15 = vcmp.lt.f32.partialorder %v4033_v51, %v2050_v18  ;;  %vm2072_vm1 = vcmp.lt.f32.partialorder %v4041_v55, %v2050_v18  ;;  %vm2074_vm2 = vcmp.lt.f32.partialorder %v4047_v59, %v2050_v18 }
 0x510   : > { %v2345_v23 = vmax.f32 %v2343_v22, %v2325_v14  ;;  %v2346_v21 = vmax.f32 %v2344_v25, %v2327_v39  ;;  %vm2076_vm3 = vcmp.lt.f32.partialorder %v4053_v4, %v2050_v18  ;;  %vm2078_vm4 = vcmp.lt.f32.partialorder %v4059_v8, %v2050_v18 }
 0x511   : > { %v2080_v41 = vsel %vm2064_vm0, %v4017_v42, -inf  ;;  %v2082_v15 = vsel %vm2066_vm13, %v4021_v44, -inf  ;;  %v2084_v48 = vsel %vm2068_vm14, %v4025_v46, -inf  ;;  %v2086_v0 = vsel %vm2070_vm15, %v4033_v51, -inf }
 0x512   : > { %v2347_v54 = vmax.f32 %v2345_v23, %v2346_v21  ;;  %v2088_v16 = vsel %vm2072_vm1, %v4041_v55, -inf  ;;  %v2090_v58 = vsel %vm2074_vm2, %v4047_v59, -inf  ;;  %v2092_v11 = vsel %vm2076_vm3, %v4053_v4, -inf }
 0x513   : > { %v2094_v20 = vsel %vm2078_vm4, %v4059_v8, -inf  ;;  %v2096_v10 = vmax.f32 %v2080_v41, %v2084_v48  ;;  %v2097_v50 = vmax.f32 %v2082_v15, %v2086_v0 }
 0x514   : > { %v2348_v3 = vrot.slane %v2347_v54, 4 }
 0x515   : > { %v2098_v6 = vmax.f32 %v2096_v10, %v2088_v16  ;;  %v2099_v28 = vmax.f32 %v2097_v50, %v2090_v58 }
 0x516   : > { %v2349_v61 = vmax.f32 %v2347_v54, %v2348_v3 }
 0x517   : > { %v2100_v33 = vmax.f32 %v2098_v6, %v2092_v11  ;;  %v2101_v62 = vmax.f32 %v2099_v28, %v2094_v20 }
 0x518   : > { %v2350_v19 = vrot.slane %v2349_v61, 2 }
 0x519   : > { %v2102_v2 = vmax.f32 %v2100_v33, %v2101_v62 }
 0x51a   : > { %v2351_v49 = vmax.f32 %v2349_v61, %v2350_v19 }
 0x51b   : > { %v2103_v29 = vrot.slane %v2102_v2, 4 }
 0x51c   : > { %v2352_v34 = vrot.slane %v2351_v49, 1 }
 0x51d   : > { %v2104_v26 = vmax.f32 %v2102_v2, %v2103_v29 }
 0x51e   : > { %v2353_v1 = vmax.f32 %v2351_v49, %v2352_v34 }
 0x51f   : > { %v2105_v7 = vrot.slane %v2104_v26, 2 }
 0x520   : > { %vm2355_vm5 = vcmp.lt.f32.partialorder %v4019_v43, %v2353_v1  ;;  %vm2357_vm6 = vcmp.lt.f32.partialorder %v4023_v45, %v2353_v1  ;;  %vm2359_vm7 = vcmp.lt.f32.partialorder %v4027_v47, %v2353_v1  ;;  %vm2361_vm8 = vcmp.lt.f32.partialorder %v4035_v52, %v2353_v1 }
 0x521   : > { %vm2363_vm9 = vcmp.lt.f32.partialorder %v4043_v56, %v2353_v1  ;;  %vm2365_vm10 = vcmp.lt.f32.partialorder %v4049_v60, %v2353_v1  ;;  %vm2367_vm11 = vcmp.lt.f32.partialorder %v4055_v5, %v2353_v1  ;;  %vm2369_vm12 = vcmp.lt.f32.partialorder %v4061_v9, %v2353_v1 }
 0x522   : > { %v2371_v14 = vsel %vm2355_vm5, %v4019_v43, -inf  ;;  %v2373_v39 = vsel %vm2357_vm6, %v4023_v45, -inf  ;;  %v2375_v63 = vsel %vm2359_vm7, %v4027_v47, -inf  ;;  %v2377_v36 = vsel %vm2361_vm8, %v4035_v52, -inf }
 0x523   : > { %v2379_v18 = vsel %vm2363_vm9, %v4043_v56, -inf  ;;  %v2381_v22 = vsel %vm2365_vm10, %v4049_v60, -inf  ;;  %v2383_v25 = vsel %vm2367_vm11, %v4055_v5, -inf  ;;  %v2385_v23 = vsel %vm2369_vm12, %v4061_v9, -inf }
 0x524   : > { %v2399_v21 = vmax.f32 %v2371_v14, %v2375_v63  ;;  %v2400_v41 = vmax.f32 %v2373_v39, %v2377_v36  ;;  %v2106_v15 = vmax.f32 %v2104_v26, %v2105_v7 }
 0x526   : > { %v2401_v48 = vmax.f32 %v2399_v21, %v2379_v18  ;;  %v2402_v0 = vmax.f32 %v2400_v41, %v2381_v22  ;;  %v2107_v54 = vrot.slane %v2106_v15, 1 }
 0x528   : > { %v2403_v16 = vmax.f32 %v2401_v48, %v2383_v25  ;;  %v2404_v58 = vmax.f32 %v2402_v0, %v2385_v23  ;;  %v2108_v11 = vmax.f32 %v2106_v15, %v2107_v54 }
 0x52a   : > { %v2405_v20 = vmax.f32 %v2403_v16, %v2404_v58  ;;  %vm2122_vm0 = vcmp.lt.f32.partialorder %v4017_v42, %v2108_v11  ;;  %vm2124_vm13 = vcmp.lt.f32.partialorder %v4021_v44, %v2108_v11  ;;  %vm2126_vm14 = vcmp.lt.f32.partialorder %v4025_v46, %v2108_v11 }
 0x52b   : > { %vm2128_vm15 = vcmp.lt.f32.partialorder %v4033_v51, %v2108_v11  ;;  %vm2130_vm1 = vcmp.lt.f32.partialorder %v4041_v55, %v2108_v11  ;;  %vm2132_vm2 = vcmp.lt.f32.partialorder %v4047_v59, %v2108_v11  ;;  %vm2134_vm3 = vcmp.lt.f32.partialorder %v4053_v4, %v2108_v11 }
 0x52c   : > { %v2406_v10 = vrot.slane %v2405_v20, 4  ;;  %vm2136_vm4 = vcmp.lt.f32.partialorder %v4059_v8, %v2108_v11  ;;  %v2138_v50 = vsel %vm2122_vm0, %v4017_v42, -inf  ;;  %v2140_v3 = vsel %vm2124_vm13, %v4021_v44, -inf }
 0x52d   : > { %v2142_v6 = vsel %vm2126_vm14, %v4025_v46, -inf  ;;  %v2144_v28 = vsel %vm2128_vm15, %v4033_v51, -inf  ;;  %v2146_v61 = vsel %vm2130_vm1, %v4041_v55, -inf  ;;  %v2148_v33 = vsel %vm2132_vm2, %v4047_v59, -inf }
 0x52e   : > { %v2407_v62 = vmax.f32 %v2405_v20, %v2406_v10  ;;  %v2150_v19 = vsel %vm2134_vm3, %v4053_v4, -inf  ;;  %v2152_v2 = vsel %vm2136_vm4, %v4059_v8, -inf  ;;  %v2154_v49 = vmax.f32 %v2138_v50, %v2142_v6 }
 0x52f   : > { %v2155_v29 = vmax.f32 %v2140_v3, %v2144_v28 }
 0x530   : > { %v2408_v34 = vrot.slane %v2407_v62, 2  ;;  %v2156_v26 = vmax.f32 %v2154_v49, %v2146_v61 }
 0x531   : > { %v2157_v1 = vmax.f32 %v2155_v29, %v2148_v33 }
 0x532   : > { %v2409_v7 = vmax.f32 %v2407_v62, %v2408_v34  ;;  %v2158_v14 = vmax.f32 %v2156_v26, %v2150_v19 }
 0x533   : > { %v2159_v39 = vmax.f32 %v2157_v1, %v2152_v2 }
 0x534   : > { %v2410_v63 = vrot.slane %v2409_v7, 1 }
 0x535   : > { %v2160_v36 = vmax.f32 %v2158_v14, %v2159_v39 }
 0x536   : > { %v2411_v18 = vmax.f32 %v2409_v7, %v2410_v63 }
 0x537   : > { %v2161_v22 = vrot.slane %v2160_v36, 4 }
 0x538   : > { %vm2413_vm5 = vcmp.lt.f32.partialorder %v4019_v43, %v2411_v18  ;;  %vm2415_vm6 = vcmp.lt.f32.partialorder %v4023_v45, %v2411_v18  ;;  %vm2417_vm7 = vcmp.lt.f32.partialorder %v4027_v47, %v2411_v18  ;;  %vm2419_vm8 = vcmp.lt.f32.partialorder %v4035_v52, %v2411_v18 }
 0x539   : > { %vm2421_vm9 = vcmp.lt.f32.partialorder %v4043_v56, %v2411_v18  ;;  %vm2423_vm10 = vcmp.lt.f32.partialorder %v4049_v60, %v2411_v18  ;;  %vm2425_vm11 = vcmp.lt.f32.partialorder %v4055_v5, %v2411_v18  ;;  %vm2427_vm12 = vcmp.lt.f32.partialorder %v4061_v9, %v2411_v18 }
 0x53a   : > { %v2429_v25 = vsel %vm2413_vm5, %v4019_v43, -inf  ;;  %v2431_v23 = vsel %vm2415_vm6, %v4023_v45, -inf  ;;  %v2433_v21 = vsel %vm2417_vm7, %v4027_v47, -inf  ;;  %v2435_v41 = vsel %vm2419_vm8, %v4035_v52, -inf }
 0x53b   : > { %v2437_v15 = vsel %vm2421_vm9, %v4043_v56, -inf  ;;  %v2439_v48 = vsel %vm2423_vm10, %v4049_v60, -inf  ;;  %v2441_v0 = vsel %vm2425_vm11, %v4055_v5, -inf  ;;  %v2443_v54 = vsel %vm2427_vm12, %v4061_v9, -inf }
 0x53c   : > { %v2457_v16 = vmax.f32 %v2429_v25, %v2433_v21  ;;  %v2458_v58 = vmax.f32 %v2431_v23, %v2435_v41  ;;  %v2162_v11 = vmax.f32 %v2160_v36, %v2161_v22 }
 0x53e   : > { %v2459_v20 = vmax.f32 %v2457_v16, %v2437_v15  ;;  %v2460_v10 = vmax.f32 %v2458_v58, %v2439_v48  ;;  %v2163_v50 = vrot.slane %v2162_v11, 2 }
 0x540   : > { %v2461_v3 = vmax.f32 %v2459_v20, %v2441_v0  ;;  %v2462_v6 = vmax.f32 %v2460_v10, %v2443_v54  ;;  %v2164_v28 = vmax.f32 %v2162_v11, %v2163_v50 }
 0x542   : > { %v2463_v61 = vmax.f32 %v2461_v3, %v2462_v6  ;;  %v2165_v33 = vrot.slane %v2164_v28, 1 }
 0x544   : > { %v2464_v62 = vrot.slane %v2463_v61, 4  ;;  %v2166_v19 = vmax.f32 %v2164_v28, %v2165_v33 }
 0x546   : > { %v2465_v2 = vmax.f32 %v2463_v61, %v2464_v62  ;;  %vm2180_vm0 = vcmp.lt.f32.partialorder %v4017_v42, %v2166_v19  ;;  %vm2182_vm13 = vcmp.lt.f32.partialorder %v4021_v44, %v2166_v19  ;;  %vm2184_vm14 = vcmp.lt.f32.partialorder %v4025_v46, %v2166_v19 }
 0x547   : > { %vm2186_vm15 = vcmp.lt.f32.partialorder %v4033_v51, %v2166_v19  ;;  %vm2188_vm1 = vcmp.lt.f32.partialorder %v4041_v55, %v2166_v19  ;;  %vm2190_vm2 = vcmp.lt.f32.partialorder %v4047_v59, %v2166_v19  ;;  %vm2192_vm3 = vcmp.lt.f32.partialorder %v4053_v4, %v2166_v19 }
 0x548   : > { %v2466_v49 = vrot.slane %v2465_v2, 2  ;;  %vm2194_vm4 = vcmp.lt.f32.partialorder %v4059_v8, %v2166_v19  ;;  %v2196_v29 = vsel %vm2180_vm0, %v4017_v42, -inf  ;;  %v2198_v34 = vsel %vm2182_vm13, %v4021_v44, -inf }
 0x549   : > { %v2200_v26 = vsel %vm2184_vm14, %v4025_v46, -inf  ;;  %v2202_v1 = vsel %vm2186_vm15, %v4033_v51, -inf  ;;  %v2204_v7 = vsel %vm2188_vm1, %v4041_v55, -inf  ;;  %v2206_v14 = vsel %vm2190_vm2, %v4047_v59, -inf }
 0x54a   : > { %v2467_v39 = vmax.f32 %v2465_v2, %v2466_v49  ;;  %v2208_v63 = vsel %vm2192_vm3, %v4053_v4, -inf  ;;  %v2210_v36 = vsel %vm2194_vm4, %v4059_v8, -inf  ;;  %v2212_v18 = vmax.f32 %v2196_v29, %v2200_v26 }
 0x54b   : > { %v2213_v22 = vmax.f32 %v2198_v34, %v2202_v1 }
 0x54c   : > { %v2468_v25 = vrot.slane %v2467_v39, 1  ;;  %v2214_v23 = vmax.f32 %v2212_v18, %v2204_v7 }
 0x54d   : > { %v2215_v21 = vmax.f32 %v2213_v22, %v2206_v14 }
 0x54e   : > { %v2469_v41 = vmax.f32 %v2467_v39, %v2468_v25  ;;  %v2216_v15 = vmax.f32 %v2214_v23, %v2208_v63 }
 0x54f   : > { %v2217_v48 = vmax.f32 %v2215_v21, %v2210_v36 }
 0x550   : > { %vm2471_vm5 = vcmp.lt.f32.partialorder %v4019_v43, %v2469_v41  ;;  %vm2473_vm6 = vcmp.lt.f32.partialorder %v4023_v45, %v2469_v41  ;;  %vm2475_vm7 = vcmp.lt.f32.partialorder %v4027_v47, %v2469_v41  ;;  %vm2477_vm8 = vcmp.lt.f32.partialorder %v4035_v52, %v2469_v41 }
 0x551   : > { %vm2479_vm9 = vcmp.lt.f32.partialorder %v4043_v56, %v2469_v41  ;;  %vm2481_vm10 = vcmp.lt.f32.partialorder %v4049_v60, %v2469_v41  ;;  %vm2483_vm11 = vcmp.lt.f32.partialorder %v4055_v5, %v2469_v41  ;;  %vm2485_vm12 = vcmp.lt.f32.partialorder %v4061_v9, %v2469_v41 }
 0x552   : > { %v2487_v0 = vsel %vm2471_vm5, %v4019_v43, -inf  ;;  %v2489_v54 = vsel %vm2473_vm6, %v4023_v45, -inf  ;;  %v2491_v16 = vsel %vm2475_vm7, %v4027_v47, -inf  ;;  %v2493_v58 = vsel %vm2477_vm8, %v4035_v52, -inf }
 0x553   : > { %v2495_v11 = vsel %vm2479_vm9, %v4043_v56, -inf  ;;  %v2497_v20 = vsel %vm2481_vm10, %v4049_v60, -inf  ;;  %v2499_v10 = vsel %vm2483_vm11, %v4055_v5, -inf  ;;  %v2501_v50 = vsel %vm2485_vm12, %v4061_v9, -inf }
 0x554   : > { %v2515_v3 = vmax.f32 %v2487_v0, %v2491_v16  ;;  %v2516_v6 = vmax.f32 %v2489_v54, %v2493_v58  ;;  %v2218_v28 = vmax.f32 %v2216_v15, %v2217_v48 }
 0x556   : > { %v2517_v61 = vmax.f32 %v2515_v3, %v2495_v11  ;;  %v2518_v33 = vmax.f32 %v2516_v6, %v2497_v20  ;;  %v2219_v62 = vrot.slane %v2218_v28, 4 }
 0x558   : > { %v2519_v19 = vmax.f32 %v2517_v61, %v2499_v10  ;;  %v2520_v2 = vmax.f32 %v2518_v33, %v2501_v50  ;;  %v2220_v49 = vmax.f32 %v2218_v28, %v2219_v62 }
 0x55a   : > { %v2521_v29 = vmax.f32 %v2519_v19, %v2520_v2  ;;  %v2221_v34 = vrot.slane %v2220_v49, 2 }
 0x55c   : > { %v2522_v26 = vrot.slane %v2521_v29, 4  ;;  %v2222_v1 = vmax.f32 %v2220_v49, %v2221_v34 }
 0x55e   : > { %v2523_v7 = vmax.f32 %v2521_v29, %v2522_v26  ;;  %v2223_v14 = vrot.slane %v2222_v1, 1 }
 0x560   : > { %v2524_v39 = vrot.slane %v2523_v7, 2  ;;  %v2224_v63 = vmax.f32 %v2222_v1, %v2223_v14 }
 0x562   : > { %v2525_v36 = vmax.f32 %v2523_v7, %v2524_v39  ;;  %vm2238_vm0 = vcmp.lt.f32.partialorder %v4017_v42, %v2224_v63  ;;  %vm2240_vm13 = vcmp.lt.f32.partialorder %v4021_v44, %v2224_v63  ;;  %vm2242_vm14 = vcmp.lt.f32.partialorder %v4025_v46, %v2224_v63 }
 0x563   : > { %vm2244_vm15 = vcmp.lt.f32.partialorder %v4033_v51, %v2224_v63  ;;  %vm2246_vm1 = vcmp.lt.f32.partialorder %v4041_v55, %v2224_v63  ;;  %vm2248_vm2 = vcmp.lt.f32.partialorder %v4047_v59, %v2224_v63  ;;  %vm2250_vm3 = vcmp.lt.f32.partialorder %v4053_v4, %v2224_v63 }
 0x564   : > { %v2526_v18 = vrot.slane %v2525_v36, 1  ;;  %vm2252_vm4 = vcmp.lt.f32.partialorder %v4059_v8, %v2224_v63  ;;  %v2254_v22 = vsel %vm2238_vm0, %v4017_v42, -inf  ;;  %v2256_v25 = vsel %vm2240_vm13, %v4021_v44, -inf }
 0x565   : > { %v2258_v23 = vsel %vm2242_vm14, %v4025_v46, -inf  ;;  %v2260_v21 = vsel %vm2244_vm15, %v4033_v51, -inf  ;;  %v2262_v41 = vsel %vm2246_vm1, %v4041_v55, -inf  ;;  %v2264_v15 = vsel %vm2248_vm2, %v4047_v59, -inf }
 0x566   : > { %v2527_v48 = vmax.f32 %v2525_v36, %v2526_v18  ;;  %v2266_v0 = vsel %vm2250_vm3, %v4053_v4, -inf  ;;  %v2268_v54 = vsel %vm2252_vm4, %v4059_v8, -inf  ;;  %v2270_v16 = vmax.f32 %v2254_v22, %v2258_v23 }
 0x567   : > { %v2271_v58 = vmax.f32 %v2256_v25, %v2260_v21 }
 0x568   : > { %vm2529_vm5 = vcmp.lt.f32.partialorder %v4019_v43, %v2527_v48  ;;  %vm2531_vm6 = vcmp.lt.f32.partialorder %v4023_v45, %v2527_v48  ;;  %vm2533_vm7 = vcmp.lt.f32.partialorder %v4027_v47, %v2527_v48  ;;  %vm2535_vm8 = vcmp.lt.f32.partialorder %v4035_v52, %v2527_v48 }
 0x569   : > { %vm2537_vm9 = vcmp.lt.f32.partialorder %v4043_v56, %v2527_v48  ;;  %vm2539_vm10 = vcmp.lt.f32.partialorder %v4049_v60, %v2527_v48  ;;  %vm2541_vm11 = vcmp.lt.f32.partialorder %v4055_v5, %v2527_v48  ;;  %vm2543_vm12 = vcmp.lt.f32.partialorder %v4061_v9, %v2527_v48 }
 0x56a   : > { %v2545_v11 = vsel %vm2529_vm5, %v4019_v43, -inf  ;;  %v2547_v20 = vsel %vm2531_vm6, %v4023_v45, -inf  ;;  %v2549_v10 = vsel %vm2533_vm7, %v4027_v47, -inf  ;;  %v2551_v50 = vsel %vm2535_vm8, %v4035_v52, -inf }
 0x56b   : > { %v2553_v3 = vsel %vm2537_vm9, %v4043_v56, -inf  ;;  %v2555_v6 = vsel %vm2539_vm10, %v4049_v60, -inf  ;;  %v2557_v28 = vsel %vm2541_vm11, %v4055_v5, -inf  ;;  %v2559_v61 = vsel %vm2543_vm12, %v4061_v9, -inf }
 0x56c   : > { %v2573_v33 = vmax.f32 %v2545_v11, %v2549_v10  ;;  %v2574_v62 = vmax.f32 %v2547_v20, %v2551_v50  ;;  %v2272_v19 = vmax.f32 %v2270_v16, %v2262_v41  ;;  %v2273_v2 = vmax.f32 %v2271_v58, %v2264_v15 }
 0x56e   : > { %v2575_v49 = vmax.f32 %v2573_v33, %v2553_v3  ;;  %v2576_v29 = vmax.f32 %v2574_v62, %v2555_v6  ;;  %v2274_v34 = vmax.f32 %v2272_v19, %v2266_v0  ;;  %v2275_v26 = vmax.f32 %v2273_v2, %v2268_v54 }
 0x570   : > { %v2577_v1 = vmax.f32 %v2575_v49, %v2557_v28  ;;  %v2578_v7 = vmax.f32 %v2576_v29, %v2559_v61  ;;  %v2276_v14 = vmax.f32 %v2274_v34, %v2275_v26 }
 0x572   : > { %v2579_v39 = vmax.f32 %v2577_v1, %v2578_v7  ;;  %v2277_v63 = vrot.slane %v2276_v14, 4 }
 0x574   : > { %v2580_v36 = vrot.slane %v2579_v39, 4  ;;  %v2278_v18 = vmax.f32 %v2276_v14, %v2277_v63 }
 0x576   : > { %v2581_v22 = vmax.f32 %v2579_v39, %v2580_v36  ;;  %v2279_v25 = vrot.slane %v2278_v18, 2 }
 0x578   : > { %v2582_v23 = vrot.slane %v2581_v22, 2  ;;  %v2280_v21 = vmax.f32 %v2278_v18, %v2279_v25 }
 0x57a   : > { %v2583_v48 = vmax.f32 %v2581_v22, %v2582_v23  ;;  %v2281_v11 = vrot.slane %v2280_v21, 1 }
 0x57c   : > { %v2584_v20 = vrot.slane %v2583_v48, 1  ;;  %v2282_v41 = vmax.f32 %v2280_v21, %v2281_v11 }
 0x57e   : > { %v2585_v15 = vmax.f32 %v2583_v48, %v2584_v20  ;;  %vm2296_vm0 = vcmp.lt.f32.partialorder %v4017_v42, %v2282_v41  ;;  %vm2298_vm13 = vcmp.lt.f32.partialorder %v4021_v44, %v2282_v41  ;;  %vm2300_vm14 = vcmp.lt.f32.partialorder %v4025_v46, %v2282_v41 }
 0x57f   : > { %vm2302_vm15 = vcmp.lt.f32.partialorder %v4033_v51, %v2282_v41  ;;  %vm2304_vm1 = vcmp.lt.f32.partialorder %v4041_v55, %v2282_v41  ;;  %vm2306_vm2 = vcmp.lt.f32.partialorder %v4047_v59, %v2282_v41  ;;  %vm2308_vm3 = vcmp.lt.f32.partialorder %v4053_v4, %v2282_v41 }
 0x580   : > { %vm2587_vm4 = vcmp.lt.f32.partialorder %v4019_v43, %v2585_v15  ;;  %vm2589_vm5 = vcmp.lt.f32.partialorder %v4023_v45, %v2585_v15  ;;  %vm2591_vm6 = vcmp.lt.f32.partialorder %v4027_v47, %v2585_v15  ;;  %vm2593_vm7 = vcmp.lt.f32.partialorder %v4035_v52, %v2585_v15 }
 0x581   : > { %vm2595_vm8 = vcmp.lt.f32.partialorder %v4043_v56, %v2585_v15  ;;  %vm2597_vm9 = vcmp.lt.f32.partialorder %v4049_v60, %v2585_v15  ;;  %vm2599_vm10 = vcmp.lt.f32.partialorder %v4055_v5, %v2585_v15  ;;  %vm2601_vm11 = vcmp.lt.f32.partialorder %v4061_v9, %v2585_v15 }
 0x582   : > { %v2603_v0 = vsel %vm2587_vm4, %v4019_v43, -inf  ;;  %v2605_v54 = vsel %vm2589_vm5, %v4023_v45, -inf  ;;  %v2607_v16 = vsel %vm2591_vm6, %v4027_v47, -inf  ;;  %v2609_v58 = vsel %vm2593_vm7, %v4035_v52, -inf }
 0x583   : > { %v2611_v10 = vsel %vm2595_vm8, %v4043_v56, -inf  ;;  %v2613_v50 = vsel %vm2597_vm9, %v4049_v60, -inf  ;;  %v2615_v3 = vsel %vm2599_vm10, %v4055_v5, -inf  ;;  %v2617_v6 = vsel %vm2601_vm11, %v4061_v9, -inf }
 0x584   : > { %v2631_v28 = vmax.f32 %v2603_v0, %v2607_v16  ;;  %v2632_v61 = vmax.f32 %v2605_v54, %v2609_v58  ;;  %vm2310_vm12 = vcmp.lt.f32.partialorder %v4059_v8, %v2282_v41  ;;  %v2312_v33 = vsel %vm2296_vm0, %v4017_v42, -inf }
 0x585   : > { %v2314_v62 = vsel %vm2298_vm13, %v4021_v44, -inf  ;;  %v2316_v19 = vsel %vm2300_vm14, %v4025_v46, -inf  ;;  %v2318_v2 = vsel %vm2302_vm15, %v4033_v51, -inf  ;;  %v2320_v49 = vsel %vm2304_vm1, %v4041_v55, -inf }
 0x586   : > { %v2633_v29 = vmax.f32 %v2631_v28, %v2611_v10  ;;  %v2634_v34 = vmax.f32 %v2632_v61, %v2613_v50  ;;  %v2322_v26 = vsel %vm2306_vm2, %v4047_v59, -inf  ;;  %v2324_v1 = vsel %vm2308_vm3, %v4053_v4, -inf }
 0x587   : > { %v2326_v7 = vsel %vm2310_vm12, %v4059_v8, -inf  ;;  %v2328_v14 = vmax.f32 %v2312_v33, %v2316_v19  ;;  %v2329_v39 = vmax.f32 %v2314_v62, %v2318_v2 }
 0x588   : > { %v2635_v63 = vmax.f32 %v2633_v29, %v2615_v3  ;;  %v2636_v36 = vmax.f32 %v2634_v34, %v2617_v6 }
 0x589   : > { %v2330_v18 = vmax.f32 %v2328_v14, %v2320_v49  ;;  %v2331_v22 = vmax.f32 %v2329_v39, %v2322_v26 }
 0x58a   : > { %v2637_v25 = vmax.f32 %v2635_v63, %v2636_v36 }
 0x58b   : > { %v2332_v23 = vmax.f32 %v2330_v18, %v2324_v1  ;;  %v2333_v21 = vmax.f32 %v2331_v22, %v2326_v7 }
 0x58c   : > { %v2638_v48 = vrot.slane %v2637_v25, 4 }
 0x58d   : > { %v2334_v11 = vmax.f32 %v2332_v23, %v2333_v21 }
 0x58e   : > { %v2639_v20 = vmax.f32 %v2637_v25, %v2638_v48 }
 0x58f   : > { %v2335_v15 = vrot.slane %v2334_v11, 4 }
 0x590   : > { %v2640_v0 = vrot.slane %v2639_v20, 2 }
 0x591   : > { %v2336_v54 = vmax.f32 %v2334_v11, %v2335_v15 }
 0x592   : > { %v2641_v16 = vmax.f32 %v2639_v20, %v2640_v0 }
 0x593   : > { %v2337_v41 = vrot.slane %v2336_v54, 2 }
 0x594   : > { %v2642_v58 = vrot.slane %v2641_v16, 1 }
 0x595   : > { %v2338_v10 = vmax.f32 %v2336_v54, %v2337_v41 }
 0x596   : > { %v2643_v50 = vmax.f32 %v2641_v16, %v2642_v58 }
 0x597   : > { %v2339_v28 = vrot.slane %v2338_v10, 1 }
 0x598   : > { %vm2645_vm0 = vcmp.lt.f32.partialorder %v4019_v43, %v2643_v50  ;;  %vm2647_vm13 = vcmp.lt.f32.partialorder %v4023_v45, %v2643_v50  ;;  %vm2649_vm14 = vcmp.lt.f32.partialorder %v4027_v47, %v2643_v50  ;;  %vm2651_vm15 = vcmp.lt.f32.partialorder %v4035_v52, %v2643_v50 }
 0x599   : > { %vm2653_vm1 = vcmp.lt.f32.partialorder %v4043_v56, %v2643_v50  ;;  %vm2655_vm2 = vcmp.lt.f32.partialorder %v4049_v60, %v2643_v50  ;;  %vm2657_vm3 = vcmp.lt.f32.partialorder %v4055_v5, %v2643_v50  ;;  %vm2659_vm4 = vcmp.lt.f32.partialorder %v4061_v9, %v2643_v50 }
 0x59a   : > { %v2661_v3 = vsel %vm2645_vm0, %v4019_v43, -inf  ;;  %v2663_v6 = vsel %vm2647_vm13, %v4023_v45, -inf  ;;  %v2665_v61 = vsel %vm2649_vm14, %v4027_v47, -inf  ;;  %v2667_v33 = vsel %vm2651_vm15, %v4035_v52, -inf }
 0x59b   : > { %v2669_v62 = vsel %vm2653_vm1, %v4043_v56, -inf  ;;  %v2671_v19 = vsel %vm2655_vm2, %v4049_v60, -inf  ;;  %v2673_v2 = vsel %vm2657_vm3, %v4055_v5, -inf  ;;  %v2675_v49 = vsel %vm2659_vm4, %v4061_v9, -inf }
 0x59c   : > { %v2689_v29 = vmax.f32 %v2661_v3, %v2665_v61  ;;  %v2690_v34 = vmax.f32 %v2663_v6, %v2667_v33  ;;  %v2340_v26 = vmax.f32 %v2338_v10, %v2339_v28 }
 0x59e   : > { %v2691_v1 = vmax.f32 %v2689_v29, %v2669_v62  ;;  %v2692_v7 = vmax.f32 %v2690_v34, %v2671_v19  ;;  %vm2354_vm5 = vcmp.lt.f32.partialorder %v4017_v42, %v2340_v26  ;;  %vm2356_vm6 = vcmp.lt.f32.partialorder %v4021_v44, %v2340_v26  ;;  %v5506_v29 = vld [vmem:[#allocation14_spill] sm:$0xff] }
 0x59f   : > { %vm2358_vm7 = vcmp.lt.f32.partialorder %v4025_v46, %v2340_v26  ;;  %vm2360_vm8 = vcmp.lt.f32.partialorder %v4033_v51, %v2340_v26  ;;  %vm2362_vm9 = vcmp.lt.f32.partialorder %v4041_v55, %v2340_v26  ;;  %vm2364_vm10 = vcmp.lt.f32.partialorder %v4047_v59, %v2340_v26 }
 0x5a0   : > { %v2693_v14 = vmax.f32 %v2691_v1, %v2673_v2  ;;  %v2694_v39 = vmax.f32 %v2692_v7, %v2675_v49  ;;  %vm2366_vm11 = vcmp.lt.f32.partialorder %v4053_v4, %v2340_v26  ;;  %vm2368_vm12 = vcmp.lt.f32.partialorder %v4059_v8, %v2340_v26 }
 0x5a1   : > { %v2370_v63 = vsel %vm2354_vm5, %v4017_v42, -inf  ;;  %v2372_v36 = vsel %vm2356_vm6, %v4021_v44, -inf  ;;  %v2374_v18 = vsel %vm2358_vm7, %v4025_v46, -inf  ;;  %v2376_v22 = vsel %vm2360_vm8, %v4033_v51, -inf }
 0x5a2   : > { %v2695_v25 = vmax.f32 %v2693_v14, %v2694_v39  ;;  %v2378_v23 = vsel %vm2362_vm9, %v4041_v55, -inf  ;;  %v2380_v21 = vsel %vm2364_vm10, %v4047_v59, -inf  ;;  %v2382_v48 = vsel %vm2366_vm11, %v4053_v4, -inf }
 0x5a3   : > { %v2384_v11 = vsel %vm2368_vm12, %v4059_v8, -inf  ;;  %v2386_v20 = vmax.f32 %v2370_v63, %v2374_v18  ;;  %v2387_v15 = vmax.f32 %v2372_v36, %v2376_v22  ;;  %v5482_v49 = vpack.c.bf16 %v4138_v38, %v4136_v35 }
 0x5a4   : > { %v2696_v0 = vrot.slane %v2695_v25, 4 }
 0x5a5   : > { %v2388_v54 = vmax.f32 %v2386_v20, %v2378_v23  ;;  %v2389_v16 = vmax.f32 %v2387_v15, %v2380_v21 }
 0x5a6   : > { %v2697_v41 = vmax.f32 %v2695_v25, %v2696_v0 }
 0x5a7   : > { %v2390_v58 = vmax.f32 %v2388_v54, %v2382_v48  ;;  %v2391_v10 = vmax.f32 %v2389_v16, %v2384_v11 }
 0x5a8   : > { %v2698_v50 = vrot.slane %v2697_v41, 2 }
 0x5a9   : > { %v2392_v28 = vmax.f32 %v2390_v58, %v2391_v10 }
 0x5aa   : > { %v2699_v3 = vmax.f32 %v2697_v41, %v2698_v50 }
 0x5ab   : > { %v2393_v6 = vrot.slane %v2392_v28, 4 }
 0x5ac   : > { %v2700_v61 = vrot.slane %v2699_v3, 1 }
 0x5ad   : > { %v2394_v33 = vmax.f32 %v2392_v28, %v2393_v6 }
 0x5ae   : > { %v2701_v62 = vmax.f32 %v2699_v3, %v2700_v61 }
 0x5af   : > { %v2395_v19 = vrot.slane %v2394_v33, 2 }
 0x5b0   : > { %vm2703_vm0 = vcmp.ge.f32.partialorder %v4019_v43, %v2701_v62  ;;  %vm2705_vm13 = vcmp.ge.f32.partialorder %v4023_v45, %v2701_v62  ;;  %vm2707_vm14 = vcmp.ge.f32.partialorder %v4027_v47, %v2701_v62  ;;  %vm2709_vm15 = vcmp.ge.f32.partialorder %v4035_v52, %v2701_v62  ;;  %v5507_v47 = vld [vmem:[#allocation19_spill] sm:$0xff] }
 0x5b1   : > { %vm3408_vm1 = vmpackc.low %vm2705_vm13, %vm2703_vm0  ;;  %v2396_v2 = vmax.f32 %v2394_v33, %v2395_v19  ;;  %vm2711_vm2 = vcmp.ge.f32.partialorder %v4043_v56, %v2701_v62  ;;  %vm2713_vm3 = vcmp.ge.f32.partialorder %v4049_v60, %v2701_v62  ;;  %vm2715_vm5 = vcmp.ge.f32.partialorder %v4055_v5, %v2701_v62 }
 0x5b2   : > { %3409 = vmatprep.subr.msk.bf16.mxu0 %vm3408_vm1, %v5482_v49  ;;  %vm5194_vm4 = vmpackc.low %vm2709_vm15, %vm2707_vm14  ;;  %vm2717_vm6 = vcmp.ge.f32.partialorder %v4061_v9, %v2701_v62 }
 0x5b3   : > { %v2397_v43 = vrot.slane %v2396_v2, 1  ;;  %vm5200_vm7 = vmpackc.low %vm2713_vm3, %vm2711_vm2 }
 0x5b4   : > { %vm5204_vm8 = vmpackc.low %vm2717_vm6, %vm2715_vm5 }
 0x5b5   : > { %v2398_v52 = vmax.f32 %v2396_v2, %v2397_v43 }
 0x5b7   : > { %vm2412_vm9 = vcmp.lt.f32.partialorder %v4017_v42, %v2398_v52  ;;  %vm2414_vm10 = vcmp.lt.f32.partialorder %v4021_v44, %v2398_v52  ;;  %vm2416_vm11 = vcmp.lt.f32.partialorder %v4025_v46, %v2398_v52  ;;  %vm2418_vm12 = vcmp.lt.f32.partialorder %v4033_v51, %v2398_v52 }
 0x5b8   : > { %vm2420_vm0 = vcmp.lt.f32.partialorder %v4041_v55, %v2398_v52  ;;  %vm2422_vm13 = vcmp.lt.f32.partialorder %v4047_v59, %v2398_v52  ;;  %vm2424_vm14 = vcmp.lt.f32.partialorder %v4053_v4, %v2398_v52  ;;  %vm2426_vm15 = vcmp.lt.f32.partialorder %v4059_v8, %v2398_v52 }
 0x5b9   : > { %v2428_v56 = vsel %vm2412_vm9, %v4017_v42, -inf  ;;  %v2430_v60 = vsel %vm2414_vm10, %v4021_v44, -inf  ;;  %v2432_v5 = vsel %vm2416_vm11, %v4025_v46, -inf  ;;  %v2434_v9 = vsel %vm2418_vm12, %v4033_v51, -inf }
 0x5ba   : > { %v2436_v35 = vsel %vm2420_vm0, %v4041_v55, -inf  ;;  %v2438_v38 = vsel %vm2422_vm13, %v4047_v59, -inf  ;;  %v2440_v34 = vsel %vm2424_vm14, %v4053_v4, -inf  ;;  %v2442_v26 = vsel %vm2426_vm15, %v4059_v8, -inf }
 0x5bb   : > { %v2444_v1 = vmax.f32 %v2428_v56, %v2432_v5  ;;  %v2445_v7 = vmax.f32 %v2430_v60, %v2434_v9 }
 0x5bd   : > { %v2446_v14 = vmax.f32 %v2444_v1, %v2436_v35  ;;  %v2447_v39 = vmax.f32 %v2445_v7, %v2438_v38 }
 0x5bf   : > { %v2448_v63 = vmax.f32 %v2446_v14, %v2440_v34  ;;  %v2449_v36 = vmax.f32 %v2447_v39, %v2442_v26 }
 0x5c1   : > { %v2450_v18 = vmax.f32 %v2448_v63, %v2449_v36 }
 0x5c3   : > { %v2451_v22 = vrot.slane %v2450_v18, 4 }
 0x5c5   : > { %v2452_v25 = vmax.f32 %v2450_v18, %v2451_v22 }
 0x5c7   : > { %v2453_v23 = vrot.slane %v2452_v25, 2 }
 0x5c9   : > { %v2454_v21 = vmax.f32 %v2452_v25, %v2453_v23 }
 0x5cb   : > { %v2455_v48 = vrot.slane %v2454_v21, 1 }
 0x5cd   : > { %v2456_v11 = vmax.f32 %v2454_v21, %v2455_v48 }
 0x5cf   : > { %vm2470_vm1 = vcmp.lt.f32.partialorder %v4017_v42, %v2456_v11  ;;  %vm2472_vm2 = vcmp.lt.f32.partialorder %v4021_v44, %v2456_v11  ;;  %vm2474_vm3 = vcmp.lt.f32.partialorder %v4025_v46, %v2456_v11  ;;  %vm2476_vm5 = vcmp.lt.f32.partialorder %v4033_v51, %v2456_v11 }
 0x5d0   : > { %vm2478_vm6 = vcmp.lt.f32.partialorder %v4041_v55, %v2456_v11  ;;  %vm2480_vm9 = vcmp.lt.f32.partialorder %v4047_v59, %v2456_v11  ;;  %vm2482_vm10 = vcmp.lt.f32.partialorder %v4053_v4, %v2456_v11  ;;  %vm2484_vm11 = vcmp.lt.f32.partialorder %v4059_v8, %v2456_v11 }
 0x5d1   : > { %v2486_v20 = vsel %vm2470_vm1, %v4017_v42, -inf  ;;  %v2488_v15 = vsel %vm2472_vm2, %v4021_v44, -inf  ;;  %v2490_v0 = vsel %vm2474_vm3, %v4025_v46, -inf  ;;  %v2492_v54 = vsel %vm2476_vm5, %v4033_v51, -inf }
 0x5d2   : > { %v2494_v16 = vsel %vm2478_vm6, %v4041_v55, -inf  ;;  %v2496_v41 = vsel %vm2480_vm9, %v4047_v59, -inf  ;;  %v2498_v58 = vsel %vm2482_vm10, %v4053_v4, -inf  ;;  %v2500_v10 = vsel %vm2484_vm11, %v4059_v8, -inf }
 0x5d3   : > { %v2502_v50 = vmax.f32 %v2486_v20, %v2490_v0  ;;  %v2503_v28 = vmax.f32 %v2488_v15, %v2492_v54 }
 0x5d5   : > { %v2504_v3 = vmax.f32 %v2502_v50, %v2494_v16  ;;  %v2505_v6 = vmax.f32 %v2503_v28, %v2496_v41 }
 0x5d7   : > { %v2506_v61 = vmax.f32 %v2504_v3, %v2498_v58  ;;  %v2507_v33 = vmax.f32 %v2505_v6, %v2500_v10 }
 0x5d9   : > { %v2508_v62 = vmax.f32 %v2506_v61, %v2507_v33 }
 0x5db   : > { %v2509_v19 = vrot.slane %v2508_v62, 4 }
 0x5dd   : > { %v2510_v2 = vmax.f32 %v2508_v62, %v2509_v19 }
 0x5df   : > { %v2511_v49 = vrot.slane %v2510_v2, 2 }
 0x5e1   : > { %v2512_v43 = vmax.f32 %v2510_v2, %v2511_v49 }
 0x5e3   : > { %v2513_v52 = vrot.slane %v2512_v43, 1 }
 0x5e5   : > { %v2514_v56 = vmax.f32 %v2512_v43, %v2513_v52 }
 0x5e7   : > { %vm2528_vm12 = vcmp.lt.f32.partialorder %v4017_v42, %v2514_v56  ;;  %vm2530_vm0 = vcmp.lt.f32.partialorder %v4021_v44, %v2514_v56  ;;  %vm2532_vm13 = vcmp.lt.f32.partialorder %v4025_v46, %v2514_v56  ;;  %vm2534_vm14 = vcmp.lt.f32.partialorder %v4033_v51, %v2514_v56 }
 0x5e8   : > { %vm2536_vm15 = vcmp.lt.f32.partialorder %v4041_v55, %v2514_v56  ;;  %vm2538_vm1 = vcmp.lt.f32.partialorder %v4047_v59, %v2514_v56  ;;  %vm2540_vm2 = vcmp.lt.f32.partialorder %v4053_v4, %v2514_v56  ;;  %vm2542_vm3 = vcmp.lt.f32.partialorder %v4059_v8, %v2514_v56 }
 0x5e9   : > { %v2544_v60 = vsel %vm2528_vm12, %v4017_v42, -inf  ;;  %v2546_v5 = vsel %vm2530_vm0, %v4021_v44, -inf  ;;  %v2548_v9 = vsel %vm2532_vm13, %v4025_v46, -inf  ;;  %v2550_v35 = vsel %vm2534_vm14, %v4033_v51, -inf }
 0x5ea   : > { %v2552_v38 = vsel %vm2536_vm15, %v4041_v55, -inf  ;;  %v2554_v34 = vsel %vm2538_vm1, %v4047_v59, -inf  ;;  %v2556_v26 = vsel %vm2540_vm2, %v4053_v4, -inf  ;;  %v2558_v1 = vsel %vm2542_vm3, %v4059_v8, -inf }
 0x5eb   : > { %v2560_v7 = vmax.f32 %v2544_v60, %v2548_v9  ;;  %v2561_v14 = vmax.f32 %v2546_v5, %v2550_v35 }
 0x5ed   : > { %v2562_v39 = vmax.f32 %v2560_v7, %v2552_v38  ;;  %v2563_v63 = vmax.f32 %v2561_v14, %v2554_v34 }
 0x5ef   : > { %v2564_v36 = vmax.f32 %v2562_v39, %v2556_v26  ;;  %v2565_v18 = vmax.f32 %v2563_v63, %v2558_v1 }
 0x5f1   : > { %v2566_v22 = vmax.f32 %v2564_v36, %v2565_v18 }
 0x5f3   : > { %v2567_v25 = vrot.slane %v2566_v22, 4 }
 0x5f5   : > { %v2568_v23 = vmax.f32 %v2566_v22, %v2567_v25 }
 0x5f7   : > { %v2569_v21 = vrot.slane %v2568_v23, 2 }
 0x5f9   : > { %v2570_v48 = vmax.f32 %v2568_v23, %v2569_v21 }
 0x5fb   : > { %v2571_v11 = vrot.slane %v2570_v48, 1 }
 0x5fd   : > { %v2572_v20 = vmax.f32 %v2570_v48, %v2571_v11 }
 0x5ff   : > { %vm2586_vm5 = vcmp.lt.f32.partialorder %v4017_v42, %v2572_v20  ;;  %vm2588_vm6 = vcmp.lt.f32.partialorder %v4021_v44, %v2572_v20  ;;  %vm2590_vm9 = vcmp.lt.f32.partialorder %v4025_v46, %v2572_v20  ;;  %vm2592_vm10 = vcmp.lt.f32.partialorder %v4033_v51, %v2572_v20 }
 0x600   : > { %vm2594_vm11 = vcmp.lt.f32.partialorder %v4041_v55, %v2572_v20  ;;  %vm2596_vm12 = vcmp.lt.f32.partialorder %v4047_v59, %v2572_v20  ;;  %vm2598_vm0 = vcmp.lt.f32.partialorder %v4053_v4, %v2572_v20  ;;  %vm2600_vm13 = vcmp.lt.f32.partialorder %v4059_v8, %v2572_v20 }
 0x601   : > { %v2602_v15 = vsel %vm2586_vm5, %v4017_v42, -inf  ;;  %v2604_v0 = vsel %vm2588_vm6, %v4021_v44, -inf  ;;  %v2606_v54 = vsel %vm2590_vm9, %v4025_v46, -inf  ;;  %v2608_v16 = vsel %vm2592_vm10, %v4033_v51, -inf }
 0x602   : > { %v2610_v41 = vsel %vm2594_vm11, %v4041_v55, -inf  ;;  %v2612_v58 = vsel %vm2596_vm12, %v4047_v59, -inf  ;;  %v2614_v10 = vsel %vm2598_vm0, %v4053_v4, -inf  ;;  %v2616_v50 = vsel %vm2600_vm13, %v4059_v8, -inf }
 0x603   : > { %v2618_v28 = vmax.f32 %v2602_v15, %v2606_v54  ;;  %v2619_v3 = vmax.f32 %v2604_v0, %v2608_v16  ;;  %v5489_v0 = vpack.c.bf16 %v4250_v57, %v4244_v37  ;;  %v5497_v37 = vld [vmem:[#allocation26_spill] sm:$0xff]  ;;  %v5498_v57 = vld [vmem:[#allocation25_spill] sm:$0xff] }
 0x604   : > { %v5508_v54 = vld [vmem:[#allocation18_spill] sm:$0xff]  ;;  %v5509_v16 = vld [vmem:[#allocation17_spill] sm:$0xff] }
 0x605   : > { %v2620_v6 = vmax.f32 %v2618_v28, %v2610_v41  ;;  %v2621_v61 = vmax.f32 %v2619_v3, %v2612_v58  ;;  %v5510_v41 = vld [vmem:[#allocation21_spill] sm:$0xff]  ;;  %v391_v3 = vld [vmem:[#allocation5 + $0x8] sm:$0xff] }
 0x606   : > { %v704_v58 = vadd.f32 %v5510_v41, %v5509_v16  ;;  %v390_v28 = vld [vmem:[#allocation5] sm:$0xff] }
 0x607   : > { %v2622_v33 = vmax.f32 %v2620_v6, %v2614_v10  ;;  %v2623_v62 = vmax.f32 %v2621_v61, %v2616_v50  ;;  %v392_v6 = vld [vmem:[#allocation5 + $0x10] sm:$0xff]  ;;  %v393_v61 = vld [vmem:[#allocation5 + $0x18] sm:$0xff] }
 0x608   : > { %v708_v50 = vmax.f32 %v704_v58, 0.0 }
 0x609   : > { %v2624_v19 = vmax.f32 %v2622_v33, %v2623_v62  ;;  %v394_v33 = vld [vmem:[%s5437_s7] sm:$0xff]  ;;  %v5515_v62 = vld [vmem:[#allocation28_spill] sm:$0xff] }
 0x60a   : > { %3126 = vperm.xlu0 %3526, %v394_v33  }
 0x60b   : > { %v2625_v2 = vrot.slane %v2624_v19, 4 }
 0x60d   : > { %v2626_v49 = vmax.f32 %v2624_v19, %v2625_v2  ;;  %v2773_v19 = vrot.slane %v5515_v62, 4  ;;  %v5516_v2 = vld [vmem:[#allocation27_spill] sm:$0xff] }
 0x60f   : > { %v2627_v43 = vrot.slane %v2626_v49, 2 }
 0x611   : > { %v2628_v52 = vmax.f32 %v2626_v49, %v2627_v43  ;;  %v2786_v49 = vrot.slane %v5516_v2, 4  ;;  %v2774_v43 = vadd.f32 %v2773_v19, %v5515_v62 }
 0x613   : > { %v2629_v56 = vrot.slane %v2628_v52, 1 }
 0x615   : > { %v2630_v60 = vmax.f32 %v2628_v52, %v2629_v56  ;;  %v2787_v52 = vadd.f32 %v2786_v49, %v5516_v2  ;;  %v2775_v56 = vrot.slane %v2774_v43, 2 }
 0x617   : > { %vm2644_vm14 = vcmp.lt.f32.partialorder %v4017_v42, %v2630_v60  ;;  %vm2646_vm15 = vcmp.lt.f32.partialorder %v4021_v44, %v2630_v60  ;;  %vm2648_vm1 = vcmp.lt.f32.partialorder %v4025_v46, %v2630_v60  ;;  %vm2650_vm2 = vcmp.lt.f32.partialorder %v4033_v51, %v2630_v60 }
 0x618   : > { %vm2652_vm3 = vcmp.lt.f32.partialorder %v4041_v55, %v2630_v60  ;;  %vm2654_vm5 = vcmp.lt.f32.partialorder %v4047_v59, %v2630_v60  ;;  %vm2656_vm6 = vcmp.lt.f32.partialorder %v4053_v4, %v2630_v60  ;;  %vm2658_vm9 = vcmp.lt.f32.partialorder %v4059_v8, %v2630_v60 }
 0x619   : > { %v2660_v5 = vsel %vm2644_vm14, %v4017_v42, -inf  ;;  %v2662_v9 = vsel %vm2646_vm15, %v4021_v44, -inf  ;;  %v2664_v35 = vsel %vm2648_vm1, %v4025_v46, -inf  ;;  %v2666_v38 = vsel %vm2650_vm2, %v4033_v51, -inf }
 0x61a   : > { %v2668_v34 = vsel %vm2652_vm3, %v4041_v55, -inf  ;;  %v2670_v26 = vsel %vm2654_vm5, %v4047_v59, -inf  ;;  %v2672_v1 = vsel %vm2656_vm6, %v4053_v4, -inf  ;;  %v2674_v7 = vsel %vm2658_vm9, %v4059_v8, -inf }
 0x61b   : > { %v2676_v14 = vmax.f32 %v2660_v5, %v2664_v35  ;;  %v2677_v39 = vmax.f32 %v2662_v9, %v2666_v38  ;;  %v2788_v60 = vrot.slane %v2787_v52, 2  ;;  %v2776_v5 = vadd.f32 %v2775_v56, %v2774_v43 }
 0x61d   : > { %v2678_v63 = vmax.f32 %v2676_v14, %v2668_v34  ;;  %v2679_v36 = vmax.f32 %v2677_v39, %v2670_v26  ;;  %v2789_v9 = vadd.f32 %v2788_v60, %v2787_v52  ;;  %v2777_v35 = vrot.slane %v2776_v5, 1 }
 0x61f   : > { %v2680_v18 = vmax.f32 %v2678_v63, %v2672_v1  ;;  %v2681_v22 = vmax.f32 %v2679_v36, %v2674_v7  ;;  %v2790_v38 = vrot.slane %v2789_v9, 1  ;;  %v2778_v34 = vadd.f32 %v2777_v35, %v2776_v5 }
 0x621   : > { %v2682_v25 = vmax.f32 %v2680_v18, %v2681_v22  ;;  %v2791_v26 = vadd.f32 %v2790_v38, %v2789_v9  ;;  %3559 = vrcp.f32 %v2778_v34 }
 0x623   : > { %v2683_v23 = vrot.slane %v2682_v25, 4  ;;  %3561 = vrcp.f32 %v2791_v26 }
 0x625   : > { %v2684_v21 = vmax.f32 %v2682_v25, %v2683_v23 }
 0x627   : > { %v2685_v48 = vrot.slane %v2684_v21, 2 }
 0x629   : > { %v2686_v11 = vmax.f32 %v2684_v21, %v2685_v48 }
 0x62b   : > { %v2687_v20 = vrot.slane %v2686_v11, 1  ;;  %v3560_v1 = vpop.eup %3559 }
 0x62d   : > { %v2688_v15 = vmax.f32 %v2686_v11, %v2687_v20  ;;  %v3562_v14 = vpop.eup %3561 }
 0x62f   : > { %vm2702_vm10 = vcmp.ge.f32.partialorder %v4017_v42, %v2688_v15  ;;  %vm2704_vm11 = vcmp.ge.f32.partialorder %v4021_v44, %v2688_v15  ;;  %vm2706_vm12 = vcmp.ge.f32.partialorder %v4025_v46, %v2688_v15  ;;  %vm2708_vm0 = vcmp.ge.f32.partialorder %v4033_v51, %v2688_v15 }
 0x630   : > { %vm3411_vm13 = vmpackc.low %vm2704_vm11, %vm2702_vm10  ;;  %vm2710_vm14 = vcmp.ge.f32.partialorder %v4041_v55, %v2688_v15  ;;  %vm2712_vm15 = vcmp.ge.f32.partialorder %v4047_v59, %v2688_v15  ;;  %vm2714_vm1 = vcmp.ge.f32.partialorder %v4053_v4, %v2688_v15  ;;  %vm2716_vm2 = vcmp.ge.f32.partialorder %v4059_v8, %v2688_v15  ;;  %v5494_v59 = vld [vmem:[#allocation24_spill] sm:$0xff]  ;;  %v5495_v4 = vld [vmem:[#allocation23_spill] sm:$0xff] }
 0x631   : > { %3412 = vmatpush1.bf16.msk.msra.mxu0 %vm3411_vm13, %v5489_v0  ;;  %vm3417_vm3 = vmpackc.low %vm2708_vm0, %vm2706_vm12  ;;  %v5490_v42 = vpack.c.bf16 %v4266_v32, %v4252_v13  ;;  %v5491_v44 = vpack.c.bf16 %v4273_v30, %v4268_v31  ;;  %v5492_v46 = vpack.c.bf16 %v4283_v12, %v4276_v53  ;;  %v5493_v51 = vpack.c.bf16 %v4300_v24, %v4296_v17  ;;  %v5500_v32 = vld [vmem:[#allocation13_spill] sm:$0xff]  ;;  %v5501_v31 = vld [vmem:[#allocation20_spill] sm:$0xff] }
 0x632   : > { %vm3423_vm5 = vmpackc.low %vm2712_vm15, %vm2710_vm14  ;;  %v701_v55 = vadd.f32 %v3960_v40, %v3987_v27  ;;  %v5496_v8 = vpack.c.bf16 %v5494_v59, %v5495_v4  ;;  %v5499_v13 = vpack.c.bf16 %v5497_v37, %v5498_v57  ;;  %v702_v30 = vadd.f32 %v5501_v31, %v5500_v32  ;;  %v5502_v12 = vld [vmem:[#allocation16_spill] sm:$0xff]  ;;  %v5503_v40 = vld [vmem:[#allocation15_spill] sm:$0xff]  ;;  %v3132_v32 = vpop.permute.xlu1 %3131 }
 0x633   : > { %3415 = vmatprep.subr.msk.bf16.mxu0 %vm5194_vm4, %v5490_v42  ;;  %vm3429_vm6 = vmpackc.low %vm2716_vm2, %vm2714_vm1  ;;  %vm2808_vm4 = vcmask 523264   ;;  %v5504_v27 = vmov 0.0   ;;  %v5505_v24 = vld [vmem:[#allocation22_spill] sm:$0xff]  ;;  %v386_v4 = vld [vmem:[#allocation2] sm:$0xff] }
 0x634   : > { %v705_v53 = vmax.f32 %v701_v55, 0.0  ;;  %v706_v17 = vmax.f32 %v702_v30, 0.0  ;;  %v703_v45 = vadd.f32 %v5506_v29, %v5505_v24  ;;  %v388_v37 = vld [vmem:[#allocation2 + $0x10] sm:$0xff]  ;;  %v389_v57 = vld [vmem:[#allocation2 + $0x18] sm:$0xff] }
 0x635   : > { %3418 = vmatpush1.bf16.msk.msra.mxu0 %vm3417_vm3, %v5491_v44 }
 0x636   : > { %3421 = vmatprep.subr.msk.bf16.mxu0 %vm5200_vm7, %v5492_v46  ;;  %v707_v10 = vmax.f32 %v703_v45, 0.0  ;;  %vm5511_vm7 = vcmask 261120   ;;  %v3137_v45 = vpop.permute.xlu1 %3136 }
 0x637   : > { %vm5513_vm9 = vmmov %vm5511_vm7 }
 0x638   : > { %vm5514_vm10 = vmmov %vm5511_vm7 }
 0x639   : > { %3424 = vmatpush1.bf16.msk.msra.mxu0 %vm3423_vm5, %v5493_v51  ;;  %vm5517_vm11 = vmmov %vm5511_vm7 }
 0x63a   : > { %3427 = vmatprep.subr.msk.bf16.mxu0 %vm5204_vm8, %v5496_v8  ;;  %vm5512_vm8 = vmmov %vm5511_vm7  ;;  %v387_v8 = vld [vmem:[#allocation2 + $0x8] sm:$0xff] }
 0x63b   : > { %vm5518_vm12 = vmmov %vm5511_vm7 }
 0x63c   : > { %vm5519_vm0 = vmmov %vm5511_vm7 }
 0x63d   : > { %3430 = vmatpush1.bf16.msk.msra.mxu0 %vm3429_vm6, %v5499_v13  ;;  %vm5520_vm13 = vmmov %vm5519_vm0 }
 0x63e   : > { %3432 = vmatprep.subr.bf16.mxu0 %v5502_v12 }
 0x640   : > { %3331 = vmatmul.mubr.msk.f32.vlgmr.msra.gmra.mrb[8].mxu0 %vm2808_vm4, %v705_v53 }
 0x641   : > { %3434 = vmatpush1.bf16.msra.mxu0 %v5503_v40  ;;  %2891 = vmatprep.mubr.f32.mxu0 %v5504_v27 }
 0x642   : > { %3436 = vmatprep.subr.bf16.mxu0 %v5507_v47 }
 0x644   : > { %3332 = vmatmul.mubr.msk.f32.gmra.mrb[10].mxu0 %vm2808_vm4, %v706_v17 }
 0x645   : > { %3438 = vmatpush1.bf16.msra.mxu0 %v5508_v54  ;;  %2897 = vmatprep.mubr.f32.mxu0 %v5504_v27 }
 0x648   : > { %3333 = vmatmul.mubr.msk.f32.gmra.mrb[12].mxu0 %vm2808_vm4, %v707_v10 }
 0x649   : > { %2903 = vmatprep.mubr.f32.mxu0 %v5504_v27 }
 0x64c   : > { %3334 = vmatmul.mubr.msk.f32.gmra.mrb[14].mxu0 %vm2808_vm4, %v708_v50 }
 0x64d   : > { %2998 = vmatprep.mubr.f32.mxu0 %v5504_v27 }
 0x650   : > { %3335 = vmatmul.mubr.msk.f32.vlgmr.msra.gmra.mrb[16].mxu0 %vm5511_vm7, %v390_v28 }
 0x651   : > { %3004 = vmatprep.mubr.f32.mxu0 %v5504_v27 }
 0x654   : > { %3336 = vmatmul.mubr.msk.f32.gmra.mrb[18].mxu0 %vm5512_vm8, %v391_v3  ;;  %v3142_v3 = vpop.permute.xlu1 %3141 }
 0x655   : > { %3010 = vmatprep.mubr.f32.mxu0 %v5504_v27 }
 0x658   : > { %3337 = vmatmul.mubr.msk.f32.gmra.mrb[20].mxu0 %vm5513_vm9, %v392_v6 }
 0x659   : > { %3016 = vmatprep.mubr.f32.mxu0 %v5504_v27 }
 0x65c   : > { %3338 = vmatmul.mubr.msk.f32.gmra.mrb[22].mxu0 %vm5514_vm10, %v393_v61 }
 0x65d   : > { %3099 = vmatprep.mubr.f32.mxu0 %v5504_v27 }
 0x689   : > { %v3127_v13 = vpop.permute.xlu0 %3126 }
 0x713   : > { %v2887_v7 = vpop.f32.mrb[8].mxu0 }
 0x714   : > { %v2914_v39 = vmul.f32 %v3560_v1, %v2887_v7  ;;  %v2889_v63 = vpop.f32.mrb[9].mxu0 }
 0x715   : > { %v2915_v36 = vmul.f32 %v3562_v14, %v2889_v63 }
 0x717   : > { %v2893_v18 = vpop.f32.mrb[10].mxu0 }
 0x718   : > { %v2916_v22 = vmul.f32 %v3560_v1, %v2893_v18  ;;  %v2895_v25 = vpop.f32.mrb[11].mxu0 }
 0x719   : > { %v2917_v23 = vmul.f32 %v3562_v14, %v2895_v25 }
 0x71a   : > { %v3441_v21 = vpack.c.bf16 %v2916_v22, %v2914_v39 }
 0x71b   : > { %v3439_v48 = vpack.c.bf16 %v2917_v23, %v2915_v36  ;;  %v2899_v11 = vpop.f32.mrb[12].mxu0 }
 0x71c   : > { %v2918_v20 = vmul.f32 %v3560_v1, %v2899_v11  ;;  %v2901_v15 = vpop.f32.mrb[13].mxu0 }
 0x71d   : > { %v2919_v0 = vmul.f32 %v3562_v14, %v2901_v15  ;;  %3440 = vmatprep.subr.bf16.mxu0 %v3439_v48 }
 0x71e   : > { %3442 = vmatpush1.bf16.msra.mxu0 %v3441_v21 }
 0x71f   : > { %v2905_v42 = vpop.f32.mrb[14].mxu0 }
 0x720   : > { %v2920_v44 = vmul.f32 %v3560_v1, %v2905_v42  ;;  %v2907_v46 = vpop.f32.mrb[15].mxu0 }
 0x721   : > { %v2921_v51 = vmul.f32 %v3562_v14, %v2907_v46 }
 0x722   : > { %v3445_v55 = vpack.c.bf16 %v2920_v44, %v2918_v20 }
 0x723   : > { %v3443_v59 = vpack.c.bf16 %v2921_v51, %v2919_v0 }
 0x725   : > { %3444 = vmatprep.subr.bf16.mxu0 %v3443_v59 }
 0x726   : > { %3446 = vmatpush1.bf16.msra.mxu0 %v3445_v55 }
 0x729   : > { %3339 = vmatmul.mubr.msk.f32.vlgmr.msra.gmra.mrb[16].mxu0 %vm5517_vm11, %v386_v4 }
 0x72a   : > { %3105 = vmatprep.mubr.f32.mxu0 %v5504_v27 }
 0x72d   : > { %3340 = vmatmul.mubr.msk.f32.gmra.mrb[18].mxu0 %vm5518_vm12, %v387_v8 }
 0x72e   : > { %3111 = vmatprep.mubr.f32.mxu0 %v5504_v27 }
 0x731   : > { %3341 = vmatmul.mubr.msk.f32.gmra.mrb[20].mxu0 %vm5519_vm0, %v388_v37 }
 0x732   : > { %3117 = vmatprep.mubr.f32.mxu0 %v5504_v27 }
 0x735   : > { %3342 = vmatmul.mubr.msk.f32.gmra.mrb[22].mxu0 %vm5520_vm13, %v389_v57 }
 0x7fc   : > { %v3101_v31 = vpop.f32.mrb[16].mxu0 }
 0x7fd   : > { %v3144_v30 = vadd.f32 %v3127_v13, %v3101_v31  ;;  %v3103_v53 = vpop.f32.mrb[17].mxu0 }
 0x7fe   : > { %v3145_v12 = vadd.f32 %v3127_v13, %v3103_v53 }
 0x7ff   : > { %v3152_v40 = vmax.f32 %v3144_v30, 0.0 }
 0x800   : > { %v3153_v17 = vmax.f32 %v3145_v12, 0.0  ;;  %v3107_v24 = vpop.f32.mrb[18].mxu0 }
 0x801   : > { %3160 = vst [vmem:[%s5368_s14] sm:$0xff] %v3152_v40  ;;  %v3146_v27 = vadd.f32 %v3132_v32, %v3107_v24  ;;  %v3109_v29 = vpop.f32.mrb[19].mxu0 }
 0x802   : > { %3161 = vst [vmem:[%s5368_s14 + $0x8] sm:$0xff] %v3153_v17  ;;  %v3147_v47 = vadd.f32 %v3132_v32, %v3109_v29 }
 0x803   : > { %v3154_v54 = vmax.f32 %v3146_v27, 0.0 }
 0x804   : > { %v3155_v16 = vmax.f32 %v3147_v47, 0.0  ;;  %v3113_v41 = vpop.f32.mrb[20].mxu0 }
 0x805   : > { %3162 = vst [vmem:[%s5368_s14 + $0x10] sm:$0xff] %v3154_v54  ;;  %v3148_v58 = vadd.f32 %v3137_v45, %v3113_v41  ;;  %v3115_v10 = vpop.f32.mrb[21].mxu0 }
 0x806   : > { %3163 = vst [vmem:[%s5368_s14 + $0x18] sm:$0xff] %v3155_v16  ;;  %v3149_v50 = vadd.f32 %v3137_v45, %v3115_v10 }
 0x807   : > { %v3156_v28 = vmax.f32 %v3148_v58, 0.0 }
 0x808   : > { %v3157_v6 = vmax.f32 %v3149_v50, 0.0  ;;  %v3119_v61 = vpop.f32.mrb[22].mxu0 }
 0x809   : > { %3164 = vst [vmem:[%s5368_s14 + $0x20] sm:$0xff] %v3156_v28  ;;  %v3150_v33 = vadd.f32 %v3142_v3, %v3119_v61  ;;  %v3121_v62 = vpop.f32.mrb[23].mxu0 }
 0x80a   : > { %3165 = vst [vmem:[%s5368_s14 + $0x28] sm:$0xff] %v3157_v6  ;;  %v3151_v19 = vadd.f32 %v3142_v3, %v3121_v62 }
 0x80b   : > { %v3158_v2 = vmax.f32 %v3150_v33, 0.0 }
 0x80c   : > { %v3159_v49 = vmax.f32 %v3151_v19, 0.0 }
 0x80d   : > { %3166 = vst [vmem:[%s5368_s14 + $0x30] sm:$0xff] %v3158_v2 }
 0x80e   : > { %3167 = vst [vmem:[%s5368_s14 + $0x38] sm:$0xff] %v3159_v49 }
 0x80f   : > { %3632 = shalt.err (!%p3629_p11)
}
 0x810   : > { %s3633_s12 = scalar_lea.hbm %s5383_s23, 1024  ;;  %s3637_s19 = scalar_lea.hbm %s5438_s8, 2048 }
 0x811   : > { %p3634_p13 = scmp.ne.s32.totalorder %s5383_s23, %s3633_s12  ;;  %p3638_p6 = scmp.lt.u32.totalorder %s5383_s23, %s5438_s8 }
 0x812   : > { %p3639_p9 = scmp.lt.u32.totalorder %s3637_s19, %s3633_s12  ;;  %p3641_p12 = scmp.lt.u32.totalorder %s3633_s12, %s5383_s23 }
 0x813   : > { %p3635_p5 = pnand %p3634_p13, %p5521_p1 }
 0x814   : > { %p3640_p10 = por %p3639_p9, %p3638_p6 }
 0x815   : > { %p3636_p0 = pneg %p3635_p5 }
 0x816   : > { %p3642_p2 = por %p3641_p12, %p3640_p10 }
 0x818   : > { %p3643_p3 = pnand %p3642_p2, %p3636_p0 }
 0x81a   : > { %3646 = shalt.err (!%p3643_p3)
}
 0x81b   : > { %s3698_s20 = smov 256   ;;  %s3699_s22 = smov 16  }
 0x81c   : > { %3467 = dma.vmem_to_hbm [thread:$0]  (%p5521_p1), %s5378_s17, 1024, %s5383_s23, %s5389_s24, %s3698_s20, %s3698_s20, %s3699_s22  }
 0x81d PF: > { %p3484_p4 = scmp.ge.s32.totalorder %s3689_s30, 2  ;;  %s3197_s21 = sand.u32 1, %s3677_s27  }
 0x81e   : > { %p5522_p7 = scmp.ne.s32.totalorder %s5458_s16, 0  ;;  %s3198_s9 = scalar_lea.sflag [#allocation4], %s3197_s21 }
 0x820   : > { %p3477_p8 = pnand %p3484_p4, %p5522_p7 }
 0x822   : > { %3672 = dma.done.wait (!%p3477_p8), %s3198_s9, 1024  }
 0x823   : > { %3674 = vsyncadd (!%p3477_p8), %s3198_s9, 4294966272  ;;  %s5523_s25 = sld [smem:[#allocation11_spill]]  ;;  %s5524_s29 = sld [smem:[#allocation12_spill]] }
 0x824   : > { %p20_p11 = scmp.ge.s32.totalorder %s3770_s11, 4   ;;  %s5525_s27 = smov %s3681_s28 }
 0x825   : > { %s5527_s30 = smov %s3770_s11 }
 0x826   :  { %22 = sbr.rel (!%p20_p11) target bundleno = 5 (0x5), region = 99 }
 0x829   : > { %s5526_s28 = smov %s5523_s25 }
 0x82d   :  { %3203 = vsyncpa [#allocation3], 1 }
 0x82e   :  { %3205 = vsyncpa [#allocation3 + $0x1], 1 }
 0x82f   :  { %3206 = vsyncpa [#allocation6], 1 }
 0x830   :  { %3207 = vsyncpa [#allocation4], 1 }
 0x831   :  { %3209 = vsyncpa [#allocation4 + $0x1], 1 }

</bundles_post_ra>
